<compile_context>
chip_gen: v7x
topology: tpu7x:2x2x1
jax: 0.10.0
libtpu: 0.0.40
codegen_flags: <defaults>
</compile_context>

<pallas_src>
import functools

import jax
import jax.numpy as jnp
from jax.experimental import pallas as pl
from jax.experimental.pallas import tpu as pltpu

MATMUL_DTYPE = jnp.bfloat16   # MXU operand dtype (accumulation stays f32)
CPAD = 128                    # conv channel padding -> lane-dense stores
BN_EPS = 1e-5

_VMEM = pl.BlockSpec(memory_space=pltpu.MemorySpace.VMEM)


# ----------------------------------------------------------------------------
# Pallas kernels
# ----------------------------------------------------------------------------
def _conv_bn_relu_kernel(x_ref, w_ref, g_ref, b_ref, o_ref, *, eps):
    # x: (M, K) bf16 im2col patches, w: (K, 128) bf16, g/b: (1, 128) f32.
    # Fused: matmul -> batch-stat BatchNorm (biased var) -> affine -> ReLU.
    y = jnp.dot(x_ref[...], w_ref[...], preferred_element_type=jnp.float32)
    m = y.shape[0]
    mean = jnp.sum(y, axis=0, keepdims=True) * (1.0 / m)
    d = y - mean
    var = jnp.sum(d * d, axis=0, keepdims=True) * (1.0 / m)
    out = d * jax.lax.rsqrt(var + eps) * g_ref[...] + b_ref[...]
    o_ref[...] = jnp.maximum(out, 0.0).astype(o_ref.dtype)


def _head_fused_kernel(x_ref, w1_ref, b1_ref, w2_ref, b2_ref, o_ref):
    # flat (N, K1) @ w1 (K1, 128) + b1 -> ReLU -> @ w2 (128, 128) + b2.
    h = jnp.dot(x_ref[...], w1_ref[...], preferred_element_type=jnp.float32)
    h = jnp.maximum(h + b1_ref[...], 0.0)
    y = jnp.dot(h.astype(w2_ref.dtype), w2_ref[...],
                preferred_element_type=jnp.float32)
    o_ref[...] = (y + b2_ref[...]).astype(o_ref.dtype)


def _linear_kernel(x_ref, w_ref, b_ref, o_ref):
    y = jnp.dot(x_ref[...], w_ref[...], preferred_element_type=jnp.float32)
    o_ref[...] = (y + b_ref[...]).astype(o_ref.dtype)


# ----------------------------------------------------------------------------
# Conv layer: channels-last im2col (glue) + fused Pallas kernel
# ----------------------------------------------------------------------------
def conv_size_out(size, k=5, s=2):
    return (size - (k - 1) - 1) // s + 1


def im2col_nhwc(x, k=5, s=2):
    """x: (N, H, W, C) -> (N*OH*OW, k*k*C); feature index = (kh*k + kw)*C + c."""
    n, h, w, c = x.shape
    oh, ow = conv_size_out(h, k, s), conv_size_out(w, k, s)
    slabs = []
    for i in range(k):
        for j in range(k):
            slabs.append(x[:, i:i + s * oh:s, j:j + s * ow:s, :])  # (N,OH,OW,C)
    p = jnp.stack(slabs, axis=3)                  # (N, OH, OW, k*k, C)
    return p.reshape(n * oh * ow, k * k * c), oh, ow


def conv_bn_relu(x_nhwc, w_mat, gamma, beta):
    """Fused Conv2d(k=5, s=2, valid, no bias) + BatchNorm2d(batch stats) + ReLU.

    x_nhwc: (N, H, W, Cin[_pad]); w_mat: (k*k*Cin[_pad], 128) bf16 (pre-padded);
    returns (N, OH, OW, 128) bf16, padded channels exactly zero.
    """
    n = x_nhwc.shape[0]
    patches, oh, ow = im2col_nhwc(x_nhwc)
    m = patches.shape[0]
    cp = w_mat.shape[1]
    out = pl.pallas_call(
        functools.partial(_conv_bn_relu_kernel, eps=BN_EPS),
        out_shape=jax.ShapeDtypeStruct((m, cp), MATMUL_DTYPE),
        in_specs=[_VMEM] * 4,
        out_specs=_VMEM,
    )(patches.astype(MATMUL_DTYPE), w_mat, gamma, beta)
    return out.reshape(n, oh, ow, cp)


# ----------------------------------------------------------------------------
# Weight preprocessing (done once at init, all static)
# ----------------------------------------------------------------------------
def _prep_conv_weight(w, cin_pad, cout_pad=CPAD):
    """(Cout, Cin, k, k) PyTorch conv weight -> (k*k*cin_pad, cout_pad) bf16."""
    cout, cin, k, _ = w.shape
    wt = jnp.transpose(w, (2, 3, 1, 0))                       # (k, k, Cin, Cout)
    wt = jnp.pad(wt, ((0, 0), (0, 0), (0, cin_pad - cin), (0, cout_pad - cout)))
    return wt.reshape(k * k * cin_pad, cout_pad).astype(MATMUL_DTYPE)


def _prep_bn_param(p, pad_value):
    c = p.shape[0]
    return jnp.pad(p.astype(jnp.float32), (0, CPAD - c),
                   constant_values=pad_value).reshape(1, CPAD)


def _prep_two_layer_head(head__w, head__b, head_w, head_b, convh, convw):
    hid = convh * convw
    outputs = head_w.shape[0]
    # head__w: (hid, 32*convh*convw) with PyTorch flat order c*HW + i*convw + j.
    # Re-permute to consume the NHWC-channel-padded flatten ((i*convw+j)*128 + c).
    w1 = head__w.reshape(hid, 32, convh, convw)
    w1 = jnp.transpose(w1, (2, 3, 1, 0))                      # (i, j, c, hid)
    w1 = jnp.pad(w1, ((0, 0), (0, 0), (0, CPAD - 32), (0, CPAD - hid)))
    w1p = w1.reshape(convh * convw * CPAD, CPAD).astype(MATMUL_DTYPE)
    b1p = jnp.pad(head__b.astype(jnp.float32), (0, CPAD - hid)).reshape(1, CPAD)

    w2p = jnp.zeros((CPAD, CPAD), jnp.float32)
    w2p = w2p.at[:hid, :outputs].set(head_w.T).astype(MATMUL_DTYPE)
    b2p = jnp.zeros((1, CPAD), jnp.float32).at[0, :outputs].set(head_b)
    return w1p, b1p, w2p, b2p


def _prep_single_head(head_w, head_b, convh, convw):
    outputs = head_w.shape[0]
    w = head_w.reshape(outputs, 32, convh, convw)
    w = jnp.transpose(w, (2, 3, 1, 0))                        # (i, j, c, outputs)
    w = jnp.pad(w, ((0, 0), (0, 0), (0, CPAD - 32), (0, CPAD - outputs)))
    wp = w.reshape(convh * convw * CPAD, CPAD).astype(MATMUL_DTYPE)
    bp = jnp.zeros((1, CPAD), jnp.float32).at[0, :outputs].set(head_b)
    return wp, bp


# ----------------------------------------------------------------------------
# Parameter construction (deterministic, synthetic)
# ----------------------------------------------------------------------------
def init_critic_params(key, c, h, w):
    convw = conv_size_out(conv_size_out(conv_size_out(w)))
    convh = conv_size_out(conv_size_out(conv_size_out(h)))
    outputs = 1
    hid = convw * convh
    lin = hid * 32
    keys = jax.random.split(key, 8)

    def dense(k, shape, fan_in):
        return jax.random.normal(k, shape, jnp.float32) / jnp.sqrt(float(fan_in))

    # Raw PyTorch-layout conv weights (conv biases dropped: exact no-op before
    # training-mode BatchNorm).
    conv1_w = dense(keys[0], (16, c, 5, 5), c * 25)
    conv2_w = dense(keys[1], (32, 16, 5, 5), 16 * 25)
    conv3_w = dense(keys[2], (32, 32, 5, 5), 32 * 25)

    params = {
        "w1": _prep_conv_weight(conv1_w, cin_pad=c),
        "g1": _prep_bn_param(jnp.ones((16,)), 1.0),
        "b1": _prep_bn_param(jnp.zeros((16,)), 0.0),
        "w2": _prep_conv_weight(conv2_w, cin_pad=CPAD),
        "g2": _prep_bn_param(jnp.ones((32,)), 1.0),
        "b2": _prep_bn_param(jnp.zeros((32,)), 0.0),
        "w3": _prep_conv_weight(conv3_w, cin_pad=CPAD),
        "g3": _prep_bn_param(jnp.ones((32,)), 1.0),
        "b3": _prep_bn_param(jnp.zeros((32,)), 0.0),
    }
    meta = {"convw": convw, "convh": convh, "outputs": outputs,
            "two_layer": hid > 3 * outputs}

    if meta["two_layer"]:
        head__w = dense(keys[3], (hid, lin), lin)
        head__b = dense(keys[4], (hid,), lin)
        head_w = dense(keys[5], (outputs, hid), hid)
        head_b = dense(keys[6], (outputs,), hid)
        hw1, hb1, hw2, hb2 = _prep_two_layer_head(head__w, head__b,
                                                  head_w, head_b, convh, convw)
        params.update(hw1=hw1, hb1=hb1, hw2=hw2, hb2=hb2)
    else:
        head_w = dense(keys[5], (outputs, lin), lin)
        head_b = dense(keys[6], (outputs,), lin)
        hw, hb = _prep_single_head(head_w, head_b, convh, convw)
        params.update(hw=hw, hb=hb)
    return params, meta


# ----------------------------------------------------------------------------
# Critic forward
# ----------------------------------------------------------------------------
def critic_forward(params, meta, obs_nchw):
    """obs: (N, C, H, W) float32 -> value: (N,) float32."""
    # Single NCHW -> NHWC transpose of the raw input; channels-last afterwards.
    x = jnp.transpose(obs_nchw, (0, 2, 3, 1)).astype(MATMUL_DTYPE)
    x = conv_bn_relu(x, params["w1"], params["g1"], params["b1"])
    x = conv_bn_relu(x, params["w2"], params["g2"], params["b2"])
    x = conv_bn_relu(x, params["w3"], params["g3"], params["b3"])

    n = x.shape[0]
    # NHWC-padded flatten; PyTorch's C-major view order is folded into the
    # pre-permuted head weights, so no transpose / slice is needed here.
    flat = x.reshape(n, -1)                                   # (N, convh*convw*128)

    if meta["two_layer"]:
        out = pl.pallas_call(
            _head_fused_kernel,
            out_shape=jax.ShapeDtypeStruct((n, CPAD), jnp.float32),
            in_specs=[_VMEM] * 5,
            out_specs=_VMEM,
        )(flat, params["hw1"], params["hb1"], params["hw2"], params["hb2"])
    else:
        out = pl.pallas_call(
            _linear_kernel,
            out_shape=jax.ShapeDtypeStruct((n, CPAD), jnp.float32),
            in_specs=[_VMEM] * 3,
            out_specs=_VMEM,
        )(flat, params["hw"], params["hb"])

    return out[:, 0]   # lane 0 holds the real head output == squeeze(-1)


# ----------------------------------------------------------------------------
# Main
# ----------------------------------------------------------------------------
if __name__ == "__main__":
    key = jax.random.PRNGKey(0)
    kp, kx = jax.random.split(key)

    # Small but valid shapes: three stride-2 k=5 convs need H, W >= 29.
    N, C, H, W = 2, 3, 40, 40
    params, meta = init_critic_params(kp, C, H, W)
    obs = jax.random.normal(kx, (N, C, H, W), jnp.float32)

    fwd = jax.jit(functools.partial(critic_forward, params, meta))
    value = jax.block_until_ready(fwd(obs))

    assert value.shape == (N,), value.shape
    assert bool(jnp.all(jnp.isfinite(value)))
    print("KERNEL_OK")
</pallas_src>

<mosaic_0001>
module attributes {stable_mosaic.version = 11 : i64} {
  func.func @_conv_bn_relu_kernel(%arg0: memref<648x75xbf16, #tpu.memory_space<vmem>>, %arg1: memref<75x128xbf16, #tpu.memory_space<vmem>>, %arg2: memref<1x128xf32, #tpu.memory_space<vmem>>, %arg3: memref<1x128xf32, #tpu.memory_space<vmem>>, %arg4: memref<648x128xbf16, #tpu.memory_space<vmem>>) attributes {dimension_semantics = [], scalar_prefetch = 0 : i64, scratch_operands = 0 : i64, tpu.core_type = #tpu.core_type<tc>} {
    %c0 = arith.constant 0 : index
    %c0_0 = arith.constant 0 : index
    %0 = vector.load %arg0[%c0, %c0_0] : memref<648x75xbf16, #tpu.memory_space<vmem>>, vector<648x75xbf16>
    %c0_1 = arith.constant 0 : index
    %c0_2 = arith.constant 0 : index
    %1 = vector.load %arg1[%c0_1, %c0_2] : memref<75x128xbf16, #tpu.memory_space<vmem>>, vector<75x128xbf16>
    %cst = arith.constant dense<0.000000e+00> : vector<648x128xf32>
    %2 = tpu.matmul %0, %1, %cst {dimension_numbers = #tpu.dot_dimension_numbers<[1], [0], [0], [1], [0, 0, 1, 1], [], []>} : vector<648x75xbf16>, vector<75x128xbf16>, vector<648x128xf32> -> vector<648x128xf32>
    %cst_3 = arith.constant dense<0.000000e+00> : vector<128xf32>
    %3 = vector.multi_reduction <add>, %2, %cst_3 [0] : vector<648x128xf32> to vector<128xf32>
    %4 = vector.shape_cast %3 : vector<128xf32> to vector<1x128xf32>
    %cst_4 = arith.constant 0.00154320989 : f32
    %5 = vector.broadcast %cst_4 : f32 to vector<1x128xf32>
    %6 = arith.mulf %4, %5 : vector<1x128xf32>
    %7 = vector.broadcast %6 : vector<1x128xf32> to vector<648x128xf32>
    %8 = arith.subf %2, %7 : vector<648x128xf32>
    %9 = arith.mulf %8, %8 : vector<648x128xf32>
    %cst_5 = arith.constant dense<0.000000e+00> : vector<128xf32>
    %10 = vector.multi_reduction <add>, %9, %cst_5 [0] : vector<648x128xf32> to vector<128xf32>
    %11 = vector.shape_cast %10 : vector<128xf32> to vector<1x128xf32>
    %cst_6 = arith.constant 0.00154320989 : f32
    %12 = vector.broadcast %cst_6 : f32 to vector<1x128xf32>
    %13 = arith.mulf %11, %12 : vector<1x128xf32>
    %cst_7 = arith.constant 9.99999974E-6 : f32
    %14 = vector.broadcast %cst_7 : f32 to vector<1x128xf32>
    %15 = arith.addf %13, %14 : vector<1x128xf32>
    %16 = math.rsqrt %15 : vector<1x128xf32>
    %17 = vector.broadcast %16 : vector<1x128xf32> to vector<648x128xf32>
    %18 = arith.mulf %8, %17 : vector<648x128xf32>
    %c0_8 = arith.constant 0 : index
    %c0_9 = arith.constant 0 : index
    %19 = vector.load %arg2[%c0_8, %c0_9] : memref<1x128xf32, #tpu.memory_space<vmem>>, vector<1x128xf32>
    %20 = vector.broadcast %19 : vector<1x128xf32> to vector<648x128xf32>
    %21 = arith.mulf %18, %20 : vector<648x128xf32>
    %c0_10 = arith.constant 0 : index
    %c0_11 = arith.constant 0 : index
    %22 = vector.load %arg3[%c0_10, %c0_11] : memref<1x128xf32, #tpu.memory_space<vmem>>, vector<1x128xf32>
    %23 = vector.broadcast %22 : vector<1x128xf32> to vector<648x128xf32>
    %24 = arith.addf %21, %23 : vector<648x128xf32>
    %cst_12 = arith.constant 0.000000e+00 : f32
    %25 = vector.broadcast %cst_12 : f32 to vector<648x128xf32>
    %26 = arith.maximumf %24, %25 : vector<648x128xf32>
    %27 = arith.truncf %26 : vector<648x128xf32> to vector<648x128xbf16>
    %c0_13 = arith.constant 0 : index
    %c0_14 = arith.constant 0 : index
    %28 = vector.load %arg4[%c0_13, %c0_14] : memref<648x128xbf16, #tpu.memory_space<vmem>>, vector<648x128xbf16>
    tpu.vector_store %arg4[%c0_13, %c0_14], %27 {strides = array<i32>} : memref<648x128xbf16, #tpu.memory_space<vmem>>, vector<648x128xbf16>,
    return
  }
}

module attributes {stable_mosaic.version = 11 : i64} {
  func.func @_conv_bn_relu_kernel(%arg0: memref<98x3200xbf16, #tpu.memory_space<vmem>>, %arg1: memref<3200x128xbf16, #tpu.memory_space<vmem>>, %arg2: memref<1x128xf32, #tpu.memory_space<vmem>>, %arg3: memref<1x128xf32, #tpu.memory_space<vmem>>, %arg4: memref<98x128xbf16, #tpu.memory_space<vmem>>) attributes {dimension_semantics = [], scalar_prefetch = 0 : i64, scratch_operands = 0 : i64, tpu.core_type = #tpu.core_type<tc>} {
    %c0 = arith.constant 0 : index
    %c0_0 = arith.constant 0 : index
    %0 = vector.load %arg0[%c0, %c0_0] : memref<98x3200xbf16, #tpu.memory_space<vmem>>, vector<98x3200xbf16>
    %c0_1 = arith.constant 0 : index
    %c0_2 = arith.constant 0 : index
    %1 = vector.load %arg1[%c0_1, %c0_2] : memref<3200x128xbf16, #tpu.memory_space<vmem>>, vector<3200x128xbf16>
    %cst = arith.constant dense<0.000000e+00> : vector<98x128xf32>
    %2 = tpu.matmul %0, %1, %cst {dimension_numbers = #tpu.dot_dimension_numbers<[1], [0], [0], [1], [0, 0, 1, 1], [], []>} : vector<98x3200xbf16>, vector<3200x128xbf16>, vector<98x128xf32> -> vector<98x128xf32>
    %cst_3 = arith.constant dense<0.000000e+00> : vector<128xf32>
    %3 = vector.multi_reduction <add>, %2, %cst_3 [0] : vector<98x128xf32> to vector<128xf32>
    %4 = vector.shape_cast %3 : vector<128xf32> to vector<1x128xf32>
    %cst_4 = arith.constant 0.0102040814 : f32
    %5 = vector.broadcast %cst_4 : f32 to vector<1x128xf32>
    %6 = arith.mulf %4, %5 : vector<1x128xf32>
    %7 = vector.broadcast %6 : vector<1x128xf32> to vector<98x128xf32>
    %8 = arith.subf %2, %7 : vector<98x128xf32>
    %9 = arith.mulf %8, %8 : vector<98x128xf32>
    %cst_5 = arith.constant dense<0.000000e+00> : vector<128xf32>
    %10 = vector.multi_reduction <add>, %9, %cst_5 [0] : vector<98x128xf32> to vector<128xf32>
    %11 = vector.shape_cast %10 : vector<128xf32> to vector<1x128xf32>
    %cst_6 = arith.constant 0.0102040814 : f32
    %12 = vector.broadcast %cst_6 : f32 to vector<1x128xf32>
    %13 = arith.mulf %11, %12 : vector<1x128xf32>
    %cst_7 = arith.constant 9.99999974E-6 : f32
    %14 = vector.broadcast %cst_7 : f32 to vector<1x128xf32>
    %15 = arith.addf %13, %14 : vector<1x128xf32>
    %16 = math.rsqrt %15 : vector<1x128xf32>
    %17 = vector.broadcast %16 : vector<1x128xf32> to vector<98x128xf32>
    %18 = arith.mulf %8, %17 : vector<98x128xf32>
    %c0_8 = arith.constant 0 : index
    %c0_9 = arith.constant 0 : index
    %19 = vector.load %arg2[%c0_8, %c0_9] : memref<1x128xf32, #tpu.memory_space<vmem>>, vector<1x128xf32>
    %20 = vector.broadcast %19 : vector<1x128xf32> to vector<98x128xf32>
    %21 = arith.mulf %18, %20 : vector<98x128xf32>
    %c0_10 = arith.constant 0 : index
    %c0_11 = arith.constant 0 : index
    %22 = vector.load %arg3[%c0_10, %c0_11] : memref<1x128xf32, #tpu.memory_space<vmem>>, vector<1x128xf32>
    %23 = vector.broadcast %22 : vector<1x128xf32> to vector<98x128xf32>
    %24 = arith.addf %21, %23 : vector<98x128xf32>
    %cst_12 = arith.constant 0.000000e+00 : f32
    %25 = vector.broadcast %cst_12 : f32 to vector<98x128xf32>
    %26 = arith.maximumf %24, %25 : vector<98x128xf32>
    %27 = arith.truncf %26 : vector<98x128xf32> to vector<98x128xbf16>
    %c0_13 = arith.constant 0 : index
    %c0_14 = arith.constant 0 : index
    %28 = vector.load %arg4[%c0_13, %c0_14] : memref<98x128xbf16, #tpu.memory_space<vmem>>, vector<98x128xbf16>
    tpu.vector_store %arg4[%c0_13, %c0_14], %27 {strides = array<i32>} : memref<98x128xbf16, #tpu.memory_space<vmem>>, vector<98x128xbf16>,
    return
  }
}

module attributes {stable_mosaic.version = 11 : i64} {
  func.func @_conv_bn_relu_kernel(%arg0: memref<8x3200xbf16, #tpu.memory_space<vmem>>, %arg1: memref<3200x128xbf16, #tpu.memory_space<vmem>>, %arg2: memref<1x128xf32, #tpu.memory_space<vmem>>, %arg3: memref<1x128xf32, #tpu.memory_space<vmem>>, %arg4: memref<8x128xbf16, #tpu.memory_space<vmem>>) attributes {dimension_semantics = [], scalar_prefetch = 0 : i64, scratch_operands = 0 : i64, tpu.core_type = #tpu.core_type<tc>} {
    %c0 = arith.constant 0 : index
    %c0_0 = arith.constant 0 : index
    %0 = vector.load %arg0[%c0, %c0_0] : memref<8x3200xbf16, #tpu.memory_space<vmem>>, vector<8x3200xbf16>
    %c0_1 = arith.constant 0 : index
    %c0_2 = arith.constant 0 : index
    %1 = vector.load %arg1[%c0_1, %c0_2] : memref<3200x128xbf16, #tpu.memory_space<vmem>>, vector<3200x128xbf16>
    %cst = arith.constant dense<0.000000e+00> : vector<8x128xf32>
    %2 = tpu.matmul %0, %1, %cst {dimension_numbers = #tpu.dot_dimension_numbers<[1], [0], [0], [1], [0, 0, 1, 1], [], []>} : vector<8x3200xbf16>, vector<3200x128xbf16>, vector<8x128xf32> -> vector<8x128xf32>
    %cst_3 = arith.constant dense<0.000000e+00> : vector<128xf32>
    %3 = vector.multi_reduction <add>, %2, %cst_3 [0] : vector<8x128xf32> to vector<128xf32>
    %4 = vector.shape_cast %3 : vector<128xf32> to vector<1x128xf32>
    %cst_4 = arith.constant 1.250000e-01 : f32
    %5 = vector.broadcast %cst_4 : f32 to vector<1x128xf32>
    %6 = arith.mulf %4, %5 : vector<1x128xf32>
    %7 = vector.broadcast %6 : vector<1x128xf32> to vector<8x128xf32>
    %8 = arith.subf %2, %7 : vector<8x128xf32>
    %9 = arith.mulf %8, %8 : vector<8x128xf32>
    %cst_5 = arith.constant dense<0.000000e+00> : vector<128xf32>
    %10 = vector.multi_reduction <add>, %9, %cst_5 [0] : vector<8x128xf32> to vector<128xf32>
    %11 = vector.shape_cast %10 : vector<128xf32> to vector<1x128xf32>
    %cst_6 = arith.constant 1.250000e-01 : f32
    %12 = vector.broadcast %cst_6 : f32 to vector<1x128xf32>
    %13 = arith.mulf %11, %12 : vector<1x128xf32>
    %cst_7 = arith.constant 9.99999974E-6 : f32
    %14 = vector.broadcast %cst_7 : f32 to vector<1x128xf32>
    %15 = arith.addf %13, %14 : vector<1x128xf32>
    %16 = math.rsqrt %15 : vector<1x128xf32>
    %17 = vector.broadcast %16 : vector<1x128xf32> to vector<8x128xf32>
    %18 = arith.mulf %8, %17 : vector<8x128xf32>
    %c0_8 = arith.constant 0 : index
    %c0_9 = arith.constant 0 : index
    %19 = vector.load %arg2[%c0_8, %c0_9] : memref<1x128xf32, #tpu.memory_space<vmem>>, vector<1x128xf32>
    %20 = vector.broadcast %19 : vector<1x128xf32> to vector<8x128xf32>
    %21 = arith.mulf %18, %20 : vector<8x128xf32>
    %c0_10 = arith.constant 0 : index
    %c0_11 = arith.constant 0 : index
    %22 = vector.load %arg3[%c0_10, %c0_11] : memref<1x128xf32, #tpu.memory_space<vmem>>, vector<1x128xf32>
    %23 = vector.broadcast %22 : vector<1x128xf32> to vector<8x128xf32>
    %24 = arith.addf %21, %23 : vector<8x128xf32>
    %cst_12 = arith.constant 0.000000e+00 : f32
    %25 = vector.broadcast %cst_12 : f32 to vector<8x128xf32>
    %26 = arith.maximumf %24, %25 : vector<8x128xf32>
    %27 = arith.truncf %26 : vector<8x128xf32> to vector<8x128xbf16>
    %c0_13 = arith.constant 0 : index
    %c0_14 = arith.constant 0 : index
    %28 = vector.load %arg4[%c0_13, %c0_14] : memref<8x128xbf16, #tpu.memory_space<vmem>>, vector<8x128xbf16>
    tpu.vector_store %arg4[%c0_13, %c0_14], %27 {strides = array<i32>} : memref<8x128xbf16, #tpu.memory_space<vmem>>, vector<8x128xbf16>,
    return
  }
}

module attributes {stable_mosaic.version = 11 : i64} {
  func.func @_head_fused_kernel(%arg0: memref<2x512xbf16, #tpu.memory_space<vmem>>, %arg1: memref<512x128xbf16, #tpu.memory_space<vmem>>, %arg2: memref<1x128xf32, #tpu.memory_space<vmem>>, %arg3: memref<128x128xbf16, #tpu.memory_space<vmem>>, %arg4: memref<1x128xf32, #tpu.memory_space<vmem>>, %arg5: memref<2x128xf32, #tpu.memory_space<vmem>>) attributes {dimension_semantics = [], scalar_prefetch = 0 : i64, scratch_operands = 0 : i64, tpu.core_type = #tpu.core_type<tc>} {
    %c0 = arith.constant 0 : index
    %c0_0 = arith.constant 0 : index
    %0 = vector.load %arg0[%c0, %c0_0] : memref<2x512xbf16, #tpu.memory_space<vmem>>, vector<2x512xbf16>
    %c0_1 = arith.constant 0 : index
    %c0_2 = arith.constant 0 : index
    %1 = vector.load %arg1[%c0_1, %c0_2] : memref<512x128xbf16, #tpu.memory_space<vmem>>, vector<512x128xbf16>
    %cst = arith.constant dense<0.000000e+00> : vector<2x128xf32>
    %2 = tpu.matmul %0, %1, %cst {dimension_numbers = #tpu.dot_dimension_numbers<[1], [0], [0], [1], [0, 0, 1, 1], [], []>} : vector<2x512xbf16>, vector<512x128xbf16>, vector<2x128xf32> -> vector<2x128xf32>
    %c0_3 = arith.constant 0 : index
    %c0_4 = arith.constant 0 : index
    %3 = vector.load %arg2[%c0_3, %c0_4] : memref<1x128xf32, #tpu.memory_space<vmem>>, vector<1x128xf32>
    %4 = vector.broadcast %3 : vector<1x128xf32> to vector<2x128xf32>
    %5 = arith.addf %2, %4 : vector<2x128xf32>
    %cst_5 = arith.constant 0.000000e+00 : f32
    %6 = vector.broadcast %cst_5 : f32 to vector<2x128xf32>
    %7 = arith.maximumf %5, %6 : vector<2x128xf32>
    %8 = arith.truncf %7 : vector<2x128xf32> to vector<2x128xbf16>
    %c0_6 = arith.constant 0 : index
    %c0_7 = arith.constant 0 : index
    %9 = vector.load %arg3[%c0_6, %c0_7] : memref<128x128xbf16, #tpu.memory_space<vmem>>, vector<128x128xbf16>
    %cst_8 = arith.constant dense<0.000000e+00> : vector<2x128xf32>
    %10 = tpu.matmul %8, %9, %cst_8 {dimension_numbers = #tpu.dot_dimension_numbers<[1], [0], [0], [1], [0, 0, 1, 1], [], []>} : vector<2x128xbf16>, vector<128x128xbf16>, vector<2x128xf32> -> vector<2x128xf32>
    %c0_9 = arith.constant 0 : index
    %c0_10 = arith.constant 0 : index
    %11 = vector.load %arg4[%c0_9, %c0_10] : memref<1x128xf32, #tpu.memory_space<vmem>>, vector<1x128xf32>
    %12 = vector.broadcast %11 : vector<1x128xf32> to vector<2x128xf32>
    %13 = arith.addf %10, %12 : vector<2x128xf32>
    %c0_11 = arith.constant 0 : index
    %c0_12 = arith.constant 0 : index
    %14 = vector.load %arg5[%c0_11, %c0_12] : memref<2x128xf32, #tpu.memory_space<vmem>>, vector<2x128xf32>
    tpu.vector_store %arg5[%c0_11, %c0_12], %13 {strides = array<i32>} : memref<2x128xf32, #tpu.memory_space<vmem>>, vector<2x128xf32>,
    return
  }
}

</mosaic_0001>

<bundles_post_ra>
// kernel: critic_forward.4
= control target key start
LH: loop header
LB: loop body
LE: loop exit
PB: predicated region body
PF: predicated region fallthrough
CT: control target
= control target key end

     0   :  { %v2689_v0 = vmov 0.0   ;;  %vm2690_vm0 = vmmov 0   ;;  %vm465_vm1 = vcmask 1044480   ;;  %vm466_vm2 = vcmask 1045504   ;;  %s5067_s1 = inlined_call_operand.vmem [shape: bf16[75,128], index: 1, kind: input, shape index: {}]   ;;  %s5068_s0 = inlined_call_operand.vmem [shape: bf16[648,75], index: 0, kind: input, shape index: {}]   ;;  %s5069_s2 = inlined_call_operand.vmem [shape: f32[1,128], index: 2, kind: input, shape index: {}]   ;;  %s5070_s3 = inlined_call_operand.vmem [shape: f32[1,128], index: 3, kind: input, shape index: {}]   ;;  %s5071_s4 = inlined_call_operand.vmem [shape: bf16[648,128], index: 4, kind: output, shape index: {}]  }
   0x1   :  { %2454 = vmatprep.subr.bf16.mxu0 %v2689_v0  ;;  %v2641_v1 = vld [vmem:[%s5067_s1] sm:$0xff]   ;;  %2628 = vmatprep.subr.bf16.mxu1 %v2689_v0  ;;  %v2642_v2 = vld [vmem:[%s5067_s1 + $0x8] sm:$0xff]   ;;  %v2643_v3 = vld [vmem:[%s5067_s1 + $0x10] sm:$0xff]   ;;  %v2691_v4 = vmov 65535   ;;  %vm341_vm3 = vcmask 613376  }
   0x2   :  { %2455 = vmatpush3.bf16.msra.mxu0 %v2641_v1  ;;  %2633 = vmatpush3.bf16.msra.mxu1 %v2641_v1  ;;  %v467_v5 = vsel %vm465_vm1, 4294967295, %v2691_v4  ;;  %v2644_v6 = vld [vmem:[%s5067_s1 + $0x18] sm:$0xff]   ;;  %v2645_v7 = vld [vmem:[%s5067_s1 + $0x20] sm:$0x3f]   ;;  %v2657_v11 = vld [vmem:[%s5068_s0 + $0xa8] sm:$0xff]  }
   0x3   :  { %2456 = vmatprep.subr.bf16.mxu0 %v2689_v0  ;;  %2464 = vmatprep.mubr.msk.bf16.mxu0 %vm2690_vm0, %v2689_v0  ;;  %v468_v8 = vsel %vm466_vm2, %v467_v5, 0  ;;  %v2646_v10 = vld [vmem:[%s5068_s0] sm:$0xff]   ;;  %v2647_v12 = vld [vmem:[%s5068_s0 + $0x8] sm:$0xff]   ;;  %v2659_v13 = vld [vmem:[%s5068_s0 + $0xb0] sm:$0xff]  }
   0x4   :  { %2629 = vmatprep.subr.bf16.mxu1 %v2689_v0  ;;  %2548 = vmatprep.mubr.msk.bf16.mxu1 %vm2690_vm0, %v2689_v0  ;;  %v470_v9 = vand.u32 %v2645_v7, %v468_v8  ;;  %v2648_v14 = vld [vmem:[%s5068_s0 + $0x10] sm:$0xff]   ;;  %v2661_v15 = vld [vmem:[%s5068_s0 + $0xb8] sm:$0xff]   ;;  %v2663_v17 = vld [vmem:[%s5068_s0 + $0xc0] sm:$0xff]  }
   0x5   :  { %v2649_v16 = vld [vmem:[%s5068_s0 + $0x18] sm:$0xff]   ;;  %v2650_v18 = vld [vmem:[%s5068_s0 + $0x20] sm:$0xff]   ;;  %v2665_v19 = vld [vmem:[%s5068_s0 + $0xc8] sm:$0xff]  }
   0x6   :  { %2457 = vmatpush3.bf16.msra.mxu0 %v2642_v2  ;;  %2634 = vmatpush3.bf16.msra.mxu1 %v2642_v2  ;;  %v2651_v20 = vld [vmem:[%s5068_s0 + $0x28] sm:$0xff]   ;;  %v2667_v21 = vld [vmem:[%s5068_s0 + $0xd0] sm:$0xff]   ;;  %v2669_v23 = vld [vmem:[%s5068_s0 + $0xd8] sm:$0xff]  }
   0x7   :  { %2458 = vmatprep.subr.bf16.mxu0 %v2689_v0  ;;  %2630 = vmatprep.subr.bf16.mxu1 %v2689_v0  ;;  %v2652_v22 = vld [vmem:[%s5068_s0 + $0x30] sm:$0xff]   ;;  %v2653_v24 = vld [vmem:[%s5068_s0 + $0x38] sm:$0xff]   ;;  %v2671_v25 = vld [vmem:[%s5068_s0 + $0xe0] sm:$0xff]  }
   0x8   :  { %v2654_v26 = vld [vmem:[%s5068_s0 + $0x40] sm:$0xff]   ;;  %v2673_v27 = vld [vmem:[%s5068_s0 + $0xe8] sm:$0xff]   ;;  %v2675_v29 = vld [vmem:[%s5068_s0 + $0xf0] sm:$0xff]  }
   0x9   :  { %v2655_v28 = vld [vmem:[%s5068_s0 + $0x48] sm:$0xff]   ;;  %v2656_v30 = vld [vmem:[%s5068_s0 + $0x50] sm:$0xff]   ;;  %v2677_v31 = vld [vmem:[%s5068_s0 + $0xf8] sm:$0xff]  }
   0xa   :  { %2459 = vmatpush3.bf16.msra.mxu0 %v2643_v3  ;;  %2635 = vmatpush3.bf16.msra.mxu1 %v2643_v3  ;;  %v2658_v32 = vld [vmem:[%s5068_s0 + $0x58] sm:$0xff]   ;;  %v2678_v33 = vld [vmem:[%s5068_s0 + $0x100] sm:$0xff]   ;;  %v2679_v35 = vld [vmem:[%s5068_s0 + $0x108] sm:$0xff]  }
   0xb   :  { %2460 = vmatprep.subr.bf16.mxu0 %v2689_v0  ;;  %2631 = vmatprep.subr.bf16.mxu1 %v2689_v0  ;;  %v2660_v34 = vld [vmem:[%s5068_s0 + $0x60] sm:$0xff]   ;;  %v2662_v36 = vld [vmem:[%s5068_s0 + $0x68] sm:$0xff]   ;;  %v2680_v37 = vld [vmem:[%s5068_s0 + $0x110] sm:$0xff]  }
   0xc   :  { %v2664_v38 = vld [vmem:[%s5068_s0 + $0x70] sm:$0xff]   ;;  %v2681_v39 = vld [vmem:[%s5068_s0 + $0x118] sm:$0xff]   ;;  %v2682_v41 = vld [vmem:[%s5068_s0 + $0x120] sm:$0xff]  }
   0xd   :  { %v2666_v40 = vld [vmem:[%s5068_s0 + $0x78] sm:$0xff]   ;;  %v2668_v42 = vld [vmem:[%s5068_s0 + $0x80] sm:$0xff]   ;;  %v2683_v43 = vld [vmem:[%s5068_s0 + $0x128] sm:$0xff]  }
   0xe   :  { %2461 = vmatpush3.bf16.msra.mxu0 %v2644_v6  ;;  %2636 = vmatpush3.bf16.msra.mxu1 %v2644_v6  ;;  %v2670_v44 = vld [vmem:[%s5068_s0 + $0x88] sm:$0xff]   ;;  %v2684_v45 = vld [vmem:[%s5068_s0 + $0x130] sm:$0xff]   ;;  %v2685_v47 = vld [vmem:[%s5068_s0 + $0x138] sm:$0xff]  }
   0xf   :  { %2462 = vmatprep.subr.bf16.mxu0 %v2689_v0  ;;  %2632 = vmatprep.subr.bf16.mxu1 %v2689_v0  ;;  %v2672_v46 = vld [vmem:[%s5068_s0 + $0x90] sm:$0xff]   ;;  %v2674_v48 = vld [vmem:[%s5068_s0 + $0x98] sm:$0xff]   ;;  %v2686_v49 = vld [vmem:[%s5068_s0 + $0x140] ss:$0 sps:$4 sm:$0xff]  }
  0x10   :  { %v2676_v50 = vld [vmem:[%s5068_s0 + $0xa0] sm:$0xff]  }
  0x12   :  { %2463 = vmatpush3.bf16.msra.mxu0 %v470_v9  ;;  %2637 = vmatpush3.bf16.msra.mxu1 %v470_v9 }
  0x15   :  { %2465 = vmatmul.mubr.msk.bf16.vlgmr.msra.gmra.mrb[0].mxu0 %vm341_vm3, %v2646_v10  ;;  %2549 = vmatmul.mubr.msk.bf16.vlgmr.msra.gmra.mrb[0].mxu1 %vm341_vm3, %v2657_v11 }
  0x16   :  { %2468 = vmatprep.mubr.msk.bf16.mxu0 %vm2690_vm0, %v2689_v0  ;;  %2552 = vmatprep.mubr.msk.bf16.mxu1 %vm2690_vm0, %v2689_v0 }
  0x1d   :  { %2469 = vmatmul.mubr.msk.bf16.gmra.mrb[4].mxu0 %vm341_vm3, %v2647_v12  ;;  %2553 = vmatmul.mubr.msk.bf16.gmra.mrb[4].mxu1 %vm341_vm3, %v2659_v13 }
  0x1e   :  { %2472 = vmatprep.mubr.msk.bf16.mxu0 %vm2690_vm0, %v2689_v0  ;;  %2556 = vmatprep.mubr.msk.bf16.mxu1 %vm2690_vm0, %v2689_v0 }
  0x25   :  { %2473 = vmatmul.mubr.msk.bf16.gmra.mrb[8].mxu0 %vm341_vm3, %v2648_v14  ;;  %2557 = vmatmul.mubr.msk.bf16.gmra.mrb[8].mxu1 %vm341_vm3, %v2661_v15 }
  0x26   :  { %2476 = vmatprep.mubr.msk.bf16.mxu0 %vm2690_vm0, %v2689_v0  ;;  %2560 = vmatprep.mubr.msk.bf16.mxu1 %vm2690_vm0, %v2689_v0 }
  0x2d   :  { %2477 = vmatmul.mubr.msk.bf16.gmra.mrb[12].mxu0 %vm341_vm3, %v2649_v16  ;;  %2561 = vmatmul.mubr.msk.bf16.gmra.mrb[12].mxu1 %vm341_vm3, %v2663_v17 }
  0x2e   :  { %2480 = vmatprep.mubr.msk.bf16.mxu0 %vm2690_vm0, %v2689_v0  ;;  %2564 = vmatprep.mubr.msk.bf16.mxu1 %vm2690_vm0, %v2689_v0 }
  0x35   :  { %2481 = vmatmul.mubr.msk.bf16.gmra.mrb[16].mxu0 %vm341_vm3, %v2650_v18  ;;  %2565 = vmatmul.mubr.msk.bf16.gmra.mrb[16].mxu1 %vm341_vm3, %v2665_v19 }
  0x36   :  { %2484 = vmatprep.mubr.msk.bf16.mxu0 %vm2690_vm0, %v2689_v0  ;;  %2568 = vmatprep.mubr.msk.bf16.mxu1 %vm2690_vm0, %v2689_v0 }
  0x3d   :  { %2485 = vmatmul.mubr.msk.bf16.gmra.mrb[20].mxu0 %vm341_vm3, %v2651_v20  ;;  %2569 = vmatmul.mubr.msk.bf16.gmra.mrb[20].mxu1 %vm341_vm3, %v2667_v21 }
  0x3e   :  { %2488 = vmatprep.mubr.msk.bf16.mxu0 %vm2690_vm0, %v2689_v0  ;;  %2572 = vmatprep.mubr.msk.bf16.mxu1 %vm2690_vm0, %v2689_v0 }
  0x45   :  { %2489 = vmatmul.mubr.msk.bf16.gmra.mrb[24].mxu0 %vm341_vm3, %v2652_v22  ;;  %2573 = vmatmul.mubr.msk.bf16.gmra.mrb[24].mxu1 %vm341_vm3, %v2669_v23 }
  0x46   :  { %2492 = vmatprep.mubr.msk.bf16.mxu0 %vm2690_vm0, %v2689_v0  ;;  %2576 = vmatprep.mubr.msk.bf16.mxu1 %vm2690_vm0, %v2689_v0 }
  0x4d   :  { %2493 = vmatmul.mubr.msk.bf16.gmra.mrb[28].mxu0 %vm341_vm3, %v2653_v24  ;;  %2577 = vmatmul.mubr.msk.bf16.gmra.mrb[28].mxu1 %vm341_vm3, %v2671_v25 }
  0x4e   :  { %2496 = vmatprep.mubr.msk.bf16.mxu0 %vm2690_vm0, %v2689_v0  ;;  %2580 = vmatprep.mubr.msk.bf16.mxu1 %vm2690_vm0, %v2689_v0 }
  0x55   :  { %2497 = vmatmul.mubr.msk.bf16.gmra.mrb[32].mxu0 %vm341_vm3, %v2654_v26  ;;  %2581 = vmatmul.mubr.msk.bf16.gmra.mrb[32].mxu1 %vm341_vm3, %v2673_v27 }
  0x56   :  { %2500 = vmatprep.mubr.msk.bf16.mxu0 %vm2690_vm0, %v2689_v0  ;;  %2584 = vmatprep.mubr.msk.bf16.mxu1 %vm2690_vm0, %v2689_v0 }
  0x5d   :  { %2501 = vmatmul.mubr.msk.bf16.gmra.mrb[36].mxu0 %vm341_vm3, %v2655_v28  ;;  %2585 = vmatmul.mubr.msk.bf16.gmra.mrb[36].mxu1 %vm341_vm3, %v2675_v29 }
  0x5e   :  { %2504 = vmatprep.mubr.msk.bf16.mxu0 %vm2690_vm0, %v2689_v0  ;;  %2588 = vmatprep.mubr.msk.bf16.mxu1 %vm2690_vm0, %v2689_v0 }
  0x65   :  { %2505 = vmatmul.mubr.msk.bf16.gmra.mrb[40].mxu0 %vm341_vm3, %v2656_v30  ;;  %2589 = vmatmul.mubr.msk.bf16.gmra.mrb[40].mxu1 %vm341_vm3, %v2677_v31 }
  0x66   :  { %2508 = vmatprep.mubr.msk.bf16.mxu0 %vm2690_vm0, %v2689_v0  ;;  %2592 = vmatprep.mubr.msk.bf16.mxu1 %vm2690_vm0, %v2689_v0 }
  0x6d   :  { %2509 = vmatmul.mubr.msk.bf16.gmra.mrb[44].mxu0 %vm341_vm3, %v2658_v32  ;;  %2593 = vmatmul.mubr.msk.bf16.gmra.mrb[44].mxu1 %vm341_vm3, %v2678_v33 }
  0x6e   :  { %2512 = vmatprep.mubr.msk.bf16.mxu0 %vm2690_vm0, %v2689_v0  ;;  %2596 = vmatprep.mubr.msk.bf16.mxu1 %vm2690_vm0, %v2689_v0 }
  0x75   :  { %2513 = vmatmul.mubr.msk.bf16.gmra.mrb[48].mxu0 %vm341_vm3, %v2660_v34  ;;  %2597 = vmatmul.mubr.msk.bf16.gmra.mrb[48].mxu1 %vm341_vm3, %v2679_v35 }
  0x76   :  { %2516 = vmatprep.mubr.msk.bf16.mxu0 %vm2690_vm0, %v2689_v0  ;;  %2600 = vmatprep.mubr.msk.bf16.mxu1 %vm2690_vm0, %v2689_v0 }
  0x7d   :  { %2517 = vmatmul.mubr.msk.bf16.gmra.mrb[52].mxu0 %vm341_vm3, %v2662_v36  ;;  %2601 = vmatmul.mubr.msk.bf16.gmra.mrb[52].mxu1 %vm341_vm3, %v2680_v37 }
  0x7e   :  { %2520 = vmatprep.mubr.msk.bf16.mxu0 %vm2690_vm0, %v2689_v0  ;;  %2604 = vmatprep.mubr.msk.bf16.mxu1 %vm2690_vm0, %v2689_v0 }
  0x85   :  { %2521 = vmatmul.mubr.msk.bf16.gmra.mrb[56].mxu0 %vm341_vm3, %v2664_v38  ;;  %2605 = vmatmul.mubr.msk.bf16.gmra.mrb[56].mxu1 %vm341_vm3, %v2681_v39 }
  0x86   :  { %2524 = vmatprep.mubr.msk.bf16.mxu0 %vm2690_vm0, %v2689_v0  ;;  %2608 = vmatprep.mubr.msk.bf16.mxu1 %vm2690_vm0, %v2689_v0 }
  0x8d   :  { %2525 = vmatmul.mubr.msk.bf16.gmra.mrb[60].mxu0 %vm341_vm3, %v2666_v40  ;;  %2609 = vmatmul.mubr.msk.bf16.gmra.mrb[60].mxu1 %vm341_vm3, %v2682_v41 }
  0x8e   :  { %2528 = vmatprep.mubr.msk.bf16.mxu0 %vm2690_vm0, %v2689_v0  ;;  %2612 = vmatprep.mubr.msk.bf16.mxu1 %vm2690_vm0, %v2689_v0 }
  0x95   :  { %2529 = vmatmul.mubr.msk.bf16.gmra.mrb[64].mxu0 %vm341_vm3, %v2668_v42  ;;  %2613 = vmatmul.mubr.msk.bf16.gmra.mrb[64].mxu1 %vm341_vm3, %v2683_v43 }
  0x96   :  { %2532 = vmatprep.mubr.msk.bf16.mxu0 %vm2690_vm0, %v2689_v0  ;;  %2616 = vmatprep.mubr.msk.bf16.mxu1 %vm2690_vm0, %v2689_v0 }
  0x9d   :  { %2533 = vmatmul.mubr.msk.bf16.gmra.mrb[68].mxu0 %vm341_vm3, %v2670_v44  ;;  %2617 = vmatmul.mubr.msk.bf16.gmra.mrb[68].mxu1 %vm341_vm3, %v2684_v45 }
  0x9e   :  { %2536 = vmatprep.mubr.msk.bf16.mxu0 %vm2690_vm0, %v2689_v0  ;;  %2620 = vmatprep.mubr.msk.bf16.mxu1 %vm2690_vm0, %v2689_v0 }
  0xa5   :  { %2537 = vmatmul.mubr.msk.bf16.gmra.mrb[72].mxu0 %vm341_vm3, %v2672_v46  ;;  %2621 = vmatmul.mubr.msk.bf16.gmra.mrb[72].mxu1 %vm341_vm3, %v2685_v47 }
  0xa6   :  { %2540 = vmatprep.mubr.msk.bf16.mxu0 %vm2690_vm0, %v2689_v0  ;;  %2624 = vmatprep.mubr.msk.bf16.mxu1 %vm2690_vm0, %v2689_v0 }
  0xad   :  { %2541 = vmatmul.mubr.msk.bf16.gmra.mrb[76].mxu0 %vm341_vm3, %v2674_v48  ;;  %2625 = vmatmul.mubr.msk.bf16.gmra.mrb[76].mxu1 %vm341_vm3, %v2686_v49 }
  0xae   :  { %2544 = vmatprep.mubr.msk.bf16.mxu0 %vm2690_vm0, %v2689_v0 }
  0xb5   :  { %2545 = vmatmul.mubr.msk.bf16.gmra.mrb[80].mxu0 %vm341_vm3, %v2676_v50 }
  0xe8   :  { %v2988_v51 = vpop.f32.mrb[0].mxu0  ;;  %v2990_v52 = vpop.f32.mrb[0].mxu1 }
  0xe9   :  { %v2466_v53 = vpop.f32.mrb[1].mxu0  ;;  %v2550_v54 = vpop.f32.mrb[1].mxu1 }
  0xea   :  { %v2992_v55 = vpop.f32.mrb[2].mxu0  ;;  %v2994_v56 = vpop.f32.mrb[2].mxu1 }
  0xeb   :  { %v832_v57 = vadd.f32 %v2992_v55, %v2988_v51  ;;  %v2467_v58 = vpop.f32.mrb[3].mxu0  ;;  %v2551_v59 = vpop.f32.mrb[3].mxu1 }
  0xf0   :  { %v2998_v60 = vpop.f32.mrb[4].mxu0  ;;  %v3000_v61 = vpop.f32.mrb[4].mxu1 }
  0xf1   :  { %v833_v62 = vadd.f32 %v832_v57, %v2998_v60  ;;  %v2470_v63 = vpop.f32.mrb[5].mxu0  ;;  %v2554_v0 = vpop.f32.mrb[5].mxu1 }
  0xf2   :  { %v3003_v1 = vpop.f32.mrb[6].mxu0  ;;  %v3005_v2 = vpop.f32.mrb[6].mxu1 }
  0xf3   :  { %v834_v3 = vadd.f32 %v833_v62, %v3003_v1  ;;  %v2471_v4 = vpop.f32.mrb[7].mxu0  ;;  %v2555_v5 = vpop.f32.mrb[7].mxu1 }
  0xf8   :  { %v3008_v6 = vpop.f32.mrb[8].mxu0  ;;  %v3010_v7 = vpop.f32.mrb[8].mxu1 }
  0xf9   :  { %v835_v8 = vadd.f32 %v834_v3, %v3008_v6  ;;  %v2474_v9 = vpop.f32.mrb[9].mxu0  ;;  %v2558_v10 = vpop.f32.mrb[9].mxu1 }
  0xfa   :  { %v3013_v11 = vpop.f32.mrb[10].mxu0  ;;  %v3015_v12 = vpop.f32.mrb[10].mxu1 }
  0xfb   :  { %v836_v13 = vadd.f32 %v835_v8, %v3013_v11  ;;  %v2475_v14 = vpop.f32.mrb[11].mxu0  ;;  %v2559_v15 = vpop.f32.mrb[11].mxu1 }
 0x100   :  { %v3018_v16 = vpop.f32.mrb[12].mxu0  ;;  %v3020_v17 = vpop.f32.mrb[12].mxu1 }
 0x101   :  { %v837_v18 = vadd.f32 %v836_v13, %v3018_v16  ;;  %v2478_v19 = vpop.f32.mrb[13].mxu0  ;;  %v2562_v20 = vpop.f32.mrb[13].mxu1 }
 0x102   :  { %v3023_v21 = vpop.f32.mrb[14].mxu0  ;;  %v3025_v22 = vpop.f32.mrb[14].mxu1 }
 0x103   :  { %v838_v23 = vadd.f32 %v837_v18, %v3023_v21  ;;  %v2479_v24 = vpop.f32.mrb[15].mxu0  ;;  %v2563_v25 = vpop.f32.mrb[15].mxu1 }
 0x108   :  { %v3028_v26 = vpop.f32.mrb[16].mxu0  ;;  %v3030_v27 = vpop.f32.mrb[16].mxu1 }
 0x109   :  { %v839_v28 = vadd.f32 %v838_v23, %v3028_v26  ;;  %v2482_v29 = vpop.f32.mrb[17].mxu0  ;;  %v2566_v30 = vpop.f32.mrb[17].mxu1 }
 0x10a   :  { %v3033_v31 = vpop.f32.mrb[18].mxu0  ;;  %v3035_v32 = vpop.f32.mrb[18].mxu1 }
 0x10b   :  { %5198 = vst [vmem:[#allocation2_spill] sm:$0xff] %v3033_v31  ;;  %v840_v33 = vadd.f32 %v839_v28, %v3033_v31  ;;  %v2483_v34 = vpop.f32.mrb[19].mxu0  ;;  %v2567_v35 = vpop.f32.mrb[19].mxu1 }
 0x110   :  { %v3038_v36 = vpop.f32.mrb[20].mxu0  ;;  %v3040_v37 = vpop.f32.mrb[20].mxu1 }
 0x111   :  { %5199 = vst [vmem:[#allocation3_spill] sm:$0xff] %v3038_v36  ;;  %v841_v38 = vadd.f32 %v840_v33, %v3038_v36  ;;  %v2486_v39 = vpop.f32.mrb[21].mxu0  ;;  %v2570_v40 = vpop.f32.mrb[21].mxu1 }
 0x112   :  { %v3043_v41 = vpop.f32.mrb[22].mxu0  ;;  %v3045_v42 = vpop.f32.mrb[22].mxu1 }
 0x113   :  { %5200 = vst [vmem:[#allocation4_spill] sm:$0xff] %v3043_v41  ;;  %v842_v43 = vadd.f32 %v841_v38, %v3043_v41  ;;  %v2487_v44 = vpop.f32.mrb[23].mxu0  ;;  %v2571_v45 = vpop.f32.mrb[23].mxu1 }
 0x118   :  { %v3048_v46 = vpop.f32.mrb[24].mxu0  ;;  %v3050_v47 = vpop.f32.mrb[24].mxu1 }
 0x119   :  { %5201 = vst [vmem:[#allocation5_spill] sm:$0xff] %v3048_v46  ;;  %v843_v48 = vadd.f32 %v842_v43, %v3048_v46  ;;  %v2490_v49 = vpop.f32.mrb[25].mxu0  ;;  %v2574_v50 = vpop.f32.mrb[25].mxu1 }
 0x11a   :  { %v3053_v53 = vpop.f32.mrb[26].mxu0  ;;  %v3055_v54 = vpop.f32.mrb[26].mxu1 }
 0x11b   :  { %5202 = vst [vmem:[#allocation6_spill] sm:$0xff] %v3053_v53  ;;  %v844_v57 = vadd.f32 %v843_v48, %v3053_v53  ;;  %v2491_v58 = vpop.f32.mrb[27].mxu0  ;;  %v2575_v59 = vpop.f32.mrb[27].mxu1 }
 0x120   :  { %v3058_v62 = vpop.f32.mrb[28].mxu0  ;;  %v3060_v63 = vpop.f32.mrb[28].mxu1 }
 0x121   :  { %5203 = vst [vmem:[#allocation7_spill] sm:$0xff] %v3058_v62  ;;  %v845_v0 = vadd.f32 %v844_v57, %v3058_v62  ;;  %v2494_v3 = vpop.f32.mrb[29].mxu0  ;;  %v2578_v4 = vpop.f32.mrb[29].mxu1 }
 0x122   :  { %v3063_v5 = vpop.f32.mrb[30].mxu0  ;;  %v3065_v8 = vpop.f32.mrb[30].mxu1 }
 0x123   :  { %5204 = vst [vmem:[#allocation8_spill] sm:$0xff] %v3063_v5  ;;  %v846_v9 = vadd.f32 %v845_v0, %v3063_v5  ;;  %v2495_v10 = vpop.f32.mrb[31].mxu0  ;;  %v2579_v13 = vpop.f32.mrb[31].mxu1 }
 0x128   :  { %v3068_v14 = vpop.f32.mrb[32].mxu0  ;;  %v3070_v15 = vpop.f32.mrb[32].mxu1 }
 0x129   :  { %5205 = vst [vmem:[#allocation9_spill] sm:$0xff] %v3068_v14  ;;  %v847_v18 = vadd.f32 %v846_v9, %v3068_v14  ;;  %v2498_v19 = vpop.f32.mrb[33].mxu0  ;;  %v2582_v20 = vpop.f32.mrb[33].mxu1 }
 0x12a   :  { %v3073_v23 = vpop.f32.mrb[34].mxu0  ;;  %v3075_v24 = vpop.f32.mrb[34].mxu1 }
 0x12b   :  { %5206 = vst [vmem:[#allocation10_spill] sm:$0xff] %v3073_v23  ;;  %v848_v25 = vadd.f32 %v847_v18, %v3073_v23  ;;  %v2499_v28 = vpop.f32.mrb[35].mxu0  ;;  %v2583_v29 = vpop.f32.mrb[35].mxu1 }
 0x130   :  { %v3078_v30 = vpop.f32.mrb[36].mxu0  ;;  %v3080_v33 = vpop.f32.mrb[36].mxu1 }
 0x131   :  { %5207 = vst [vmem:[#allocation11_spill] sm:$0xff] %v3078_v30  ;;  %v849_v34 = vadd.f32 %v848_v25, %v3078_v30  ;;  %v2502_v35 = vpop.f32.mrb[37].mxu0  ;;  %v2586_v38 = vpop.f32.mrb[37].mxu1 }
 0x132   :  { %v3083_v39 = vpop.f32.mrb[38].mxu0  ;;  %v3085_v40 = vpop.f32.mrb[38].mxu1 }
 0x133   :  { %5208 = vst [vmem:[#allocation12_spill] sm:$0xff] %v3083_v39  ;;  %v850_v43 = vadd.f32 %v849_v34, %v3083_v39  ;;  %v2503_v44 = vpop.f32.mrb[39].mxu0  ;;  %v2587_v45 = vpop.f32.mrb[39].mxu1 }
 0x138   :  { %v3088_v48 = vpop.f32.mrb[40].mxu0  ;;  %v3090_v49 = vpop.f32.mrb[40].mxu1 }
 0x139   :  { %5209 = vst [vmem:[#allocation13_spill] sm:$0xff] %v3088_v48  ;;  %v851_v50 = vadd.f32 %v850_v43, %v3088_v48  ;;  %v2506_v57 = vpop.f32.mrb[41].mxu0  ;;  %v2590_v58 = vpop.f32.mrb[41].mxu1 }
 0x13a   :  { %v3093_v59 = vpop.f32.mrb[42].mxu0  ;;  %v3095_v0 = vpop.f32.mrb[42].mxu1 }
 0x13b   :  { %5210 = vst [vmem:[#allocation14_spill] sm:$0xff] %v3093_v59  ;;  %v852_v3 = vadd.f32 %v851_v50, %v3093_v59  ;;  %v2507_v4 = vpop.f32.mrb[43].mxu0  ;;  %v2591_v9 = vpop.f32.mrb[43].mxu1 }
 0x140   :  { %v3098_v10 = vpop.f32.mrb[44].mxu0  ;;  %v3100_v13 = vpop.f32.mrb[44].mxu1 }
 0x141   :  { %5211 = vst [vmem:[#allocation15_spill] sm:$0xff] %v3098_v10  ;;  %v853_v18 = vadd.f32 %v852_v3, %v3098_v10  ;;  %v2510_v19 = vpop.f32.mrb[45].mxu0  ;;  %v2594_v20 = vpop.f32.mrb[45].mxu1 }
 0x142   :  { %v3103_v25 = vpop.f32.mrb[46].mxu0  ;;  %v3105_v28 = vpop.f32.mrb[46].mxu1 }
 0x143   :  { %5212 = vst [vmem:[#allocation16_spill] sm:$0xff] %v3103_v25  ;;  %v854_v29 = vadd.f32 %v853_v18, %v3103_v25  ;;  %v2511_v34 = vpop.f32.mrb[47].mxu0  ;;  %v2595_v35 = vpop.f32.mrb[47].mxu1 }
 0x148   :  { %v3108_v38 = vpop.f32.mrb[48].mxu0  ;;  %v3110_v43 = vpop.f32.mrb[48].mxu1 }
 0x149   :  { %5213 = vst [vmem:[#allocation17_spill] sm:$0xff] %v3108_v38  ;;  %v855_v44 = vadd.f32 %v854_v29, %v3108_v38  ;;  %v2514_v45 = vpop.f32.mrb[49].mxu0  ;;  %v2598_v50 = vpop.f32.mrb[49].mxu1 }
 0x14a   :  { %v3113_v57 = vpop.f32.mrb[50].mxu0  ;;  %v3115_v58 = vpop.f32.mrb[50].mxu1 }
 0x14b   :  { %5214 = vst [vmem:[#allocation18_spill] sm:$0xff] %v3113_v57  ;;  %v856_v3 = vadd.f32 %v855_v44, %v3113_v57  ;;  %v2515_v4 = vpop.f32.mrb[51].mxu0  ;;  %v2599_v9 = vpop.f32.mrb[51].mxu1 }
 0x150   :  { %v3118_v19 = vpop.f32.mrb[52].mxu0  ;;  %v3120_v18 = vpop.f32.mrb[52].mxu1 }
 0x151   :  { %5215 = vst [vmem:[#allocation19_spill] sm:$0xff] %v3118_v19  ;;  %v857_v20 = vadd.f32 %v856_v3, %v3118_v19  ;;  %v2518_v34 = vpop.f32.mrb[53].mxu0  ;;  %v2602_v35 = vpop.f32.mrb[53].mxu1 }
 0x152   :  { %v3123_v25 = vpop.f32.mrb[54].mxu0  ;;  %v3125_v29 = vpop.f32.mrb[54].mxu1 }
 0x153   :  { %5216 = vst [vmem:[#allocation20_spill] sm:$0xff] %v3123_v25  ;;  %v858_v45 = vadd.f32 %v857_v20, %v3123_v25  ;;  %v2519_v50 = vpop.f32.mrb[55].mxu0  ;;  %v2603_v38 = vpop.f32.mrb[55].mxu1 }
 0x158   :  { %v3128_v10 = vpop.f32.mrb[56].mxu0  ;;  %v3130_v44 = vpop.f32.mrb[56].mxu1 }
 0x159   :  { %5217 = vst [vmem:[#allocation21_spill] sm:$0xff] %v3128_v10  ;;  %v859_v4 = vadd.f32 %v858_v45, %v3128_v10  ;;  %v2522_v9 = vpop.f32.mrb[57].mxu0  ;;  %v2606_v57 = vpop.f32.mrb[57].mxu1 }
 0x15a   :  { %v3133_v59 = vpop.f32.mrb[58].mxu0  ;;  %v3135_v3 = vpop.f32.mrb[58].mxu1 }
 0x15b   :  { %5218 = vst [vmem:[#allocation22_spill] sm:$0xff] %v3133_v59  ;;  %5219 = vst [vmem:[#allocation23_spill] sm:$0xff] %v3135_v3  ;;  %v860_v34 = vadd.f32 %v859_v4, %v3133_v59  ;;  %v2523_v35 = vpop.f32.mrb[59].mxu0  ;;  %v2607_v19 = vpop.f32.mrb[59].mxu1 }
 0x160   :  { %v3138_v48 = vpop.f32.mrb[60].mxu0  ;;  %v3140_v20 = vpop.f32.mrb[60].mxu1 }
 0x161   :  { %5220 = vst [vmem:[#allocation24_spill] sm:$0xff] %v3138_v48  ;;  %5221 = vst [vmem:[#allocation25_spill] sm:$0xff] %v3140_v20  ;;  %v861_v38 = vadd.f32 %v860_v34, %v3138_v48  ;;  %v2526_v50 = vpop.f32.mrb[61].mxu0  ;;  %v2610_v25 = vpop.f32.mrb[61].mxu1 }
 0x162   :  { %v3143_v39 = vpop.f32.mrb[62].mxu0  ;;  %v3145_v45 = vpop.f32.mrb[62].mxu1 }
 0x163   :  { %5222 = vst [vmem:[#allocation26_spill] sm:$0xff] %v3143_v39  ;;  %5223 = vst [vmem:[#allocation27_spill] sm:$0xff] %v3145_v45  ;;  %v862_v57 = vadd.f32 %v861_v38, %v3143_v39  ;;  %v2527_v9 = vpop.f32.mrb[63].mxu0  ;;  %v2611_v10 = vpop.f32.mrb[63].mxu1 }
 0x168   :  { %v3148_v30 = vpop.f32.mrb[64].mxu0  ;;  %v3150_v4 = vpop.f32.mrb[64].mxu1 }
 0x169   :  { %5224 = vst [vmem:[#allocation28_spill] sm:$0xff] %v3148_v30  ;;  %v863_v19 = vadd.f32 %v862_v57, %v3148_v30  ;;  %v2530_v35 = vpop.f32.mrb[65].mxu0  ;;  %v2614_v59 = vpop.f32.mrb[65].mxu1 }
 0x16a   :  { %v3153_v23 = vpop.f32.mrb[66].mxu0  ;;  %v3155_v34 = vpop.f32.mrb[66].mxu1 }
 0x16b   :  { %5225 = vst [vmem:[#allocation29_spill] sm:$0xff] %v3153_v23  ;;  %v864_v25 = vadd.f32 %v863_v19, %v3153_v23  ;;  %v2531_v50 = vpop.f32.mrb[67].mxu0  ;;  %v2615_v48 = vpop.f32.mrb[67].mxu1 }
 0x170   :  { %v3158_v14 = vpop.f32.mrb[68].mxu0  ;;  %v3160_v38 = vpop.f32.mrb[68].mxu1 }
 0x171   :  { %5226 = vst [vmem:[#allocation30_spill] sm:$0xff] %v3158_v14  ;;  %v865_v10 = vadd.f32 %v864_v25, %v3158_v14  ;;  %v2534_v9 = vpop.f32.mrb[69].mxu0  ;;  %v2618_v39 = vpop.f32.mrb[69].mxu1 }
 0x172   :  { %v3163_v5 = vpop.f32.mrb[70].mxu0  ;;  %v3165_v57 = vpop.f32.mrb[70].mxu1 }
 0x173   :  { %5227 = vst [vmem:[#allocation31_spill] sm:$0xff] %v3163_v5  ;;  %v866_v59 = vadd.f32 %v865_v10, %v3163_v5  ;;  %v2535_v35 = vpop.f32.mrb[71].mxu0  ;;  %v2619_v30 = vpop.f32.mrb[71].mxu1 }
 0x178   :  { %v3168_v62 = vpop.f32.mrb[72].mxu0  ;;  %v3170_v19 = vpop.f32.mrb[72].mxu1 }
 0x179   :  { %5228 = vst [vmem:[#allocation32_spill] sm:$0xff] %v3168_v62  ;;  %v867_v48 = vadd.f32 %v866_v59, %v3168_v62  ;;  %v2538_v50 = vpop.f32.mrb[73].mxu0  ;;  %v2622_v23 = vpop.f32.mrb[73].mxu1 }
 0x17a   :  { %v3173_v53 = vpop.f32.mrb[74].mxu0  ;;  %v3175_v25 = vpop.f32.mrb[74].mxu1 }
 0x17b   :  { %5229 = vst [vmem:[#allocation33_spill] sm:$0xff] %v3173_v53  ;;  %v868_v39 = vadd.f32 %v867_v48, %v3173_v53  ;;  %v2539_v9 = vpop.f32.mrb[75].mxu0  ;;  %v2623_v14 = vpop.f32.mrb[75].mxu1 }
 0x180   :  { %v3178_v46 = vpop.f32.mrb[76].mxu0  ;;  %v3180_v10 = vpop.f32.mrb[76].mxu1 }
 0x181   :  { %v869_v30 = vadd.f32 %v868_v39, %v3178_v46  ;;  %v2542_v35 = vpop.f32.mrb[77].mxu0  ;;  %v2626_v5 = vpop.f32.mrb[77].mxu1 }
 0x182   :  { %v3183_v41 = vpop.f32.mrb[78].mxu0  ;;  %v829_v59 = vpop.f32.mrb[78].mxu1 }
 0x183   :  { %v870_v23 = vadd.f32 %v869_v30, %v3183_v41  ;;  %v2543_v50 = vpop.f32.mrb[79].mxu0  ;;  %v2627_v62 = vpop.f32.mrb[79].mxu1 }
 0x188   :  { %v3186_v36 = vpop.f32.mrb[80].mxu0 }
 0x189   :  { %v871_v48 = vadd.f32 %v870_v23, %v3186_v36  ;;  %v2546_v14 = vpop.f32.mrb[81].mxu0 }
 0x18a   :  { %v3189_v9 = vpop.f32.mrb[82].mxu0 }
 0x18b   :  { %v872_v53 = vadd.f32 %v871_v48, %v3189_v9  ;;  %v2547_v31 = vpop.f32.mrb[83].mxu0 }
 0x18d   :  { %v873_v39 = vadd.f32 %v872_v53, %v2990_v52 }
 0x18f   :  { %v874_v5 = vadd.f32 %v873_v39, %v2994_v56 }
 0x191   :  { %v875_v35 = vadd.f32 %v874_v5, %v3000_v61 }
 0x193   :  { %v876_v30 = vadd.f32 %v875_v35, %v3005_v2 }
 0x195   :  { %v877_v62 = vadd.f32 %v876_v30, %v3010_v7 }
 0x197   :  { %v878_v59 = vadd.f32 %v877_v62, %v3015_v12 }
 0x199   :  { %v879_v23 = vadd.f32 %v878_v59, %v3020_v17 }
 0x19b   :  { %v880_v50 = vadd.f32 %v879_v23, %v3025_v22 }
 0x19d   :  { %v881_v14 = vadd.f32 %v880_v50, %v3030_v27 }
 0x19f   :  { %v882_v31 = vadd.f32 %v881_v14, %v3035_v32 }
 0x1a1   :  { %v883_v53 = vadd.f32 %v882_v31, %v3040_v37 }
 0x1a3   :  { %v884_v48 = vadd.f32 %v883_v53, %v3045_v42 }
 0x1a5   :  { %v885_v39 = vadd.f32 %v884_v48, %v3050_v47 }
 0x1a7   :  { %v886_v5 = vadd.f32 %v885_v39, %v3055_v54 }
 0x1a9   :  { %v887_v35 = vadd.f32 %v886_v5, %v3060_v63 }
 0x1ab   :  { %v888_v30 = vadd.f32 %v887_v35, %v3065_v8 }
 0x1ad   :  { %v889_v62 = vadd.f32 %v888_v30, %v3070_v15 }
 0x1af   :  { %v890_v59 = vadd.f32 %v889_v62, %v3075_v24 }
 0x1b1   :  { %v891_v23 = vadd.f32 %v890_v59, %v3080_v33 }
 0x1b3   :  { %v892_v50 = vadd.f32 %v891_v23, %v3085_v40 }
 0x1b5   :  { %v893_v14 = vadd.f32 %v892_v50, %v3090_v49 }
 0x1b7   :  { %v894_v31 = vadd.f32 %v893_v14, %v3095_v0 }
 0x1b9   :  { %v895_v53 = vadd.f32 %v894_v31, %v3100_v13 }
 0x1bb   :  { %v896_v48 = vadd.f32 %v895_v53, %v3105_v28 }
 0x1bd   :  { %v897_v39 = vadd.f32 %v896_v48, %v3110_v43 }
 0x1bf   :  { %v898_v5 = vadd.f32 %v897_v39, %v3115_v58 }
 0x1c1   :  { %v899_v35 = vadd.f32 %v898_v5, %v3120_v18 }
 0x1c3   :  { %v900_v30 = vadd.f32 %v899_v35, %v3125_v29 }
 0x1c5   :  { %v901_v62 = vadd.f32 %v900_v30, %v3130_v44 }
 0x1c7   :  { %v902_v59 = vadd.f32 %v901_v62, %v3135_v3 }
 0x1c9   :  { %v903_v23 = vadd.f32 %v902_v59, %v3140_v20 }
 0x1cb   :  { %v904_v50 = vadd.f32 %v903_v23, %v3145_v45 }
 0x1cd   :  { %v905_v14 = vadd.f32 %v904_v50, %v3150_v4 }
 0x1cf   :  { %v906_v31 = vadd.f32 %v905_v14, %v3155_v34 }
 0x1d1   :  { %v907_v53 = vadd.f32 %v906_v31, %v3160_v38 }
 0x1d3   :  { %v908_v48 = vadd.f32 %v907_v53, %v3165_v57 }
 0x1d5   :  { %v909_v39 = vadd.f32 %v908_v48, %v3170_v19  ;;  %v5237_v48 = vld [vmem:[#allocation3_spill] sm:$0xff] }
 0x1d7   :  { %v910_v5 = vadd.f32 %v909_v39, %v3175_v25  ;;  %v5239_v39 = vld [vmem:[#allocation4_spill] sm:$0xff] }
 0x1d9   :  { %v911_v35 = vadd.f32 %v910_v5, %v3180_v10  ;;  %v5241_v5 = vld [vmem:[#allocation5_spill] sm:$0xff] }
 0x1db   :  { %v912_v30 = vrot.slane %v911_v35, 4 }
 0x1dd   :  { %v913_v62 = vadd.f32 %v912_v30, %v911_v35  ;;  %v5243_v35 = vld [vmem:[#allocation6_spill] sm:$0xff]  ;;  %v5245_v30 = vld [vmem:[#allocation7_spill] sm:$0xff] }
 0x1df   :  { %v914_v3 = vrot.slane %v913_v62, 2 }
 0x1e1   :  { %v915_v59 = vadd.f32 %v914_v3, %v913_v62 }
 0x1e3   :  { %v916_v20 = vrot.slane %v915_v59, 1 }
 0x1e5   :  { %v917_v23 = vadd.f32 %v916_v20, %v915_v59  ;;  %v5235_v20 = vld [vmem:[#allocation2_spill] sm:$0xff]  ;;  %v5247_v59 = vld [vmem:[#allocation8_spill] sm:$0xff] }
 0x1e7   :  { %v3231_v45 = vmul.f32 0.0015432099, %v917_v23 }
 0x1e9   :  { %v3235_v50 = vsub.f32 %v2988_v51, %v3231_v45  ;;  %v3239_v14 = vsub.f32 %v2992_v55, %v3231_v45  ;;  %v3243_v31 = vsub.f32 %v2998_v60, %v3231_v45  ;;  %v3247_v53 = vsub.f32 %v3003_v1, %v3231_v45 }
 0x1ea   :  { %v3251_v3 = vsub.f32 %v3008_v6, %v3231_v45  ;;  %v3255_v51 = vsub.f32 %v3013_v11, %v3231_v45  ;;  %v3259_v55 = vsub.f32 %v3018_v16, %v3231_v45  ;;  %v3263_v60 = vsub.f32 %v3023_v21, %v3231_v45 }
 0x1eb   :  { %5230 = vst [vmem:[#allocation34_spill] sm:$0xff] %v3235_v50  ;;  %5231 = vst [vmem:[#allocation35_spill] sm:$0xff] %v3239_v14  ;;  %v3267_v1 = vsub.f32 %v3028_v26, %v3231_v45  ;;  %v3271_v6 = vsub.f32 %v5235_v20, %v3231_v45  ;;  %v3275_v11 = vsub.f32 %v5237_v48, %v3231_v45  ;;  %v5249_v20 = vld [vmem:[#allocation9_spill] sm:$0xff] }
 0x1ec   :  { %5232 = vst [vmem:[#allocation36_spill] sm:$0xff] %v3243_v31  ;;  %5233 = vst [vmem:[#allocation37_spill] sm:$0xff] %v3263_v60  ;;  %v3279_v16 = vsub.f32 %v5239_v39, %v3231_v45  ;;  %v3283_v21 = vsub.f32 %v5241_v5, %v3231_v45  ;;  %v3287_v26 = vsub.f32 %v5243_v35, %v3231_v45  ;;  %v5251_v39 = vld [vmem:[#allocation10_spill] sm:$0xff] }
 0x1ed   :  { %5234 = vst [vmem:[#allocation38_spill] sm:$0xff] %v3267_v1  ;;  %5236 = vst [vmem:[#allocation2_spill] sm:$0xff] %v3271_v6  ;;  %v3291_v62 = vsub.f32 %v5245_v30, %v3231_v45  ;;  %v3295_v23 = vsub.f32 %v5247_v59, %v3231_v45  ;;  %v3299_v48 = vsub.f32 %v5249_v20, %v3231_v45 }
 0x1ee   :  { %5238 = vst [vmem:[#allocation3_spill] sm:$0xff] %v3275_v11  ;;  %5240 = vst [vmem:[#allocation4_spill] sm:$0xff] %v3279_v16  ;;  %v3303_v5 = vsub.f32 %v5251_v39, %v3231_v45 }
 0x1ef   :  { %5242 = vst [vmem:[#allocation5_spill] sm:$0xff] %v3283_v21  ;;  %5244 = vst [vmem:[#allocation6_spill] sm:$0xff] %v3287_v26  ;;  %v5253_v21 = vld [vmem:[#allocation11_spill] sm:$0xff]  ;;  %v5255_v26 = vld [vmem:[#allocation12_spill] sm:$0xff] }
 0x1f0   :  { %5246 = vst [vmem:[#allocation7_spill] sm:$0xff] %v3291_v62  ;;  %5248 = vst [vmem:[#allocation8_spill] sm:$0xff] %v3295_v23  ;;  %v3307_v35 = vsub.f32 %v5253_v21, %v3231_v45  ;;  %v3311_v30 = vsub.f32 %v5255_v26, %v3231_v45  ;;  %v5257_v62 = vld [vmem:[#allocation13_spill] sm:$0xff]  ;;  %v5259_v23 = vld [vmem:[#allocation14_spill] sm:$0xff] }
 0x1f1   :  { %5250 = vst [vmem:[#allocation9_spill] sm:$0xff] %v3299_v48  ;;  %5252 = vst [vmem:[#allocation10_spill] sm:$0xff] %v3303_v5  ;;  %v3315_v59 = vsub.f32 %v5257_v62, %v3231_v45  ;;  %v3319_v20 = vsub.f32 %v5259_v23, %v3231_v45  ;;  %v5261_v48 = vld [vmem:[#allocation15_spill] sm:$0xff]  ;;  %v5263_v5 = vld [vmem:[#allocation16_spill] sm:$0xff] }
 0x1f2   :  { %5254 = vst [vmem:[#allocation11_spill] sm:$0xff] %v3307_v35  ;;  %5256 = vst [vmem:[#allocation12_spill] sm:$0xff] %v3311_v30  ;;  %v3323_v39 = vsub.f32 %v5261_v48, %v3231_v45  ;;  %v3327_v21 = vsub.f32 %v5263_v5, %v3231_v45  ;;  %v5265_v35 = vld [vmem:[#allocation17_spill] sm:$0xff]  ;;  %v5267_v30 = vld [vmem:[#allocation18_spill] sm:$0xff] }
 0x1f3   :  { %5258 = vst [vmem:[#allocation13_spill] sm:$0xff] %v3315_v59  ;;  %5260 = vst [vmem:[#allocation14_spill] sm:$0xff] %v3319_v20  ;;  %v3331_v26 = vsub.f32 %v5265_v35, %v3231_v45  ;;  %v3335_v62 = vsub.f32 %v5267_v30, %v3231_v45  ;;  %v5269_v59 = vld [vmem:[#allocation19_spill] sm:$0xff]  ;;  %v5271_v20 = vld [vmem:[#allocation20_spill] sm:$0xff] }
 0x1f4   :  { %5262 = vst [vmem:[#allocation15_spill] sm:$0xff] %v3323_v39  ;;  %5264 = vst [vmem:[#allocation16_spill] sm:$0xff] %v3327_v21  ;;  %v3339_v23 = vsub.f32 %v5269_v59, %v3231_v45  ;;  %v3343_v48 = vsub.f32 %v5271_v20, %v3231_v45  ;;  %v5273_v39 = vld [vmem:[#allocation21_spill] sm:$0xff]  ;;  %v5275_v21 = vld [vmem:[#allocation22_spill] sm:$0xff] }
 0x1f5   :  { %5266 = vst [vmem:[#allocation17_spill] sm:$0xff] %v3331_v26  ;;  %5268 = vst [vmem:[#allocation18_spill] sm:$0xff] %v3335_v62  ;;  %v3347_v5 = vsub.f32 %v5273_v39, %v3231_v45  ;;  %v3351_v35 = vsub.f32 %v5275_v21, %v3231_v45  ;;  %v5277_v26 = vld [vmem:[#allocation24_spill] sm:$0xff]  ;;  %v5279_v62 = vld [vmem:[#allocation26_spill] sm:$0xff] }
 0x1f6   :  { %5270 = vst [vmem:[#allocation19_spill] sm:$0xff] %v3339_v23  ;;  %5272 = vst [vmem:[#allocation20_spill] sm:$0xff] %v3343_v48  ;;  %v3355_v30 = vsub.f32 %v5277_v26, %v3231_v45  ;;  %v3359_v59 = vsub.f32 %v5279_v62, %v3231_v45  ;;  %v5281_v23 = vld [vmem:[#allocation28_spill] sm:$0xff]  ;;  %v5282_v48 = vld [vmem:[#allocation29_spill] sm:$0xff] }
 0x1f7   :  { %5274 = vst [vmem:[#allocation21_spill] sm:$0xff] %v3347_v5  ;;  %5276 = vst [vmem:[#allocation22_spill] sm:$0xff] %v3351_v35  ;;  %v3363_v20 = vsub.f32 %v5281_v23, %v3231_v45  ;;  %v3367_v39 = vsub.f32 %v5282_v48, %v3231_v45  ;;  %v5283_v5 = vld [vmem:[#allocation30_spill] sm:$0xff]  ;;  %v5284_v35 = vld [vmem:[#allocation31_spill] sm:$0xff]  ;;  %v3387_v48 = vsub.f32 %v3178_v46, %v3231_v45 }
 0x1f8   :  { %5278 = vst [vmem:[#allocation24_spill] sm:$0xff] %v3355_v30  ;;  %5280 = vst [vmem:[#allocation26_spill] sm:$0xff] %v3359_v59  ;;  %v3371_v21 = vsub.f32 %v5283_v5, %v3231_v45  ;;  %v3375_v26 = vsub.f32 %v5284_v35, %v3231_v45  ;;  %v5285_v30 = vld [vmem:[#allocation32_spill] sm:$0xff]  ;;  %v5286_v59 = vld [vmem:[#allocation33_spill] sm:$0xff]  ;;  %v3391_v5 = vsub.f32 %v3183_v41, %v3231_v45 }
 0x1f9   :  { %v3379_v62 = vsub.f32 %v5285_v30, %v3231_v45  ;;  %v3383_v23 = vsub.f32 %v5286_v59, %v3231_v45  ;;  %v3395_v35 = vsub.f32 %v3186_v36, %v3231_v45  ;;  %v3399_v30 = vsub.f32 %v3189_v9, %v3231_v45 }
 0x1fa   :  { %v3403_v59 = vsub.f32 %v2990_v52, %v3231_v45  ;;  %v3407_v46 = vsub.f32 %v2994_v56, %v3231_v45  ;;  %v3411_v41 = vsub.f32 %v3000_v61, %v3231_v45  ;;  %v3415_v36 = vsub.f32 %v3005_v2, %v3231_v45 }
 0x1fb   :  { %v3419_v9 = vsub.f32 %v3010_v7, %v3231_v45  ;;  %v3423_v52 = vsub.f32 %v3015_v12, %v3231_v45  ;;  %v3427_v56 = vsub.f32 %v3020_v17, %v3231_v45  ;;  %v3431_v61 = vsub.f32 %v3025_v22, %v3231_v45 }
 0x1fc   :  { %v3435_v2 = vsub.f32 %v3030_v27, %v3231_v45  ;;  %v3439_v7 = vsub.f32 %v3035_v32, %v3231_v45  ;;  %v3443_v12 = vsub.f32 %v3040_v37, %v3231_v45  ;;  %v3447_v17 = vsub.f32 %v3045_v42, %v3231_v45 }
 0x1fd   :  { %v3451_v22 = vsub.f32 %v3050_v47, %v3231_v45  ;;  %v3455_v27 = vsub.f32 %v3055_v54, %v3231_v45  ;;  %v3459_v32 = vsub.f32 %v3060_v63, %v3231_v45  ;;  %v3463_v37 = vsub.f32 %v3065_v8, %v3231_v45 }
 0x1fe   :  { %v3467_v42 = vsub.f32 %v3070_v15, %v3231_v45  ;;  %v3471_v47 = vsub.f32 %v3075_v24, %v3231_v45  ;;  %v3475_v54 = vsub.f32 %v3080_v33, %v3231_v45  ;;  %v3479_v63 = vsub.f32 %v3085_v40, %v3231_v45 }
 0x1ff   :  { %v3483_v8 = vsub.f32 %v3090_v49, %v3231_v45  ;;  %v3487_v15 = vsub.f32 %v3095_v0, %v3231_v45  ;;  %v3491_v24 = vsub.f32 %v3100_v13, %v3231_v45  ;;  %v3495_v33 = vsub.f32 %v3105_v28, %v3231_v45 }
 0x200   :  { %5287 = vst [vmem:[#allocation28_spill] sm:$0xff] %v3475_v54  ;;  %5288 = vst [vmem:[#allocation29_spill] sm:$0xff] %v3479_v63  ;;  %v3499_v40 = vsub.f32 %v3110_v43, %v3231_v45  ;;  %v3503_v49 = vsub.f32 %v3115_v58, %v3231_v45  ;;  %v3507_v0 = vsub.f32 %v3120_v18, %v3231_v45 }
 0x201   :  { %5289 = vst [vmem:[#allocation30_spill] sm:$0xff] %v3483_v8  ;;  %5290 = vst [vmem:[#allocation31_spill] sm:$0xff] %v3495_v33  ;;  %v3511_v13 = vsub.f32 %v3125_v29, %v3231_v45  ;;  %v3515_v28 = vsub.f32 %v3130_v44, %v3231_v45  ;;  %v5294_v33 = vld [vmem:[#allocation23_spill] sm:$0xff]  ;;  %v3531_v29 = vsub.f32 %v3150_v4, %v3231_v45 }
 0x202   :  { %5291 = vst [vmem:[#allocation32_spill] sm:$0xff] %v3499_v40  ;;  %5292 = vst [vmem:[#allocation33_spill] sm:$0xff] %v3503_v49  ;;  %v3519_v43 = vsub.f32 %v5294_v33, %v3231_v45  ;;  %v5296_v40 = vld [vmem:[#allocation25_spill] sm:$0xff]  ;;  %v5298_v49 = vld [vmem:[#allocation27_spill] sm:$0xff]  ;;  %v3535_v44 = vsub.f32 %v3155_v34, %v3231_v45  ;;  %v3539_v33 = vsub.f32 %v3160_v38, %v3231_v45 }
 0x203   :  { %5293 = vst [vmem:[#allocation39_spill] sm:$0xff] %v3515_v28  ;;  %v3523_v58 = vsub.f32 %v5296_v40, %v3231_v45  ;;  %v3527_v18 = vsub.f32 %v5298_v49, %v3231_v45  ;;  %5300 = vst [vmem:[#allocation40_spill] sm:$0xff] %v3531_v29  ;;  %v3543_v40 = vsub.f32 %v3165_v57, %v3231_v45 }
 0x204   :  { %5295 = vst [vmem:[#allocation23_spill] sm:$0xff] %v3519_v43  ;;  %5301 = vst [vmem:[#allocation41_spill] sm:$0xff] %v3535_v44  ;;  %v3547_v49 = vsub.f32 %v3170_v19, %v3231_v45  ;;  %v3551_v4 = vsub.f32 %v3175_v25, %v3231_v45  ;;  %v3555_v34 = vsub.f32 %v3180_v10, %v3231_v45 }
 0x205   :  { %5297 = vst [vmem:[#allocation25_spill] sm:$0xff] %v3523_v58  ;;  %5299 = vst [vmem:[#allocation27_spill] sm:$0xff] %v3527_v18  ;;  %v1000_v38 = vmul.f32 %v3235_v50, %v3235_v50  ;;  %v1002_v57 = vmul.f32 %v3243_v31, %v3243_v31  ;;  %v1003_v19 = vmul.f32 %v3247_v53, %v3247_v53 }
 0x206   :  { %5302 = vst [vmem:[#allocation42_spill] sm:$0xff] %v3539_v33  ;;  %5303 = vst [vmem:[#allocation43_spill] sm:$0xff] %v3543_v40  ;;  %v1001_v33 = vmul.f32 %v3239_v14, %v3239_v14  ;;  %v1004_v25 = vmul.f32 %v3251_v3, %v3251_v3  ;;  %v1005_v45 = vmul.f32 %v3255_v51, %v3255_v51 }
 0x207   :  { %5304 = vst [vmem:[#allocation44_spill] sm:$0xff] %v3547_v49  ;;  %5305 = vst [vmem:[#allocation45_spill] sm:$0xff] %v3551_v4  ;;  %v1006_v50 = vmul.f32 %v3259_v55, %v3259_v55  ;;  %v1007_v31 = vmul.f32 %v3263_v60, %v3263_v60 }
 0x208   :  { %v1081_v40 = vadd.f32 %v1001_v33, %v1000_v38  ;;  %v1008_v38 = vmul.f32 %v3267_v1, %v3267_v1 }
 0x20a   :  { %v1082_v49 = vadd.f32 %v1081_v40, %v1002_v57  ;;  %v1009_v57 = vmul.f32 %v3271_v6, %v3271_v6 }
 0x20c   :  { %v1083_v4 = vadd.f32 %v1082_v49, %v1003_v19  ;;  %v1010_v19 = vmul.f32 %v3275_v11, %v3275_v11 }
 0x20e   :  { %v1084_v10 = vadd.f32 %v1083_v4, %v1004_v25  ;;  %v1011_v25 = vmul.f32 %v3279_v16, %v3279_v16 }
 0x210   :  { %v1085_v14 = vadd.f32 %v1084_v10, %v1005_v45  ;;  %v5306_v10 = vld [vmem:[#allocation5_spill] sm:$0xff] }
 0x211   :  { %v1012_v60 = vmul.f32 %v5306_v10, %v5306_v10 }
 0x212   :  { %v1086_v33 = vadd.f32 %v1085_v14, %v1006_v50  ;;  %v5307_v14 = vld [vmem:[#allocation6_spill] sm:$0xff] }
 0x213   :  { %v1013_v1 = vmul.f32 %v5307_v14, %v5307_v14 }
 0x214   :  { %v1087_v40 = vadd.f32 %v1086_v33, %v1007_v31  ;;  %v5308_v33 = vld [vmem:[#allocation7_spill] sm:$0xff] }
 0x215   :  { %v1014_v6 = vmul.f32 %v5308_v33, %v5308_v33 }
 0x216   :  { %v1088_v49 = vadd.f32 %v1087_v40, %v1008_v38  ;;  %v5309_v40 = vld [vmem:[#allocation8_spill] sm:$0xff] }
 0x217   :  { %v1015_v11 = vmul.f32 %v5309_v40, %v5309_v40 }
 0x218   :  { %v1089_v4 = vadd.f32 %v1088_v49, %v1009_v57  ;;  %v5310_v49 = vld [vmem:[#allocation9_spill] sm:$0xff] }
 0x219   :  { %v1016_v16 = vmul.f32 %v5310_v49, %v5310_v49 }
 0x21a   :  { %v1090_v45 = vadd.f32 %v1089_v4, %v1010_v19  ;;  %v5311_v4 = vld [vmem:[#allocation10_spill] sm:$0xff] }
 0x21b   :  { %v1017_v10 = vmul.f32 %v5311_v4, %v5311_v4 }
 0x21c   :  { %v1091_v50 = vadd.f32 %v1090_v45, %v1011_v25  ;;  %v5312_v45 = vld [vmem:[#allocation11_spill] sm:$0xff] }
 0x21d   :  { %v1018_v14 = vmul.f32 %v5312_v45, %v5312_v45 }
 0x21e   :  { %v1092_v31 = vadd.f32 %v1091_v50, %v1012_v60  ;;  %v5313_v50 = vld [vmem:[#allocation12_spill] sm:$0xff] }
 0x21f   :  { %v1019_v33 = vmul.f32 %v5313_v50, %v5313_v50 }
 0x220   :  { %v1093_v38 = vadd.f32 %v1092_v31, %v1013_v1  ;;  %v5314_v31 = vld [vmem:[#allocation13_spill] sm:$0xff] }
 0x221   :  { %v1020_v40 = vmul.f32 %v5314_v31, %v5314_v31 }
 0x222   :  { %v1094_v57 = vadd.f32 %v1093_v38, %v1014_v6  ;;  %v5315_v38 = vld [vmem:[#allocation14_spill] sm:$0xff] }
 0x223   :  { %v1021_v49 = vmul.f32 %v5315_v38, %v5315_v38 }
 0x224   :  { %v1095_v19 = vadd.f32 %v1094_v57, %v1015_v11  ;;  %v5316_v57 = vld [vmem:[#allocation15_spill] sm:$0xff] }
 0x225   :  { %v1022_v4 = vmul.f32 %v5316_v57, %v5316_v57 }
 0x226   :  { %v1096_v25 = vadd.f32 %v1095_v19, %v1016_v16  ;;  %v5317_v19 = vld [vmem:[#allocation16_spill] sm:$0xff] }
 0x227   :  { %v1023_v45 = vmul.f32 %v5317_v19, %v5317_v19 }
 0x228   :  { %v1097_v60 = vadd.f32 %v1096_v25, %v1017_v10  ;;  %v5318_v25 = vld [vmem:[#allocation17_spill] sm:$0xff] }
 0x229   :  { %v1024_v50 = vmul.f32 %v5318_v25, %v5318_v25 }
 0x22a   :  { %v1098_v1 = vadd.f32 %v1097_v60, %v1018_v14  ;;  %v5319_v60 = vld [vmem:[#allocation18_spill] sm:$0xff] }
 0x22b   :  { %v1025_v31 = vmul.f32 %v5319_v60, %v5319_v60 }
 0x22c   :  { %v1099_v6 = vadd.f32 %v1098_v1, %v1019_v33  ;;  %v5320_v1 = vld [vmem:[#allocation19_spill] sm:$0xff] }
 0x22d   :  { %v1026_v38 = vmul.f32 %v5320_v1, %v5320_v1 }
 0x22e   :  { %v1100_v11 = vadd.f32 %v1099_v6, %v1020_v40  ;;  %v5321_v6 = vld [vmem:[#allocation20_spill] sm:$0xff] }
 0x22f   :  { %v1027_v57 = vmul.f32 %v5321_v6, %v5321_v6 }
 0x230   :  { %v1101_v16 = vadd.f32 %v1100_v11, %v1021_v49  ;;  %v5322_v11 = vld [vmem:[#allocation21_spill] sm:$0xff] }
 0x231   :  { %v1028_v19 = vmul.f32 %v5322_v11, %v5322_v11 }
 0x232   :  { %v1102_v10 = vadd.f32 %v1101_v16, %v1022_v4  ;;  %v5323_v16 = vld [vmem:[#allocation22_spill] sm:$0xff] }
 0x233   :  { %v1029_v25 = vmul.f32 %v5323_v16, %v5323_v16 }
 0x234   :  { %v1103_v14 = vadd.f32 %v1102_v10, %v1023_v45  ;;  %v5324_v10 = vld [vmem:[#allocation24_spill] sm:$0xff] }
 0x235   :  { %v1030_v60 = vmul.f32 %v5324_v10, %v5324_v10 }
 0x236   :  { %v1104_v33 = vadd.f32 %v1103_v14, %v1024_v50  ;;  %v5325_v14 = vld [vmem:[#allocation26_spill] sm:$0xff] }
 0x237   :  { %v1031_v1 = vmul.f32 %v5325_v14, %v5325_v14 }
 0x238   :  { %v1105_v40 = vadd.f32 %v1104_v33, %v1025_v31  ;;  %v1032_v33 = vmul.f32 %v3363_v20, %v3363_v20 }
 0x23a   :  { %v1106_v49 = vadd.f32 %v1105_v40, %v1026_v38  ;;  %v1033_v40 = vmul.f32 %v3367_v39, %v3367_v39 }
 0x23c   :  { %v1107_v4 = vadd.f32 %v1106_v49, %v1027_v57  ;;  %v1034_v49 = vmul.f32 %v3371_v21, %v3371_v21 }
 0x23e   :  { %v1108_v45 = vadd.f32 %v1107_v4, %v1028_v19  ;;  %v1035_v4 = vmul.f32 %v3375_v26, %v3375_v26 }
 0x240   :  { %v1109_v50 = vadd.f32 %v1108_v45, %v1029_v25  ;;  %v1036_v45 = vmul.f32 %v3379_v62, %v3379_v62 }
 0x242   :  { %v1110_v31 = vadd.f32 %v1109_v50, %v1030_v60  ;;  %v1037_v50 = vmul.f32 %v3383_v23, %v3383_v23 }
 0x244   :  { %v1111_v38 = vadd.f32 %v1110_v31, %v1031_v1  ;;  %v1038_v31 = vmul.f32 %v3387_v48, %v3387_v48 }
 0x246   :  { %v1112_v57 = vadd.f32 %v1111_v38, %v1032_v33  ;;  %v1039_v38 = vmul.f32 %v3391_v5, %v3391_v5 }
 0x248   :  { %v1113_v19 = vadd.f32 %v1112_v57, %v1033_v40  ;;  %v1040_v57 = vmul.f32 %v3395_v35, %v3395_v35 }
 0x24a   :  { %v1114_v25 = vadd.f32 %v1113_v19, %v1034_v49  ;;  %v1041_v19 = vmul.f32 %v3399_v30, %v3399_v30 }
 0x24c   :  { %v1115_v60 = vadd.f32 %v1114_v25, %v1035_v4  ;;  %v1042_v25 = vmul.f32 %v3403_v59, %v3403_v59 }
 0x24e   :  { %v1116_v1 = vadd.f32 %v1115_v60, %v1036_v45  ;;  %v1043_v60 = vmul.f32 %v3407_v46, %v3407_v46 }
 0x250   :  { %v1117_v33 = vadd.f32 %v1116_v1, %v1037_v50  ;;  %v1044_v1 = vmul.f32 %v3411_v41, %v3411_v41 }
 0x252   :  { %v1118_v40 = vadd.f32 %v1117_v33, %v1038_v31  ;;  %v1045_v33 = vmul.f32 %v3415_v36, %v3415_v36 }
 0x254   :  { %v1119_v49 = vadd.f32 %v1118_v40, %v1039_v38  ;;  %v1046_v40 = vmul.f32 %v3419_v9, %v3419_v9 }
 0x256   :  { %v1120_v4 = vadd.f32 %v1119_v49, %v1040_v57  ;;  %v1047_v49 = vmul.f32 %v3423_v52, %v3423_v52 }
 0x258   :  { %v1121_v45 = vadd.f32 %v1120_v4, %v1041_v19  ;;  %v1048_v4 = vmul.f32 %v3427_v56, %v3427_v56 }
 0x25a   :  { %v1122_v50 = vadd.f32 %v1121_v45, %v1042_v25  ;;  %v1049_v45 = vmul.f32 %v3431_v61, %v3431_v61 }
 0x25c   :  { %v1123_v31 = vadd.f32 %v1122_v50, %v1043_v60  ;;  %v1050_v50 = vmul.f32 %v3435_v2, %v3435_v2 }
 0x25e   :  { %v1124_v38 = vadd.f32 %v1123_v31, %v1044_v1  ;;  %v1051_v31 = vmul.f32 %v3439_v7, %v3439_v7 }
 0x260   :  { %v1125_v57 = vadd.f32 %v1124_v38, %v1045_v33  ;;  %v1052_v38 = vmul.f32 %v3443_v12, %v3443_v12 }
 0x262   :  { %v1126_v19 = vadd.f32 %v1125_v57, %v1046_v40  ;;  %v1053_v57 = vmul.f32 %v3447_v17, %v3447_v17 }
 0x264   :  { %v1127_v25 = vadd.f32 %v1126_v19, %v1047_v49  ;;  %v1054_v19 = vmul.f32 %v3451_v22, %v3451_v22 }
 0x266   :  { %v1128_v60 = vadd.f32 %v1127_v25, %v1048_v4  ;;  %v1055_v25 = vmul.f32 %v3455_v27, %v3455_v27 }
 0x268   :  { %v1129_v1 = vadd.f32 %v1128_v60, %v1049_v45  ;;  %v1056_v60 = vmul.f32 %v3459_v32, %v3459_v32 }
 0x26a   :  { %v1130_v33 = vadd.f32 %v1129_v1, %v1050_v50  ;;  %v1057_v1 = vmul.f32 %v3463_v37, %v3463_v37 }
 0x26c   :  { %v1131_v40 = vadd.f32 %v1130_v33, %v1051_v31  ;;  %v1058_v33 = vmul.f32 %v3467_v42, %v3467_v42 }
 0x26e   :  { %v1132_v49 = vadd.f32 %v1131_v40, %v1052_v38  ;;  %v1059_v40 = vmul.f32 %v3471_v47, %v3471_v47 }
 0x270   :  { %v1133_v4 = vadd.f32 %v1132_v49, %v1053_v57  ;;  %v1060_v49 = vmul.f32 %v3475_v54, %v3475_v54 }
 0x272   :  { %v1134_v45 = vadd.f32 %v1133_v4, %v1054_v19  ;;  %v1061_v4 = vmul.f32 %v3479_v63, %v3479_v63 }
 0x274   :  { %v1135_v50 = vadd.f32 %v1134_v45, %v1055_v25  ;;  %v1062_v45 = vmul.f32 %v3483_v8, %v3483_v8 }
 0x276   :  { %v1136_v31 = vadd.f32 %v1135_v50, %v1056_v60  ;;  %v1063_v50 = vmul.f32 %v3487_v15, %v3487_v15 }
 0x278   :  { %v1137_v38 = vadd.f32 %v1136_v31, %v1057_v1  ;;  %v1064_v31 = vmul.f32 %v3491_v24, %v3491_v24 }
 0x27a   :  { %v1138_v57 = vadd.f32 %v1137_v38, %v1058_v33  ;;  %v5326_v38 = vld [vmem:[#allocation31_spill] sm:$0xff] }
 0x27b   :  { %v1065_v54 = vmul.f32 %v5326_v38, %v5326_v38 }
 0x27c   :  { %v1139_v19 = vadd.f32 %v1138_v57, %v1059_v40  ;;  %v5327_v57 = vld [vmem:[#allocation32_spill] sm:$0xff] }
 0x27d   :  { %v1066_v63 = vmul.f32 %v5327_v57, %v5327_v57 }
 0x27e   :  { %v1140_v25 = vadd.f32 %v1139_v19, %v1060_v49  ;;  %v5328_v19 = vld [vmem:[#allocation33_spill] sm:$0xff] }
 0x27f   :  { %v1067_v8 = vmul.f32 %v5328_v19, %v5328_v19 }
 0x280   :  { %v1141_v60 = vadd.f32 %v1140_v25, %v1061_v4  ;;  %v1068_v25 = vmul.f32 %v3507_v0, %v3507_v0 }
 0x282   :  { %v1142_v1 = vadd.f32 %v1141_v60, %v1062_v45  ;;  %v1069_v60 = vmul.f32 %v3511_v13, %v3511_v13 }
 0x284   :  { %v1143_v33 = vadd.f32 %v1142_v1, %v1063_v50  ;;  %v1070_v1 = vmul.f32 %v3515_v28, %v3515_v28 }
 0x286   :  { %v1144_v40 = vadd.f32 %v1143_v33, %v1064_v31  ;;  %v1071_v33 = vmul.f32 %v3519_v43, %v3519_v43 }
 0x288   :  { %v1145_v49 = vadd.f32 %v1144_v40, %v1065_v54  ;;  %v1072_v40 = vmul.f32 %v3523_v58, %v3523_v58 }
 0x28a   :  { %v1146_v4 = vadd.f32 %v1145_v49, %v1066_v63  ;;  %v1073_v49 = vmul.f32 %v3527_v18, %v3527_v18 }
 0x28c   :  { %v1147_v45 = vadd.f32 %v1146_v4, %v1067_v8  ;;  %v1074_v4 = vmul.f32 %v3531_v29, %v3531_v29 }
 0x28e   :  { %v1148_v50 = vadd.f32 %v1147_v45, %v1068_v25  ;;  %v1075_v45 = vmul.f32 %v3535_v44, %v3535_v44 }
 0x290   :  { %v1149_v31 = vadd.f32 %v1148_v50, %v1069_v60  ;;  %v5329_v50 = vld [vmem:[#allocation42_spill] sm:$0xff] }
 0x291   :  { %v1076_v43 = vmul.f32 %v5329_v50, %v5329_v50 }
 0x292   :  { %v1150_v54 = vadd.f32 %v1149_v31, %v1070_v1  ;;  %v5330_v31 = vld [vmem:[#allocation43_spill] sm:$0xff] }
 0x293   :  { %v1077_v58 = vmul.f32 %v5330_v31, %v5330_v31 }
 0x294   :  { %v1151_v63 = vadd.f32 %v1150_v54, %v1071_v33  ;;  %v5331_v54 = vld [vmem:[#allocation44_spill] sm:$0xff] }
 0x295   :  { %v1078_v18 = vmul.f32 %v5331_v54, %v5331_v54 }
 0x296   :  { %v1152_v8 = vadd.f32 %v1151_v63, %v1072_v40  ;;  %v5332_v63 = vld [vmem:[#allocation45_spill] sm:$0xff] }
 0x297   :  { %v1079_v29 = vmul.f32 %v5332_v63, %v5332_v63 }
 0x298   :  { %v1153_v25 = vadd.f32 %v1152_v8, %v1073_v49  ;;  %v1080_v8 = vmul.f32 %v3555_v34, %v3555_v34 }
 0x29a   :  { %v1154_v60 = vadd.f32 %v1153_v25, %v1074_v4 }
 0x29c   :  { %v1155_v1 = vadd.f32 %v1154_v60, %v1075_v45 }
 0x29e   :  { %v1156_v33 = vadd.f32 %v1155_v1, %v1076_v43 }
 0x2a0   :  { %v1157_v40 = vadd.f32 %v1156_v33, %v1077_v58  ;;  %v5333_v58 = vld [vmem:[#allocation34_spill] sm:$0xff] }
 0x2a2   :  { %v1158_v49 = vadd.f32 %v1157_v40, %v1078_v18  ;;  %v5334_v18 = vld [vmem:[#allocation35_spill] sm:$0xff] }
 0x2a4   :  { %v1159_v4 = vadd.f32 %v1158_v49, %v1079_v29  ;;  %v5335_v29 = vld [vmem:[#allocation36_spill] sm:$0xff] }
 0x2a6   :  { %v1160_v25 = vadd.f32 %v1159_v4, %v1080_v8  ;;  %v5336_v8 = vld [vmem:[#allocation37_spill] sm:$0xff] }
 0x2a8   :  { %v1161_v44 = vrot.slane %v1160_v25, 4 }
 0x2aa   :  { %v1162_v50 = vadd.f32 %v1161_v44, %v1160_v25  ;;  %v5337_v25 = vld [vmem:[#allocation38_spill] sm:$0xff] }
 0x2ac   :  { %v1163_v45 = vrot.slane %v1162_v50, 2 }
 0x2ae   :  { %v1164_v60 = vadd.f32 %v1163_v45, %v1162_v50  ;;  %v5338_v45 = vld [vmem:[#allocation2_spill] sm:$0xff] }
 0x2b0   :  { %v1165_v28 = vrot.slane %v1164_v60, 1 }
 0x2b2   :  { %v1166_v31 = vadd.f32 %v1165_v28, %v1164_v60  ;;  %v5339_v60 = vld [vmem:[#allocation3_spill] sm:$0xff] }
 0x2b4   :  { %v1167_v43 = vmul.f32 0.0015432099, %v1166_v31 }
 0x2b6   :  { %v1168_v1 = vadd.f32 1e-05, %v1167_v43  ;;  %v5341_v43 = vld [vmem:[#allocation4_spill] sm:$0xff] }
 0x2b8   :  { %2687 = vrsqrt.f32 %v1168_v1  ;;  %v5343_v1 = vld [vmem:[#allocation5_spill] sm:$0xff] }
 0x2c2   :  { %v3719_v54 = vpop.eup %2687 }
 0x2c3   :  { %v3723_v33 = vmul.f32 %v3719_v54, %v5333_v58  ;;  %v3727_v40 = vmul.f32 %v3719_v54, %v5334_v18  ;;  %v3731_v44 = vmul.f32 %v3719_v54, %v5335_v29  ;;  %v3735_v28 = vmul.f32 %v3719_v54, %v3247_v53  ;;  %v5345_v18 = vld [vmem:[#allocation6_spill] sm:$0xff] }
 0x2c4   :  { %v3739_v50 = vmul.f32 %v3719_v54, %v3251_v3  ;;  %v3743_v31 = vmul.f32 %v3719_v54, %v3255_v51  ;;  %v3747_v49 = vmul.f32 %v3719_v54, %v3259_v55  ;;  %v3751_v4 = vmul.f32 %v3719_v54, %v5336_v8  ;;  %v5347_v8 = vld [vmem:[#allocation7_spill] sm:$0xff] }
 0x2c5   :  { %v3755_v53 = vmul.f32 %v3719_v54, %v5337_v25  ;;  %v3759_v3 = vmul.f32 %v3719_v54, %v5338_v45  ;;  %v3763_v51 = vmul.f32 %v3719_v54, %v5339_v60  ;;  %v3767_v55 = vmul.f32 %v3719_v54, %v5341_v43  ;;  %v5349_v45 = vld [vmem:[#allocation8_spill] sm:$0xff] }
 0x2c6   :  { %v3771_v58 = vmul.f32 %v3719_v54, %v5343_v1  ;;  %v3775_v29 = vmul.f32 %v3719_v54, %v5345_v18  ;;  %v3779_v25 = vmul.f32 %v3719_v54, %v5347_v8  ;;  %v3783_v60 = vmul.f32 %v3719_v54, %v5349_v45 }
 0x2c7   :  { %5340 = vst [vmem:[#allocation20_spill] sm:$0xff] %v3763_v51  ;;  %5342 = vst [vmem:[#allocation21_spill] sm:$0xff] %v3767_v55  ;;  %v5351_v51 = vld [vmem:[#allocation9_spill] sm:$0xff]  ;;  %v5353_v55 = vld [vmem:[#allocation10_spill] sm:$0xff] }
 0x2c8   :  { %5344 = vst [vmem:[#allocation22_spill] sm:$0xff] %v3771_v58  ;;  %5346 = vst [vmem:[#allocation24_spill] sm:$0xff] %v3775_v29  ;;  %v3787_v43 = vmul.f32 %v3719_v54, %v5351_v51  ;;  %v3791_v1 = vmul.f32 %v3719_v54, %v5353_v55  ;;  %v5355_v58 = vld [vmem:[#allocation11_spill] sm:$0xff]  ;;  %v5357_v29 = vld [vmem:[#allocation12_spill] sm:$0xff] }
 0x2c9   :  { %5348 = vst [vmem:[#allocation26_spill] sm:$0xff] %v3779_v25  ;;  %5350 = vst [vmem:[#allocation31_spill] sm:$0xff] %v3783_v60  ;;  %v3795_v18 = vmul.f32 %v3719_v54, %v5355_v58  ;;  %v3799_v8 = vmul.f32 %v3719_v54, %v5357_v29  ;;  %v5359_v25 = vld [vmem:[#allocation13_spill] sm:$0xff]  ;;  %v5361_v60 = vld [vmem:[#allocation14_spill] sm:$0xff] }
 0x2ca   :  { %5352 = vst [vmem:[#allocation32_spill] sm:$0xff] %v3787_v43  ;;  %5354 = vst [vmem:[#allocation33_spill] sm:$0xff] %v3791_v1  ;;  %v3803_v45 = vmul.f32 %v3719_v54, %v5359_v25  ;;  %v3807_v51 = vmul.f32 %v3719_v54, %v5361_v60  ;;  %v5362_v43 = vld [vmem:[#allocation15_spill] sm:$0xff]  ;;  %v5363_v1 = vld [vmem:[#allocation16_spill] sm:$0xff] }
 0x2cb   :  { %5356 = vst [vmem:[#allocation45_spill] sm:$0xff] %v3795_v18  ;;  %5358 = vst [vmem:[#allocation34_spill] sm:$0xff] %v3799_v8  ;;  %v3811_v55 = vmul.f32 %v3719_v54, %v5362_v43  ;;  %v3815_v58 = vmul.f32 %v3719_v54, %v5363_v1  ;;  %v5364_v18 = vld [vmem:[#allocation17_spill] sm:$0xff]  ;;  %v5365_v8 = vld [vmem:[#allocation18_spill] sm:$0xff]  ;;  %v3831_v43 = vmul.f32 %v3719_v54, %v5321_v6 }
 0x2cc   :  { %5360 = vst [vmem:[#allocation35_spill] sm:$0xff] %v3803_v45  ;;  %v3819_v29 = vmul.f32 %v3719_v54, %v5364_v18  ;;  %v3823_v25 = vmul.f32 %v3719_v54, %v5365_v8  ;;  %v5366_v45 = vld [vmem:[#allocation19_spill] sm:$0xff]  ;;  %v3835_v1 = vmul.f32 %v3719_v54, %v5322_v11  ;;  %v3839_v18 = vmul.f32 %v3719_v54, %v5323_v16 }
 0x2cd   :  { %v3827_v60 = vmul.f32 %v3719_v54, %v5366_v45  ;;  %v3843_v8 = vmul.f32 %v3719_v54, %v5324_v10  ;;  %v3847_v45 = vmul.f32 %v3719_v54, %v5325_v14  ;;  %v3851_v6 = vmul.f32 %v3719_v54, %v3363_v20 }
 0x2ce   :  { %v3855_v11 = vmul.f32 %v3719_v54, %v3367_v39  ;;  %v3859_v16 = vmul.f32 %v3719_v54, %v3371_v21  ;;  %v3863_v10 = vmul.f32 %v3719_v54, %v3375_v26  ;;  %v3867_v14 = vmul.f32 %v3719_v54, %v3379_v62 }
 0x2cf   :  { %v3871_v20 = vmul.f32 %v3719_v54, %v3383_v23  ;;  %v3875_v39 = vmul.f32 %v3719_v54, %v3387_v48  ;;  %v3879_v21 = vmul.f32 %v3719_v54, %v3391_v5  ;;  %v3883_v26 = vmul.f32 %v3719_v54, %v3395_v35 }
 0x2d0   :  { %v3887_v62 = vmul.f32 %v3719_v54, %v3399_v30  ;;  %v3891_v23 = vmul.f32 %v3719_v54, %v3403_v59  ;;  %v3895_v48 = vmul.f32 %v3719_v54, %v3407_v46  ;;  %v3899_v5 = vmul.f32 %v3719_v54, %v3411_v41 }
 0x2d1   :  { %v3903_v35 = vmul.f32 %v3719_v54, %v3415_v36  ;;  %v3907_v30 = vmul.f32 %v3719_v54, %v3419_v9  ;;  %v3911_v59 = vmul.f32 %v3719_v54, %v3423_v52  ;;  %v3915_v46 = vmul.f32 %v3719_v54, %v3427_v56 }
 0x2d2   :  { %v3919_v41 = vmul.f32 %v3719_v54, %v3431_v61  ;;  %v3923_v36 = vmul.f32 %v3719_v54, %v3435_v2  ;;  %v3927_v9 = vmul.f32 %v3719_v54, %v3439_v7  ;;  %v3931_v52 = vmul.f32 %v3719_v54, %v3443_v12 }
 0x2d3   :  { %v3935_v56 = vmul.f32 %v3719_v54, %v3447_v17  ;;  %v3939_v61 = vmul.f32 %v3719_v54, %v3451_v22  ;;  %v3943_v2 = vmul.f32 %v3719_v54, %v3455_v27  ;;  %v3947_v7 = vmul.f32 %v3719_v54, %v3459_v32 }
 0x2d4   :  { %v3951_v12 = vmul.f32 %v3719_v54, %v3463_v37  ;;  %v3955_v17 = vmul.f32 %v3719_v54, %v3467_v42  ;;  %v3959_v22 = vmul.f32 %v3719_v54, %v3471_v47  ;;  %v3975_v42 = vmul.f32 %v3719_v54, %v3487_v15 }
 0x2d5   :  { %5367 = vst [vmem:[#allocation36_spill] sm:$0xff] %v3939_v61  ;;  %5368 = vst [vmem:[#allocation37_spill] sm:$0xff] %v3943_v2  ;;  %v5370_v61 = vld [vmem:[#allocation28_spill] sm:$0xff]  ;;  %v5371_v2 = vld [vmem:[#allocation29_spill] sm:$0xff]  ;;  %v3979_v47 = vmul.f32 %v3719_v54, %v3491_v24  ;;  %v3995_v15 = vmul.f32 %v3719_v54, %v3507_v0  ;;  %v3999_v24 = vmul.f32 %v3719_v54, %v3511_v13 }
 0x2d6   :  { %5369 = vst [vmem:[#allocation38_spill] sm:$0xff] %v3947_v7  ;;  %v3963_v27 = vmul.f32 %v3719_v54, %v5370_v61  ;;  %v3967_v32 = vmul.f32 %v3719_v54, %v5371_v2  ;;  %v5372_v7 = vld [vmem:[#allocation30_spill] sm:$0xff]  ;;  %5373 = vst [vmem:[#allocation2_spill] sm:$0xff] %v3975_v42  ;;  %v3983_v61 = vmul.f32 %v3719_v54, %v5326_v38  ;;  %v5390_v42 = vld [vmem:[#allocation43_spill] sm:$0xff] }
 0x2d7   :  { %v3971_v37 = vmul.f32 %v3719_v54, %v5372_v7  ;;  %5374 = vst [vmem:[#allocation3_spill] sm:$0xff] %v3979_v47  ;;  %v3987_v2 = vmul.f32 %v3719_v54, %v5327_v57  ;;  %v3991_v7 = vmul.f32 %v3719_v54, %v5328_v19  ;;  %5378 = vst [vmem:[#allocation7_spill] sm:$0xff] %v3995_v15  ;;  %v5380_v47 = vld [vmem:[#allocation39_spill] sm:$0xff]  ;;  %v4012_v19 = vld [vmem:[%s5069_s2] ss:$0 sm:$0xff] }
 0x2d8   :  { %5375 = vst [vmem:[#allocation4_spill] sm:$0xff] %v3983_v61  ;;  %5379 = vst [vmem:[#allocation8_spill] sm:$0xff] %v3999_v24  ;;  %v4003_v38 = vmul.f32 %v3719_v54, %v5380_v47  ;;  %v5382_v61 = vld [vmem:[#allocation23_spill] sm:$0xff]  ;;  %v5387_v24 = vld [vmem:[#allocation40_spill] sm:$0xff] }
 0x2d9   :  { %5376 = vst [vmem:[#allocation5_spill] sm:$0xff] %v3987_v2  ;;  %5377 = vst [vmem:[#allocation6_spill] sm:$0xff] %v3991_v7  ;;  %v4007_v57 = vmul.f32 %v3719_v54, %v5382_v61  ;;  %v5384_v7 = vld [vmem:[#allocation25_spill] sm:$0xff]  ;;  %v5386_v15 = vld [vmem:[#allocation27_spill] sm:$0xff]  ;;  %v4024_v47 = vmul.f32 %v3719_v54, %v5387_v24  ;;  %v4044_v24 = vmul.f32 %v3719_v54, %v5332_v63 }
 0x2da   :  { %5381 = vst [vmem:[#allocation9_spill] sm:$0xff] %v4003_v38  ;;  %v4016_v0 = vmul.f32 %v3719_v54, %v5384_v7  ;;  %v4020_v13 = vmul.f32 %v3719_v54, %v5386_v15  ;;  %v5388_v38 = vld [vmem:[#allocation41_spill] sm:$0xff]  ;;  %v4036_v7 = vmul.f32 %v3719_v54, %v5390_v42  ;;  %v4056_v42 = vmul.f32 %v4012_v19, %v3727_v40 }
 0x2db   :  { %5383 = vst [vmem:[#allocation10_spill] sm:$0xff] %v4007_v57  ;;  %v4028_v61 = vmul.f32 %v3719_v54, %v5388_v38  ;;  %v5389_v57 = vld [vmem:[#allocation42_spill] sm:$0xff]  ;;  %v4048_v38 = vmul.f32 %v3719_v54, %v3555_v34  ;;  %v4064_v63 = vmul.f32 %v4012_v19, %v3735_v28  ;;  %v4068_v34 = vmul.f32 %v4012_v19, %v3739_v50  ;;  %v5397_v50 = vld [vmem:[#allocation20_spill] sm:$0xff] }
 0x2dc   :  { %5385 = vst [vmem:[#allocation11_spill] sm:$0xff] %v4016_v0  ;;  %v4032_v2 = vmul.f32 %v3719_v54, %v5389_v57  ;;  %v5391_v0 = vld [vmem:[#allocation44_spill] sm:$0xff]  ;;  %v4052_v57 = vmul.f32 %v4012_v19, %v3723_v33  ;;  %v4076_v33 = vmul.f32 %v4012_v19, %v3747_v49  ;;  %v4080_v40 = vmul.f32 %v4012_v19, %v3751_v4 }
 0x2dd   :  { %v4040_v15 = vmul.f32 %v3719_v54, %v5391_v0  ;;  %v4060_v0 = vmul.f32 %v4012_v19, %v3731_v44  ;;  %v4072_v54 = vmul.f32 %v4012_v19, %v3743_v31  ;;  %v4084_v44 = vmul.f32 %v4012_v19, %v3755_v53 }
 0x2de   :  { %5393 = vst [vmem:[#allocation13_spill] sm:$0xff] %v4076_v33  ;;  %5394 = vst [vmem:[#allocation14_spill] sm:$0xff] %v4080_v40  ;;  %v4088_v28 = vmul.f32 %v4012_v19, %v3759_v3  ;;  %v4092_v31 = vmul.f32 %v4012_v19, %v5397_v50  ;;  %v5401_v33 = vld [vmem:[#allocation22_spill] sm:$0xff]  ;;  %v5403_v40 = vld [vmem:[#allocation24_spill] sm:$0xff] }
 0x2df   :  { %5392 = vst [vmem:[#allocation12_spill] sm:$0xff] %v4072_v54  ;;  %5395 = vst [vmem:[#allocation15_spill] sm:$0xff] %v4084_v44  ;;  %v5399_v54 = vld [vmem:[#allocation21_spill] sm:$0xff]  ;;  %v4100_v4 = vmul.f32 %v4012_v19, %v5401_v33  ;;  %v4104_v53 = vmul.f32 %v4012_v19, %v5403_v40  ;;  %v5405_v44 = vld [vmem:[#allocation26_spill] sm:$0xff] }
 0x2e0   :  { %5396 = vst [vmem:[#allocation16_spill] sm:$0xff] %v4088_v28  ;;  %5398 = vst [vmem:[#allocation17_spill] sm:$0xff] %v4092_v31  ;;  %v4096_v49 = vmul.f32 %v4012_v19, %v5399_v54  ;;  %v4108_v3 = vmul.f32 %v4012_v19, %v5405_v44  ;;  %v5407_v28 = vld [vmem:[#allocation31_spill] sm:$0xff]  ;;  %v5408_v31 = vld [vmem:[#allocation32_spill] sm:$0xff] }
 0x2e1   :  { %5402 = vst [vmem:[#allocation19_spill] sm:$0xff] %v4100_v4  ;;  %5404 = vst [vmem:[#allocation28_spill] sm:$0xff] %v4104_v53  ;;  %v4112_v50 = vmul.f32 %v4012_v19, %v5407_v28  ;;  %v4116_v54 = vmul.f32 %v4012_v19, %v5408_v31  ;;  %v5410_v4 = vld [vmem:[#allocation45_spill] sm:$0xff]  ;;  %v5411_v53 = vld [vmem:[#allocation34_spill] sm:$0xff]  ;;  %v4136_v31 = vmul.f32 %v4012_v19, %v3807_v51 }
 0x2e2   :  { %5400 = vst [vmem:[#allocation18_spill] sm:$0xff] %v4096_v49  ;;  %5406 = vst [vmem:[#allocation29_spill] sm:$0xff] %v4108_v3  ;;  %v5409_v49 = vld [vmem:[#allocation33_spill] sm:$0xff]  ;;  %v4124_v40 = vmul.f32 %v4012_v19, %v5410_v4  ;;  %v4128_v44 = vmul.f32 %v4012_v19, %v5411_v53  ;;  %v5412_v3 = vld [vmem:[#allocation35_spill] sm:$0xff]  ;;  %v4144_v4 = vmul.f32 %v4012_v19, %v3815_v58 }
 0x2e3   :  { %v4120_v33 = vmul.f32 %v4012_v19, %v5409_v49  ;;  %v4132_v28 = vmul.f32 %v4012_v19, %v5412_v3  ;;  %v4140_v49 = vmul.f32 %v4012_v19, %v3811_v55  ;;  %v4148_v53 = vmul.f32 %v4012_v19, %v3819_v29 }
 0x2e4   :  { %v4152_v3 = vmul.f32 %v4012_v19, %v3823_v25  ;;  %v4156_v51 = vmul.f32 %v4012_v19, %v3827_v60  ;;  %v4160_v55 = vmul.f32 %v4012_v19, %v3831_v43  ;;  %v4164_v58 = vmul.f32 %v4012_v19, %v3835_v1 }
 0x2e5   :  { %v4168_v29 = vmul.f32 %v4012_v19, %v3839_v18  ;;  %v4172_v25 = vmul.f32 %v4012_v19, %v3843_v8  ;;  %v4176_v60 = vmul.f32 %v4012_v19, %v3847_v45  ;;  %v4180_v43 = vmul.f32 %v4012_v19, %v3851_v6 }
 0x2e6   :  { %v4184_v1 = vmul.f32 %v4012_v19, %v3855_v11  ;;  %v4188_v18 = vmul.f32 %v4012_v19, %v3859_v16  ;;  %v4192_v8 = vmul.f32 %v4012_v19, %v3863_v10  ;;  %v4196_v45 = vmul.f32 %v4012_v19, %v3867_v14 }
 0x2e7   :  { %v4200_v6 = vmul.f32 %v4012_v19, %v3871_v20  ;;  %v4204_v11 = vmul.f32 %v4012_v19, %v3875_v39  ;;  %v4208_v16 = vmul.f32 %v4012_v19, %v3879_v21  ;;  %v4212_v10 = vmul.f32 %v4012_v19, %v3883_v26 }
 0x2e8   :  { %v4216_v14 = vmul.f32 %v4012_v19, %v3887_v62  ;;  %v4220_v20 = vmul.f32 %v4012_v19, %v3891_v23  ;;  %v4224_v39 = vmul.f32 %v4012_v19, %v3895_v48  ;;  %v4228_v21 = vmul.f32 %v4012_v19, %v3899_v5 }
 0x2e9   :  { %v4232_v26 = vmul.f32 %v4012_v19, %v3903_v35  ;;  %v4236_v62 = vmul.f32 %v4012_v19, %v3907_v30  ;;  %v4240_v23 = vmul.f32 %v4012_v19, %v3911_v59  ;;  %v4244_v48 = vmul.f32 %v4012_v19, %v3915_v46 }
 0x2ea   :  { %v4248_v5 = vmul.f32 %v4012_v19, %v3919_v41  ;;  %v4252_v35 = vmul.f32 %v4012_v19, %v3923_v36  ;;  %v4256_v30 = vmul.f32 %v4012_v19, %v3927_v9  ;;  %v4260_v59 = vmul.f32 %v4012_v19, %v3931_v52 }
 0x2eb   :  { %5413 = vst [vmem:[#allocation30_spill] sm:$0xff] %v4244_v48  ;;  %v4264_v46 = vmul.f32 %v4012_v19, %v3935_v56  ;;  %v5416_v48 = vld [vmem:[#allocation36_spill] sm:$0xff]  ;;  %v4280_v52 = vmul.f32 %v4012_v19, %v3951_v12  ;;  %v4284_v56 = vmul.f32 %v4012_v19, %v3955_v17  ;;  %v4300_v12 = vmul.f32 %v4012_v19, %v3971_v37 }
 0x2ec   :  { %5414 = vst [vmem:[#allocation39_spill] sm:$0xff] %v4248_v5  ;;  %5415 = vst [vmem:[#allocation23_spill] sm:$0xff] %v4252_v35  ;;  %v4268_v41 = vmul.f32 %v4012_v19, %v5416_v48  ;;  %v5417_v5 = vld [vmem:[#allocation37_spill] sm:$0xff]  ;;  %v5418_v35 = vld [vmem:[#allocation38_spill] sm:$0xff]  ;;  %v4288_v48 = vmul.f32 %v4012_v19, %v3959_v22 }
 0x2ed   :  { %v4272_v36 = vmul.f32 %v4012_v19, %v5417_v5  ;;  %v4276_v9 = vmul.f32 %v4012_v19, %v5418_v35  ;;  %5419 = vst [vmem:[#allocation25_spill] sm:$0xff] %v4280_v52  ;;  %5420 = vst [vmem:[#allocation27_spill] sm:$0xff] %v4284_v56  ;;  %v4292_v5 = vmul.f32 %v4012_v19, %v3963_v27  ;;  %v5425_v52 = vld [vmem:[#allocation2_spill] sm:$0xff]  ;;  %v5427_v56 = vld [vmem:[#allocation3_spill] sm:$0xff] }
 0x2ee   :  { %5421 = vst [vmem:[#allocation40_spill] sm:$0xff] %v4288_v48  ;;  %v4296_v35 = vmul.f32 %v4012_v19, %v3967_v32  ;;  %5424 = vst [vmem:[#allocation43_spill] sm:$0xff] %v4300_v12  ;;  %v4304_v17 = vmul.f32 %v4012_v19, %v5425_v52  ;;  %v4308_v22 = vmul.f32 %v4012_v19, %v5427_v56  ;;  %v5429_v48 = vld [vmem:[#allocation4_spill] sm:$0xff]  ;;  %v5434_v12 = vld [vmem:[#allocation7_spill] sm:$0xff] }
 0x2ef   :  { %5422 = vst [vmem:[#allocation41_spill] sm:$0xff] %v4292_v5  ;;  %v4312_v27 = vmul.f32 %v4012_v19, %v5429_v48  ;;  %v5430_v5 = vld [vmem:[#allocation5_spill] sm:$0xff]  ;;  %v4324_v52 = vmul.f32 %v4012_v19, %v5434_v12 }
 0x2f0   :  { %5423 = vst [vmem:[#allocation42_spill] sm:$0xff] %v4296_v35  ;;  %5426 = vst [vmem:[#allocation44_spill] sm:$0xff] %v4304_v17  ;;  %v4316_v32 = vmul.f32 %v4012_v19, %v5430_v5  ;;  %v5432_v35 = vld [vmem:[#allocation6_spill] sm:$0xff]  ;;  %v5435_v17 = vld [vmem:[#allocation8_spill] sm:$0xff] }
 0x2f1   :  { %5428 = vst [vmem:[#allocation20_spill] sm:$0xff] %v4308_v22  ;;  %v4320_v37 = vmul.f32 %v4012_v19, %v5432_v35  ;;  %v4328_v56 = vmul.f32 %v4012_v19, %v5435_v17  ;;  %v5436_v22 = vld [vmem:[#allocation9_spill] sm:$0xff]  ;;  %v4337_v5 = vld [vmem:[%s5070_s3] ss:$0 sm:$0xff]  ;;  %v4349_v17 = vmul.f32 %v4012_v19, %v4020_v13  ;;  %v4369_v13 = vmul.f32 %v4012_v19, %v4040_v15 }
 0x2f2   :  { %5431 = vst [vmem:[#allocation21_spill] sm:$0xff] %v4316_v32  ;;  %v4332_v48 = vmul.f32 %v4012_v19, %v5436_v22  ;;  %v5438_v32 = vld [vmem:[#allocation10_spill] sm:$0xff]  ;;  %v4353_v22 = vmul.f32 %v4012_v19, %v4024_v47  ;;  %v4373_v47 = vmul.f32 %v4012_v19, %v4044_v24  ;;  %v4389_v15 = vadd.f32 %v4337_v5, %v4060_v0 }
 0x2f3   :  { %5433 = vst [vmem:[#allocation22_spill] sm:$0xff] %v4320_v37  ;;  %v4341_v35 = vmul.f32 %v4012_v19, %v5438_v32  ;;  %v5439_v37 = vld [vmem:[#allocation11_spill] sm:$0xff]  ;;  %v4361_v32 = vmul.f32 %v4012_v19, %v4032_v2  ;;  %v4381_v2 = vadd.f32 %v4337_v5, %v4052_v57  ;;  %v4393_v24 = vadd.f32 %v4337_v5, %v4064_v63 }
 0x2f4   :  { %5437 = vst [vmem:[#allocation24_spill] sm:$0xff] %v4332_v48  ;;  %v4345_v12 = vmul.f32 %v4012_v19, %v5439_v37  ;;  %v4357_v48 = vmul.f32 %v4012_v19, %v4028_v61  ;;  %v4365_v37 = vmul.f32 %v4012_v19, %v4036_v7  ;;  %v4377_v61 = vmul.f32 %v4012_v19, %v4048_v38  ;;  %v5445_v38 = vld [vmem:[#allocation12_spill] sm:$0xff] }
 0x2f5   :  { %5440 = vst [vmem:[#allocation26_spill] sm:$0xff] %v4381_v2  ;;  %v4385_v7 = vadd.f32 %v4337_v5, %v4056_v42  ;;  %5442 = vst [vmem:[#allocation32_spill] sm:$0xff] %v4389_v15  ;;  %v4397_v19 = vadd.f32 %v4337_v5, %v4068_v34  ;;  %v4401_v57 = vadd.f32 %v4337_v5, %v5445_v38  ;;  %v5447_v2 = vld [vmem:[#allocation13_spill] sm:$0xff]  ;;  %v5451_v15 = vld [vmem:[#allocation15_spill] sm:$0xff] }
 0x2f6   :  { %5443 = vst [vmem:[#allocation33_spill] sm:$0xff] %v4393_v24  ;;  %v4405_v42 = vadd.f32 %v4337_v5, %v5447_v2  ;;  %v4413_v63 = vadd.f32 %v4337_v5, %v5451_v15  ;;  %v5453_v24 = vld [vmem:[#allocation16_spill] sm:$0xff] }
 0x2f7   :  { %5441 = vst [vmem:[#allocation31_spill] sm:$0xff] %v4385_v7  ;;  %5444 = vst [vmem:[#allocation45_spill] sm:$0xff] %v4397_v19  ;;  %v5449_v7 = vld [vmem:[#allocation14_spill] sm:$0xff]  ;;  %v4417_v34 = vadd.f32 %v4337_v5, %v5453_v24  ;;  %v5454_v19 = vld [vmem:[#allocation17_spill] sm:$0xff] }
 0x2f8   :  { %5446 = vst [vmem:[#allocation34_spill] sm:$0xff] %v4401_v57  ;;  %5448 = vst [vmem:[#allocation35_spill] sm:$0xff] %v4405_v42  ;;  %v4409_v0 = vadd.f32 %v4337_v5, %v5449_v7  ;;  %v4421_v38 = vadd.f32 %v4337_v5, %v5454_v19  ;;  %v5455_v57 = vld [vmem:[#allocation18_spill] sm:$0xff]  ;;  %v5456_v42 = vld [vmem:[#allocation19_spill] sm:$0xff]  ;;  %v4441_v19 = vadd.f32 %v4337_v5, %v4112_v50 }
 0x2f9   :  { %5452 = vst [vmem:[#allocation37_spill] sm:$0xff] %v4413_v63  ;;  %v4425_v2 = vadd.f32 %v4337_v5, %v5455_v57  ;;  %v4429_v7 = vadd.f32 %v4337_v5, %v5456_v42  ;;  %v5458_v63 = vld [vmem:[#allocation29_spill] sm:$0xff]  ;;  %v4445_v57 = vadd.f32 %v4337_v5, %v4116_v54  ;;  %v4449_v42 = vadd.f32 %v4337_v5, %v4120_v33 }
 0x2fa   :  { %5450 = vst [vmem:[#allocation36_spill] sm:$0xff] %v4409_v0  ;;  %v5457_v0 = vld [vmem:[#allocation28_spill] sm:$0xff]  ;;  %v4437_v24 = vadd.f32 %v4337_v5, %v5458_v63  ;;  %v4457_v63 = vadd.f32 %v4337_v5, %v4128_v44  ;;  %v4461_v50 = vadd.f32 %v4337_v5, %v4132_v28  ;;  %v4465_v54 = vadd.f32 %v4337_v5, %v4136_v31 }
 0x2fb   :  { %v4433_v15 = vadd.f32 %v4337_v5, %v5457_v0  ;;  %v4453_v0 = vadd.f32 %v4337_v5, %v4124_v40  ;;  %v4469_v33 = vadd.f32 %v4337_v5, %v4140_v49  ;;  %v4473_v40 = vadd.f32 %v4337_v5, %v4144_v4 }
 0x2fc   :  { %v4477_v44 = vadd.f32 %v4337_v5, %v4148_v53  ;;  %v4481_v28 = vadd.f32 %v4337_v5, %v4152_v3  ;;  %v4485_v31 = vadd.f32 %v4337_v5, %v4156_v51  ;;  %v4489_v49 = vadd.f32 %v4337_v5, %v4160_v55 }
 0x2fd   :  { %v4493_v4 = vadd.f32 %v4337_v5, %v4164_v58  ;;  %v4497_v53 = vadd.f32 %v4337_v5, %v4168_v29  ;;  %v4501_v3 = vadd.f32 %v4337_v5, %v4172_v25  ;;  %v4505_v51 = vadd.f32 %v4337_v5, %v4176_v60 }
 0x2fe   :  { %v4509_v55 = vadd.f32 %v4337_v5, %v4180_v43  ;;  %v4513_v58 = vadd.f32 %v4337_v5, %v4184_v1  ;;  %v4517_v29 = vadd.f32 %v4337_v5, %v4188_v18  ;;  %v4521_v25 = vadd.f32 %v4337_v5, %v4192_v8 }
 0x2ff   :  { %v4525_v60 = vadd.f32 %v4337_v5, %v4196_v45  ;;  %v4529_v43 = vadd.f32 %v4337_v5, %v4200_v6  ;;  %v4533_v1 = vadd.f32 %v4337_v5, %v4204_v11  ;;  %v4537_v18 = vadd.f32 %v4337_v5, %v4208_v16 }
 0x300   :  { %5459 = vst [vmem:[#allocation38_spill] sm:$0xff] %v4509_v55  ;;  %5460 = vst [vmem:[#allocation2_spill] sm:$0xff] %v4513_v58  ;;  %v4541_v8 = vadd.f32 %v4337_v5, %v4212_v10  ;;  %v4545_v45 = vadd.f32 %v4337_v5, %v4216_v14  ;;  %v4549_v6 = vadd.f32 %v4337_v5, %v4220_v20 }
 0x301   :  { %v4553_v11 = vadd.f32 %v4337_v5, %v4224_v39  ;;  %v4557_v16 = vadd.f32 %v4337_v5, %v4228_v21  ;;  %v4561_v10 = vadd.f32 %v4337_v5, %v4232_v26  ;;  %v4565_v14 = vadd.f32 %v4337_v5, %v4236_v62 }
 0x302   :  { %5461 = vst [vmem:[#allocation3_spill] sm:$0xff] %v4541_v8  ;;  %5462 = vst [vmem:[#allocation4_spill] sm:$0xff] %v4545_v45  ;;  %v4569_v20 = vadd.f32 %v4337_v5, %v4240_v23  ;;  %v4585_v62 = vadd.f32 %v4337_v5, %v4256_v30  ;;  %v4589_v23 = vadd.f32 %v4337_v5, %v4260_v59 }
 0x303   :  { %5463 = vst [vmem:[#allocation5_spill] sm:$0xff] %v4549_v6  ;;  %5464 = vst [vmem:[#allocation6_spill] sm:$0xff] %v4553_v11  ;;  %v5469_v6 = vld [vmem:[#allocation30_spill] sm:$0xff]  ;;  %v5470_v11 = vld [vmem:[#allocation39_spill] sm:$0xff]  ;;  %v4605_v30 = vadd.f32 %v4337_v5, %v4276_v9 }
 0x304   :  { %5465 = vst [vmem:[#allocation7_spill] sm:$0xff] %v4557_v16  ;;  %5466 = vst [vmem:[#allocation8_spill] sm:$0xff] %v4561_v10  ;;  %v4573_v39 = vadd.f32 %v4337_v5, %v5469_v6  ;;  %v4577_v21 = vadd.f32 %v4337_v5, %v5470_v11  ;;  %v5472_v16 = vld [vmem:[#allocation23_spill] sm:$0xff]  ;;  %v4593_v6 = vadd.f32 %v4337_v5, %v4264_v46 }
 0x305   :  { %5467 = vst [vmem:[#allocation9_spill] sm:$0xff] %v4565_v14  ;;  %5468 = vst [vmem:[#allocation10_spill] sm:$0xff] %v4569_v20  ;;  %v4581_v26 = vadd.f32 %v4337_v5, %v5472_v16  ;;  %v4597_v11 = vadd.f32 %v4337_v5, %v4268_v41  ;;  %v4601_v16 = vadd.f32 %v4337_v5, %v4272_v36 }
 0x306   :  { %5471 = vst [vmem:[#allocation11_spill] sm:$0xff] %v4577_v21  ;;  %5474 = vst [vmem:[#allocation13_spill] sm:$0xff] %v4585_v62  ;;  %v5480_v62 = vld [vmem:[#allocation25_spill] sm:$0xff] }
 0x307   :  { %5473 = vst [vmem:[#allocation12_spill] sm:$0xff] %v4581_v26  ;;  %5475 = vst [vmem:[#allocation14_spill] sm:$0xff] %v4589_v23  ;;  %v4609_v59 = vadd.f32 %v4337_v5, %v5480_v62  ;;  %v5482_v23 = vld [vmem:[#allocation27_spill] sm:$0xff] }
 0x308   :  { %5476 = vst [vmem:[#allocation15_spill] sm:$0xff] %v4593_v6  ;;  %5477 = vst [vmem:[#allocation16_spill] sm:$0xff] %v4597_v11  ;;  %v4613_v46 = vadd.f32 %v4337_v5, %v5482_v23  ;;  %v5484_v6 = vld [vmem:[#allocation40_spill] sm:$0xff]  ;;  %v5486_v11 = vld [vmem:[#allocation41_spill] sm:$0xff] }
 0x309   :  { %5478 = vst [vmem:[#allocation17_spill] sm:$0xff] %v4601_v16  ;;  %5479 = vst [vmem:[#allocation18_spill] sm:$0xff] %v4605_v30  ;;  %v4617_v41 = vadd.f32 %v4337_v5, %v5484_v6  ;;  %v4621_v36 = vadd.f32 %v4337_v5, %v5486_v11  ;;  %v5488_v16 = vld [vmem:[#allocation42_spill] sm:$0xff]  ;;  %v5490_v30 = vld [vmem:[#allocation43_spill] sm:$0xff]  ;;  %v4641_v11 = vadd.f32 %v4337_v5, %v4312_v27 }
 0x30a   :  { %5481 = vst [vmem:[#allocation19_spill] sm:$0xff] %v4609_v59  ;;  %5483 = vst [vmem:[#allocation28_spill] sm:$0xff] %v4613_v46  ;;  %v4625_v9 = vadd.f32 %v4337_v5, %v5488_v16  ;;  %v4629_v62 = vadd.f32 %v4337_v5, %v5490_v30  ;;  %v5492_v59 = vld [vmem:[#allocation44_spill] sm:$0xff] }
 0x30b   :  { %5485 = vst [vmem:[#allocation29_spill] sm:$0xff] %v4617_v41  ;;  %5487 = vst [vmem:[#allocation30_spill] sm:$0xff] %v4621_v36  ;;  %v4633_v23 = vadd.f32 %v4337_v5, %v5492_v59  ;;  %v5494_v46 = vld [vmem:[#allocation20_spill] sm:$0xff]  ;;  %v5497_v36 = vld [vmem:[#allocation21_spill] sm:$0xff]  ;;  %v4653_v59 = vadd.f32 %v4337_v5, %v4324_v52  ;;  %v4673_v52 = vadd.f32 %v4337_v5, %v4349_v17 }
 0x30c   :  { %5489 = vst [vmem:[#allocation39_spill] sm:$0xff] %v4625_v9  ;;  %5491 = vst [vmem:[#allocation23_spill] sm:$0xff] %v4629_v62  ;;  %v4637_v6 = vadd.f32 %v4337_v5, %v5494_v46  ;;  %v4645_v16 = vadd.f32 %v4337_v5, %v5497_v36  ;;  %v5499_v9 = vld [vmem:[#allocation22_spill] sm:$0xff]  ;;  %v4657_v46 = vadd.f32 %v4337_v5, %v4328_v56 }
 0x30d   :  { %5493 = vst [vmem:[#allocation25_spill] sm:$0xff] %v4633_v23  ;;  %5496 = vst [vmem:[#allocation40_spill] sm:$0xff] %v4641_v11  ;;  %v4649_v30 = vadd.f32 %v4337_v5, %v5499_v9  ;;  %v4665_v36 = vadd.f32 %v4337_v5, %v4341_v35  ;;  %v4669_v9 = vadd.f32 %v4337_v5, %v4345_v12  ;;  %v5526_v8 = vld [vmem:[#allocation13_spill] sm:$0xff] }
 0x30e   :  { %5495 = vst [vmem:[#allocation27_spill] sm:$0xff] %v4637_v6  ;;  %5498 = vst [vmem:[#allocation41_spill] sm:$0xff] %v4645_v16  ;;  %v5503_v6 = vld [vmem:[#allocation24_spill] sm:$0xff]  ;;  %v4677_v56 = vadd.f32 %v4337_v5, %v4353_v22  ;;  %v4685_v35 = vadd.f32 %v4337_v5, %v4361_v32  ;;  %v4689_v12 = vadd.f32 %v4337_v5, %v4365_v37  ;;  %v5515_v32 = vld [vmem:[#allocation31_spill] sm:$0xff] }
 0x30f   :  { %5500 = vst [vmem:[#allocation42_spill] sm:$0xff] %v4649_v30  ;;  %5501 = vst [vmem:[#allocation43_spill] sm:$0xff] %v4653_v59  ;;  %v4661_v27 = vadd.f32 %v4337_v5, %v5503_v6  ;;  %v4681_v6 = vadd.f32 %v4337_v5, %v4357_v48  ;;  %v4693_v17 = vadd.f32 %v4337_v5, %v4369_v13  ;;  %v5517_v37 = vld [vmem:[#allocation33_spill] sm:$0xff]  ;;  %v5519_v13 = vld [vmem:[#allocation34_spill] sm:$0xff] }
 0x310   :  { %5502 = vst [vmem:[#allocation44_spill] sm:$0xff] %v4657_v46  ;;  %5505 = vst [vmem:[#allocation21_spill] sm:$0xff] %v4665_v36  ;;  %v4697_v22 = vadd.f32 %v4337_v5, %v4373_v47  ;;  %v4701_v48 = vadd.f32 %v4337_v5, %v4377_v61  ;;  %v5518_v36 = vld [vmem:[#allocation45_spill] sm:$0xff]  ;;  %v5520_v46 = vld [vmem:[#allocation35_spill] sm:$0xff]  ;;  %v5547_v11 = vmov %v4685_v35 }
 0x311   :  { %5504 = vst [vmem:[#allocation20_spill] sm:$0xff] %v4661_v27  ;;  %5506 = vst [vmem:[#allocation22_spill] sm:$0xff] %v4669_v9  ;;  %v5521_v47 = vld [vmem:[#allocation36_spill] sm:$0xff]  ;;  %v5522_v30 = vld [vmem:[#allocation37_spill] sm:$0xff]  ;;  %v5541_v41 = vmov %v4661_v27  ;;  %v5549_v10 = vmov %v4693_v17  ;;  %v5552_v9 = vmax.f32 %v5515_v32, 0.0  ;;  %v5554_v27 = vmax.f32 %v5517_v37, 0.0 }
 0x312   :  { %5507 = vst [vmem:[#allocation24_spill] sm:$0xff] %v4673_v52  ;;  %5508 = vst [vmem:[#allocation46_spill] sm:$0xff] %v4677_v56  ;;  %v5516_v52 = vld [vmem:[#allocation32_spill] sm:$0xff]  ;;  %v5527_v45 = vld [vmem:[#allocation14_spill] sm:$0xff]  ;;  %v1507_v61 = vmax.f32 %v4701_v48, 0.0  ;;  %v5555_v59 = vmax.f32 %v5518_v36, 0.0 }
 0x313   :  { %5509 = vst [vmem:[#allocation47_spill] sm:$0xff] %v4681_v6  ;;  %5510 = vst [vmem:[#allocation48_spill] sm:$0xff] %v4685_v35  ;;  %v5514_v6 = vld [vmem:[#allocation26_spill] sm:$0xff]  ;;  %v5529_v55 = vld [vmem:[#allocation16_spill] sm:$0xff]  ;;  %v5557_v16 = vmax.f32 %v5520_v46, 0.0  ;;  %v5558_v5 = vmax.f32 %v5521_v47, 0.0 }
 0x314   :  { %5511 = vst [vmem:[#allocation49_spill] sm:$0xff] %v4689_v12  ;;  %5512 = vst [vmem:[#allocation50_spill] sm:$0xff] %v4693_v17  ;;  %v5551_v35 = vmax.f32 %v5514_v6, 0.0  ;;  %v5553_v12 = vmax.f32 %v5516_v52, 0.0  ;;  %v2168_v14 = vpack.c.bf16 %v1507_v61, %v1507_v61  ;;  %v5559_v6 = vmax.f32 %v5522_v30, 0.0 }
 0x315   :  { %5513 = vst [vmem:[#allocation51_spill] sm:$0xff] %v4697_v22  ;;  %v5556_v22 = vmax.f32 %v5519_v13, 0.0  ;;  %v2187_v48 = vpack.c.bf16 %v5558_v5, %v5557_v16  ;;  %v5561_v52 = vmax.f32 %v4421_v38, 0.0  ;;  %v5563_v36 = vmax.f32 %v4429_v7, 0.0 }
 0x316   :  { %v2172_v26 = vpack.c.bf16 %v5552_v9, %v5551_v35  ;;  %v2177_v17 = vpack.c.bf16 %v5554_v27, %v5553_v12  ;;  %v5560_v9 = vmax.f32 %v4417_v34, 0.0  ;;  %v5562_v27 = vmax.f32 %v4425_v2, 0.0  ;;  %1913 = vst [vmem:[%s5071_s4 + $0x140] sm:$0xf] %v2168_v14 }
 0x317   :  { %v5540_v20 = vld [vmem:[#allocation44_spill] sm:$0xff]  ;;  %v5542_v21 = vld [vmem:[#allocation21_spill] sm:$0xff]  ;;  %v2182_v58 = vpack.c.bf16 %v5556_v22, %v5555_v59  ;;  %v5564_v59 = vmax.f32 %v4433_v15, 0.0  ;;  %2371 = vst [vmem:[%s5071_s4 + $0x18] sm:$0xff] %v2187_v48   ;;  %v5565_v34 = vmax.f32 %v4437_v24, 0.0  ;;  %v5566_v38 = vmax.f32 %v4441_v19, 0.0 }
 0x318   :  { %v2192_v35 = vpack.c.bf16 %v5560_v9, %v5559_v6  ;;  %v2197_v12 = vpack.c.bf16 %v5562_v27, %v5561_v52  ;;  %2173 = vst [vmem:[%s5071_s4] sm:$0xff] %v2172_v26   ;;  %2369 = vst [vmem:[%s5071_s4 + $0x8] sm:$0xff] %v2177_v17   ;;  %v5567_v7 = vmax.f32 %v4445_v57, 0.0  ;;  %v5568_v15 = vmax.f32 %v4449_v42, 0.0 }
 0x319   :  { %v5544_v62 = vld [vmem:[#allocation24_spill] sm:$0xff]  ;;  %v5545_v23 = vld [vmem:[#allocation46_spill] sm:$0xff]  ;;  %v2202_v22 = vpack.c.bf16 %v5564_v59, %v5563_v36  ;;  %2370 = vst [vmem:[%s5071_s4 + $0x10] sm:$0xff] %v2182_v58   ;;  %v2207_v2 = vpack.c.bf16 %v5566_v38, %v5565_v34  ;;  %v5569_v16 = vmax.f32 %v4453_v0, 0.0  ;;  %v5570_v30 = vmax.f32 %v4457_v63, 0.0  ;;  %v5601_v38 = vld [vmem:[#allocation7_spill] sm:$0xff] }
 0x31a   :  { %v5546_v56 = vld [vmem:[#allocation47_spill] sm:$0xff]  ;;  %v2212_v26 = vpack.c.bf16 %v5568_v15, %v5567_v7  ;;  %v5571_v58 = vmax.f32 %v4461_v50, 0.0  ;;  %v5572_v17 = vmax.f32 %v4465_v54, 0.0  ;;  %2372 = vst [vmem:[%s5071_s4 + $0x20] sm:$0xff] %v2192_v35   ;;  %2373 = vst [vmem:[%s5071_s4 + $0x28] sm:$0xff] %v2197_v12   ;;  %v5573_v24 = vmax.f32 %v4469_v33, 0.0 }
 0x31b   :  { %v2217_v46 = vpack.c.bf16 %v5570_v30, %v5569_v16  ;;  %2374 = vst [vmem:[%s5071_s4 + $0x30] sm:$0xff] %v2202_v22   ;;  %v5574_v19 = vmax.f32 %v4473_v40, 0.0  ;;  %v5575_v42 = vmax.f32 %v4477_v44, 0.0  ;;  %v5576_v0 = vmax.f32 %v4481_v28, 0.0  ;;  %2375 = vst [vmem:[%s5071_s4 + $0x38] sm:$0xff] %v2207_v2   ;;  %v5583_v28 = vld [vmem:[#allocation38_spill] sm:$0xff] }
 0x31c   :  { %v2222_v32 = vpack.c.bf16 %v5572_v17, %v5571_v58  ;;  %v5577_v50 = vmax.f32 %v4485_v31, 0.0  ;;  %v5578_v54 = vmax.f32 %v4489_v49, 0.0  ;;  %v5579_v13 = vmax.f32 %v4493_v4, 0.0  ;;  %2376 = vst [vmem:[%s5071_s4 + $0x40] sm:$0xff] %v2212_v26   ;;  %v5585_v49 = vld [vmem:[#allocation2_spill] sm:$0xff]  ;;  %v5597_v12 = vld [vmem:[#allocation5_spill] sm:$0xff] }
 0x31d   :  { %v2227_v57 = vpack.c.bf16 %v5574_v19, %v5573_v24  ;;  %v2232_v63 = vpack.c.bf16 %v5576_v0, %v5575_v42  ;;  %v5580_v47 = vmax.f32 %v4497_v53, 0.0  ;;  %2377 = vst [vmem:[%s5071_s4 + $0x48] sm:$0xff] %v2217_v46   ;;  %v5581_v33 = vmax.f32 %v4501_v3, 0.0  ;;  %v5599_v59 = vld [vmem:[#allocation6_spill] sm:$0xff]  ;;  %v5603_v7 = vld [vmem:[#allocation8_spill] sm:$0xff]  ;;  %v5610_v17 = vld [vmem:[#allocation11_spill] sm:$0xff] }
 0x31e   :  { %v2237_v37 = vpack.c.bf16 %v5578_v54, %v5577_v50  ;;  %2378 = vst [vmem:[%s5071_s4 + $0x50] sm:$0xff] %v2222_v32   ;;  %v5582_v40 = vmax.f32 %v4505_v51, 0.0  ;;  %v5584_v31 = vmax.f32 %v5583_v28, 0.0  ;;  %v5586_v4 = vmax.f32 %v5585_v49, 0.0  ;;  %v5607_v16 = vld [vmem:[#allocation10_spill] sm:$0xff]  ;;  %v5612_v19 = vld [vmem:[#allocation12_spill] sm:$0xff] }
 0x31f   :  { %v2242_v5 = vpack.c.bf16 %v5580_v47, %v5579_v13  ;;  %v5587_v14 = vmax.f32 %v4517_v29, 0.0  ;;  %v5588_v61 = vmax.f32 %v4521_v25, 0.0  ;;  %v5589_v6 = vmax.f32 %v4525_v60, 0.0  ;;  %2379 = vst [vmem:[%s5071_s4 + $0x58] sm:$0xff] %v2227_v57   ;;  %2380 = vst [vmem:[%s5071_s4 + $0x60] sm:$0xff] %v2232_v63   ;;  %v5593_v25 = vld [vmem:[#allocation3_spill] sm:$0xff] }
 0x320   :  { %v2247_v44 = vpack.c.bf16 %v5582_v40, %v5581_v33  ;;  %v2252_v53 = vpack.c.bf16 %v5586_v4, %v5584_v31  ;;  %v5590_v9 = vmax.f32 %v4529_v43, 0.0  ;;  %2381 = vst [vmem:[%s5071_s4 + $0x68] sm:$0xff] %v2237_v37   ;;  %v5591_v3 = vmax.f32 %v4533_v1, 0.0  ;;  %v5595_v43 = vld [vmem:[#allocation4_spill] sm:$0xff]  ;;  %v5605_v1 = vld [vmem:[#allocation9_spill] sm:$0xff]  ;;  %v5616_v50 = vld [vmem:[#allocation15_spill] sm:$0xff] }
 0x321   :  { %v2257_v48 = vpack.c.bf16 %v5588_v61, %v5587_v14  ;;  %2382 = vst [vmem:[%s5071_s4 + $0x70] sm:$0xff] %v2242_v5   ;;  %v5592_v51 = vmax.f32 %v4537_v18, 0.0  ;;  %v5594_v60 = vmax.f32 %v5593_v25, 0.0  ;;  %v5596_v52 = vmax.f32 %v5595_v43, 0.0  ;;  %v5621_v47 = vld [vmem:[#allocation18_spill] sm:$0xff]  ;;  %v5623_v33 = vld [vmem:[#allocation19_spill] sm:$0xff] }
 0x322   :  { %v2262_v35 = vpack.c.bf16 %v5590_v9, %v5589_v6  ;;  %v5598_v36 = vmax.f32 %v5597_v12, 0.0  ;;  %v5600_v22 = vmax.f32 %v5599_v59, 0.0  ;;  %v5602_v2 = vmax.f32 %v5601_v38, 0.0  ;;  %2383 = vst [vmem:[%s5071_s4 + $0x78] sm:$0xff] %v2247_v44   ;;  %2384 = vst [vmem:[%s5071_s4 + $0x80] sm:$0xff] %v2252_v53   ;;  %v5625_v28 = vld [vmem:[#allocation28_spill] sm:$0xff] }
 0x323   :  { %v2267_v29 = vpack.c.bf16 %v5592_v51, %v5591_v3  ;;  %v2272_v27 = vpack.c.bf16 %v5596_v52, %v5594_v60  ;;  %v5604_v15 = vmax.f32 %v5603_v7, 0.0  ;;  %2385 = vst [vmem:[%s5071_s4 + $0x88] sm:$0xff] %v2257_v48   ;;  %v5606_v18 = vmax.f32 %v5605_v1, 0.0  ;;  %v5627_v49 = vld [vmem:[#allocation29_spill] sm:$0xff]  ;;  %v5629_v14 = vld [vmem:[#allocation30_spill] sm:$0xff]  ;;  %v5631_v48 = vld [vmem:[#allocation39_spill] sm:$0xff] }
 0x324   :  { %v2277_v34 = vpack.c.bf16 %v5600_v22, %v5598_v36  ;;  %2386 = vst [vmem:[%s5071_s4 + $0x90] sm:$0xff] %v2262_v35   ;;  %v5608_v30 = vmax.f32 %v5607_v16, 0.0  ;;  %v5609_v58 = vmax.f32 %v4573_v39, 0.0  ;;  %v5611_v32 = vmax.f32 %v5610_v17, 0.0  ;;  %v5635_v3 = vld [vmem:[#allocation25_spill] sm:$0xff]  ;;  %v5637_v25 = vld [vmem:[#allocation27_spill] sm:$0xff] }
 0x325   :  { %v2282_v26 = vpack.c.bf16 %v5604_v15, %v5602_v2  ;;  %v5613_v57 = vmax.f32 %v5612_v19, 0.0  ;;  %v5614_v42 = vmax.f32 %v5526_v8, 0.0  ;;  %v5615_v63 = vmax.f32 %v5527_v45, 0.0  ;;  %2387 = vst [vmem:[%s5071_s4 + $0x98] sm:$0xff] %v2267_v29   ;;  %2388 = vst [vmem:[%s5071_s4 + $0xa0] sm:$0xff] %v2272_v27   ;;  %v5619_v45 = vld [vmem:[#allocation17_spill] sm:$0xff] }
 0x326   :  { %v2287_v46 = vpack.c.bf16 %v5608_v30, %v5606_v18  ;;  %v2292_v24 = vpack.c.bf16 %v5611_v32, %v5609_v58  ;;  %v5617_v54 = vmax.f32 %v5616_v50, 0.0  ;;  %2389 = vst [vmem:[%s5071_s4 + $0xa8] sm:$0xff] %v2277_v34   ;;  %v5618_v8 = vmax.f32 %v5529_v55, 0.0  ;;  %v5633_v55 = vld [vmem:[#allocation23_spill] sm:$0xff]  ;;  %v5639_v43 = vld [vmem:[#allocation40_spill] sm:$0xff]  ;;  %v5641_v12 = vld [vmem:[#allocation41_spill] sm:$0xff] }
 0x327   :  { %v2297_v0 = vpack.c.bf16 %v5614_v42, %v5613_v57  ;;  %2390 = vst [vmem:[%s5071_s4 + $0xb0] sm:$0xff] %v2282_v26   ;;  %v5620_v39 = vmax.f32 %v5619_v45, 0.0  ;;  %v5622_v5 = vmax.f32 %v5621_v47, 0.0  ;;  %v5624_v40 = vmax.f32 %v5623_v33, 0.0  ;;  %v5643_v59 = vld [vmem:[#allocation42_spill] sm:$0xff]  ;;  %v5645_v38 = vld [vmem:[#allocation43_spill] sm:$0xff] }
 0x328   :  { %v2302_v37 = vpack.c.bf16 %v5617_v54, %v5615_v63  ;;  %v5626_v31 = vmax.f32 %v5625_v28, 0.0  ;;  %v5628_v4 = vmax.f32 %v5627_v49, 0.0  ;;  %v5630_v61 = vmax.f32 %v5629_v14, 0.0  ;;  %2391 = vst [vmem:[%s5071_s4 + $0xb8] sm:$0xff] %v2287_v46   ;;  %2392 = vst [vmem:[%s5071_s4 + $0xc0] sm:$0xff] %v2292_v24   ;;  %v5650_v18 = vld [vmem:[#allocation22_spill] sm:$0xff] }
 0x329   :  { %v2307_v13 = vpack.c.bf16 %v5620_v39, %v5618_v8  ;;  %v2312_v44 = vpack.c.bf16 %v5624_v40, %v5622_v5  ;;  %v5632_v6 = vmax.f32 %v5631_v48, 0.0  ;;  %2393 = vst [vmem:[%s5071_s4 + $0xc8] sm:$0xff] %v2297_v0   ;;  %v5634_v35 = vmax.f32 %v5633_v55, 0.0  ;;  %v5656_v19 = vld [vmem:[#allocation49_spill] sm:$0xff] }
 0x32a   :  { %v2317_v53 = vpack.c.bf16 %v5628_v4, %v5626_v31  ;;  %2394 = vst [vmem:[%s5071_s4 + $0xd0] sm:$0xff] %v2302_v37   ;;  %v5636_v51 = vmax.f32 %v5635_v3, 0.0  ;;  %v5638_v60 = vmax.f32 %v5637_v25, 0.0  ;;  %v5640_v52 = vmax.f32 %v5639_v43, 0.0 }
 0x32b   :  { %v2322_v9 = vpack.c.bf16 %v5632_v6, %v5630_v61  ;;  %v5642_v36 = vmax.f32 %v5641_v12, 0.0  ;;  %v5644_v22 = vmax.f32 %v5643_v59, 0.0  ;;  %v5646_v2 = vmax.f32 %v5645_v38, 0.0  ;;  %2395 = vst [vmem:[%s5071_s4 + $0xd8] sm:$0xff] %v2307_v13   ;;  %2396 = vst [vmem:[%s5071_s4 + $0xe0] sm:$0xff] %v2312_v44  }
 0x32c   :  { %v2327_v29 = vpack.c.bf16 %v5636_v51, %v5634_v35  ;;  %v2332_v27 = vpack.c.bf16 %v5640_v52, %v5638_v60  ;;  %v5647_v7 = vmax.f32 %v5540_v20, 0.0  ;;  %2397 = vst [vmem:[%s5071_s4 + $0xe8] sm:$0xff] %v2317_v53   ;;  %v5648_v26 = vmax.f32 %v5541_v41, 0.0  ;;  %v5659_v41 = vld [vmem:[#allocation51_spill] sm:$0xff] }
 0x32d   :  { %v2337_v34 = vpack.c.bf16 %v5644_v22, %v5642_v36  ;;  %2398 = vst [vmem:[%s5071_s4 + $0xf0] sm:$0xff] %v2322_v9   ;;  %v5649_v20 = vmax.f32 %v5542_v21, 0.0  ;;  %v5651_v16 = vmax.f32 %v5650_v18, 0.0  ;;  %v5652_v30 = vmax.f32 %v5544_v62, 0.0 }
 0x32e   :  { %v2342_v15 = vpack.c.bf16 %v5647_v7, %v5646_v2  ;;  %v5653_v58 = vmax.f32 %v5545_v23, 0.0  ;;  %v5654_v17 = vmax.f32 %v5546_v56, 0.0  ;;  %v5655_v24 = vmax.f32 %v5547_v11, 0.0  ;;  %2399 = vst [vmem:[%s5071_s4 + $0xf8] sm:$0xff] %v2327_v29   ;;  %2400 = vst [vmem:[%s5071_s4 + $0x100] sm:$0xff] %v2332_v27  }
 0x32f   :  { %v2347_v1 = vpack.c.bf16 %v5649_v20, %v5648_v26  ;;  %v2352_v46 = vpack.c.bf16 %v5652_v30, %v5651_v16  ;;  %v5657_v57 = vmax.f32 %v5656_v19, 0.0  ;;  %2401 = vst [vmem:[%s5071_s4 + $0x108] sm:$0xff] %v2337_v34   ;;  %v5658_v21 = vmax.f32 %v5549_v10, 0.0 }
 0x330   :  { %v2357_v32 = vpack.c.bf16 %v5654_v17, %v5653_v58  ;;  %2402 = vst [vmem:[%s5071_s4 + $0x110] sm:$0xff] %v2342_v15   ;;  %v5660_v62 = vmax.f32 %v5659_v41, 0.0 }
 0x331   :  { %v2362_v42 = vpack.c.bf16 %v5657_v57, %v5655_v24  ;;  %2403 = vst [vmem:[%s5071_s4 + $0x118] sm:$0xff] %v2347_v1   ;;  %2404 = vst [vmem:[%s5071_s4 + $0x120] sm:$0xff] %v2352_v46  }
 0x332   :  { %v2367_v23 = vpack.c.bf16 %v5660_v62, %v5658_v21  ;;  %2405 = vst [vmem:[%s5071_s4 + $0x128] sm:$0xff] %v2357_v32  }
 0x333   :  { %2406 = vst [vmem:[%s5071_s4 + $0x130] sm:$0xff] %v2362_v42  }
 0x334   :  { %2407 = vst [vmem:[%s5071_s4 + $0x138] sm:$0xff] %v2367_v23  }

// kernel: critic_forward.5
= control target key start
LH: loop header
LB: loop body
LE: loop exit
PB: predicated region body
PF: predicated region fallthrough
CT: control target
= control target key end

     0   :  { %vm5641_vm0 = vmmov 0   ;;  %vm3786_vm1 = vcmask 1041408   ;;  %s7069_s1 = inlined_call_operand.vmem [shape: bf16[3200,128], index: 1, kind: input, shape index: {}]   ;;  %s7070_s0 = inlined_call_operand.vmem [shape: bf16[98,3200], index: 0, kind: input, shape index: {}]   ;;  %s7071_s2 = inlined_call_operand.vmem [shape: f32[1,128], index: 2, kind: input, shape index: {}]   ;;  %s7072_s3 = inlined_call_operand.vmem [shape: f32[1,128], index: 3, kind: input, shape index: {}]   ;;  %s7073_s4 = inlined_call_operand.vmem [shape: bf16[98,128], index: 4, kind: output, shape index: {}]  }
   0x1   :  { %v5191_v0 = vld [vmem:[%s7069_s1 + $0x40] sm:$0xff]   ;;  %v5193_v2 = vld [vmem:[%s7069_s1 + $0x48] sm:$0xff]   ;;  %v5195_v4 = vld [vmem:[%s7069_s1 + $0x50] sm:$0xff]  }
   0x2   :  { %v5192_v1 = vld [vmem:[%s7069_s1] sm:$0xff]   ;;  %5173 = vmatprep.subr.bf16.mxu1 %v5191_v0  ;;  %4418 = vmatprep.subr.bf16.mxu0 %v5191_v0  ;;  %v5194_v3 = vld [vmem:[%s7069_s1 + $0x8] sm:$0xff]   ;;  %v5196_v5 = vld [vmem:[%s7069_s1 + $0x10] sm:$0xff]  }
   0x3   :  { %5181 = vmatpush3.bf16.msra.mxu1 %v5192_v1  ;;  %4419 = vmatpush3.bf16.msra.mxu0 %v5192_v1  ;;  %v5197_v6 = vld [vmem:[%s7069_s1 + $0x58] sm:$0xff]   ;;  %v5199_v8 = vld [vmem:[%s7069_s1 + $0x60] sm:$0xff]   ;;  %v5201_v10 = vld [vmem:[%s7069_s1 + $0x68] sm:$0xff]  }
   0x4   :  { %5174 = vmatprep.subr.bf16.mxu1 %v5193_v2  ;;  %4420 = vmatprep.subr.bf16.mxu0 %v5193_v2  ;;  %v5198_v7 = vld [vmem:[%s7069_s1 + $0x18] sm:$0xff]   ;;  %v5200_v9 = vld [vmem:[%s7069_s1 + $0x20] sm:$0xff]   ;;  %v5202_v12 = vld [vmem:[%s7069_s1 + $0x28] sm:$0xff]  }
   0x5   :  { %v5209_v11 = vld [vmem:[%s7070_s0 + $0x324] ss:$100 sps:$4 sm:$0xff]   ;;  %v5203_v14 = vld [vmem:[%s7069_s1 + $0x70] sm:$0xff]   ;;  %v5205_v16 = vld [vmem:[%s7069_s1 + $0x78] sm:$0xff]  }
   0x6   :  { %v5213_v13 = vld [vmem:[%s7070_s0 + $0x4] ss:$100 sps:$4 sm:$0xff]   ;;  %2695 = vmatprep.mubr.bf16.mxu1 %v5209_v11  ;;  %v5204_v15 = vld [vmem:[%s7069_s1 + $0x30] sm:$0xff]   ;;  %v5206_v17 = vld [vmem:[%s7069_s1 + $0x38] sm:$0xff]  }
   0x7   :  { %5182 = vmatpush3.bf16.msra.mxu1 %v5194_v3  ;;  %4421 = vmatpush3.bf16.msra.mxu0 %v5194_v3  ;;  %v5210_v18 = vld [vmem:[%s7069_s1 + $0xc0] sm:$0xff]   ;;  %v5217_v24 = vld [vmem:[%s7069_s1 + $0xc8] sm:$0xff]   ;;  %v5221_v30 = vld [vmem:[%s7069_s1 + $0xd0] sm:$0xff]  }
   0x8   :  { %5175 = vmatprep.subr.bf16.mxu1 %v5195_v4  ;;  %4422 = vmatprep.subr.bf16.mxu0 %v5195_v4  ;;  %v5207_v19 = vld [vmem:[%s7070_s0 + $0x320] ss:$100 sps:$4 sm:$0xff]   ;;  %v5219_v25 = vld [vmem:[%s7069_s1 + $0x148] sm:$0xff]   ;;  %v5226_v31 = vld [vmem:[%s7069_s1 + $0x150] sm:$0xff]  }
   0x9   :  { %2663 = vmatprep.mubr.bf16.mxu0 %v5213_v13  ;;  %v5211_v20 = vld [vmem:[%s7070_s0] ss:$100 sps:$4 sm:$0xff]   ;;  %v5222_v26 = vld [vmem:[%s7070_s0 + $0xcc] ss:$100 sps:$4 sm:$0xff]   ;;  %v5228_v36 = vld [vmem:[%s7069_s1 + $0xd8] sm:$0xff]  }
   0xa   :  { %v5215_v21 = vld [vmem:[%s7069_s1 + $0x140] sm:$0xff]   ;;  %v5218_v27 = vld [vmem:[%s7069_s1 + $0x88] sm:$0xff]   ;;  %v5224_v32 = vld [vmem:[%s7069_s1 + $0x90] sm:$0xff]  }
   0xb   :  { %5183 = vmatpush3.bf16.msra.mxu1 %v5196_v5  ;;  %4423 = vmatpush3.bf16.msra.mxu0 %v5196_v5  ;;  %v5214_v22 = vld [vmem:[%s7069_s1 + $0x80] sm:$0xff]   ;;  %v5229_v28 = vld [vmem:[%s7070_s0 + $0x3ec] ss:$100 sps:$4 sm:$0xff]   ;;  %v5233_v37 = vld [vmem:[%s7069_s1 + $0x158] sm:$0xff]  }
   0xc   :  { %5176 = vmatprep.subr.bf16.mxu1 %v5197_v6  ;;  %4424 = vmatprep.subr.bf16.mxu0 %v5197_v6  ;;  %v5216_v23 = vld [vmem:[%s7069_s1 + $0x100] sm:$0xff]   ;;  %v5220_v29 = vld [vmem:[%s7069_s1 + $0x108] sm:$0xff]   ;;  %v5227_v35 = vld [vmem:[%s7069_s1 + $0x110] sm:$0xff]  }
   0xd   :  { %v5225_v33 = vld [vmem:[%s7070_s0 + $0xc8] ss:$100 sps:$4 sm:$0xff]   ;;  %v5231_v38 = vld [vmem:[%s7069_s1 + $0x98] sm:$0xff]   ;;  %v5235_v41 = vld [vmem:[%s7069_s1 + $0xe0] sm:$0xff]  }
   0xe   :  { %v5232_v34 = vld [vmem:[%s7070_s0 + $0x3e8] ss:$100 sps:$4 sm:$0xff]   ;;  %v5236_v39 = vld [vmem:[%s7070_s0 + $0x194] ss:$100 sps:$4 sm:$0xff]   ;;  %v5240_v43 = vld [vmem:[%s7069_s1 + $0x160] sm:$0xff]  }
   0xf   :  { %5184 = vmatpush3.bf16.msra.mxu1 %v5198_v7  ;;  %4425 = vmatpush3.bf16.msra.mxu0 %v5198_v7  ;;  %v5234_v40 = vld [vmem:[%s7069_s1 + $0x118] sm:$0xff]   ;;  %v174_v42 = vld [vmem:[%s7070_s0 + $0x4b0] sm:$0x11]  ;;  %v5238_v45 = vld [vmem:[%s7069_s1 + $0xa0] sm:$0xff]  }
  0x10   :  { %5177 = vmatprep.subr.bf16.mxu1 %v5199_v8  ;;  %4426 = vmatprep.subr.bf16.mxu0 %v5199_v8  ;;  %v4131_v44 = vcombine.high %v174_v42, %v174_v42  ;;  %v5239_v46 = vld [vmem:[%s7070_s0 + $0x190] ss:$100 sps:$4 sm:$0xff]   ;;  %v5241_v47 = vld [vmem:[%s7069_s1 + $0x120] sm:$0xff]   ;;  %v4130_v48 = vcombine.low %v174_v42, %v174_v42  ;;  %v5242_v49 = vld [vmem:[%s7069_s1 + $0xe8] sm:$0xff]  }
  0x11   :  { %v5246_v50 = vld [vmem:[%s7069_s1 + $0x168] sm:$0xff]   ;;  %v5249_v52 = vld [vmem:[%s7070_s0 + $0x25c] ss:$100 sps:$4 sm:$0xff]   ;;  %v5248_v54 = vld [vmem:[%s7069_s1 + $0xf0] sm:$0xff]  }
  0x12   :  { %v5244_v51 = vld [vmem:[%s7069_s1 + $0xa8] sm:$0xff]   ;;  %v5253_v55 = vld [vmem:[%s7069_s1 + $0x170] sm:$0xff]   ;;  %v5252_v57 = vld [vmem:[%s7070_s0 + $0x258] ss:$100 sps:$4 sm:$0xff]  }
  0x13   :  { %5185 = vmatpush3.bf16.msra.mxu1 %v5200_v9  ;;  %4427 = vmatpush3.bf16.msra.mxu0 %v5200_v9  ;;  %v5247_v53 = vld [vmem:[%s7069_s1 + $0x128] sm:$0xff]   ;;  %v5251_v56 = vld [vmem:[%s7069_s1 + $0xb0] sm:$0xff]   ;;  %v5255_v59 = vld [vmem:[%s7069_s1 + $0xf8] sm:$0xff]  }
  0x14   :  { %5178 = vmatprep.subr.bf16.mxu1 %v5201_v10  ;;  %4428 = vmatprep.subr.bf16.mxu0 %v5201_v10  ;;  %v5254_v58 = vld [vmem:[%s7069_s1 + $0x130] sm:$0xff]   ;;  %v5257_v60 = vld [vmem:[%s7069_s1 + $0x178] sm:$0xff]   ;;  %v5262_v0 = vld [vmem:[%s7069_s1 + $0x1c0] sm:$0xff]  }
  0x15   :  { %v5260_v61 = vld [vmem:[%s7070_s0 + $0xc] ss:$100 sps:$4 sm:$0xff]   ;;  %v5256_v62 = vld [vmem:[%s7069_s1 + $0xb8] sm:$0xff]   ;;  %v5266_v4 = vld [vmem:[%s7069_s1 + $0x180] sm:$0xff]  }
  0x16   :  { %v5261_v63 = vld [vmem:[%s7069_s1 + $0x138] sm:$0xff]   ;;  %v5258_v2 = vld [vmem:[%s7070_s0 + $0x8] ss:$100 sps:$4 sm:$0xff]   ;;  %v5263_v3 = vld [vmem:[%s7070_s0 + $0x10] ss:$100 sps:$4 sm:$0xff]  }
  0x17   :  { %5186 = vmatpush3.bf16.msra.mxu1 %v5202_v12  ;;  %4429 = vmatpush3.bf16.msra.mxu0 %v5202_v12  ;;  %v5265_v1 = vld [vmem:[%s7070_s0 + $0x14] ss:$100 sps:$4 sm:$0xff]   ;;  %v5267_v5 = vld [vmem:[%s7069_s1 + $0x240] sm:$0xff]   ;;  %v5271_v8 = vld [vmem:[%s7069_s1 + $0x1c8] sm:$0xff]  }
  0x18   :  { %5179 = vmatprep.subr.bf16.mxu1 %v5203_v14  ;;  %4430 = vmatprep.subr.bf16.mxu0 %v5203_v14  ;;  %v5268_v6 = vld [vmem:[%s7069_s1 + $0x200] sm:$0xff]   ;;  %v5269_v7 = vld [vmem:[%s7070_s0 + $0xd4] ss:$100 sps:$4 sm:$0xff]   ;;  %v5273_v9 = vld [vmem:[%s7069_s1 + $0x188] sm:$0xff]  }
  0x19   :  { %v5274_v10 = vld [vmem:[%s7070_s0 + $0xdc] ss:$100 sps:$4 sm:$0xff]   ;;  %v5272_v11 = vld [vmem:[%s7070_s0 + $0xd0] ss:$100 sps:$4 sm:$0xff]   ;;  %v5277_v13 = vld [vmem:[%s7069_s1 + $0x248] sm:$0xff]  }
  0x1a   :  { %v5276_v12 = vld [vmem:[%s7070_s0 + $0xd8] ss:$100 sps:$4 sm:$0xff]   ;;  %v5278_v14 = vld [vmem:[%s7069_s1 + $0x208] sm:$0xff]  }
  0x1b   :  { %5187 = vmatpush3.bf16.msra.mxu1 %v5204_v15  ;;  %4431 = vmatpush3.bf16.msra.mxu0 %v5204_v15  ;;  %v5279_v15 = vld [vmem:[%s7069_s1 + $0x1d0] sm:$0xff]   ;;  %v5314_v42 = vld [vmem:[%s7069_s1 + $0x268] sm:$0xff]  }
  0x1c   :  { %5180 = vmatprep.subr.bf16.mxu1 %v5205_v16  ;;  %4432 = vmatprep.subr.bf16.mxu0 %v5205_v16  ;;  %v5280_v16 = vld [vmem:[%s7070_s0 + $0x19c] ss:$100 sps:$4 sm:$0xff]  }
  0x1f   :  { %5188 = vmatpush3.bf16.msra.mxu1 %v5206_v17  ;;  %4433 = vmatpush3.bf16.msra.mxu0 %v5206_v17  ;;  %v5282_v17 = vld [vmem:[%s7069_s1 + $0x190] sm:$0xff]  }
  0x20   :  { %4476 = vmatprep.subr.bf16.mxu1 %v5210_v18  ;;  %4534 = vmatprep.subr.bf16.mxu0 %v5215_v21  ;;  %v5284_v18 = vld [vmem:[%s7070_s0 + $0x1a4] ss:$100 sps:$4 sm:$0xff]  }
  0x21   :  { %v5286_v21 = vld [vmem:[%s7070_s0 + $0x1a0] ss:$100 sps:$4 sm:$0xff]  }
  0x22   :  { %2696 = vmatmul.mubr.bf16.vlgmr.msra.gmra.mrb[0].mxu1 %v5207_v19  ;;  %2664 = vmatmul.mubr.bf16.vlgmr.msra.gmra.mrb[0].mxu0 %v5211_v20  ;;  %v5287_v19 = vld [vmem:[%s7069_s1 + $0x250] sm:$0xff]   ;;  %v5283_v20 = vld [vmem:[%s7070_s0 + $0x198] ss:$100 sps:$4 sm:$0xff]  }
  0x23   :  { %4477 = vmatpush3.bf16.msra.mxu1 %v5214_v22  ;;  %4535 = vmatpush3.bf16.msra.mxu0 %v5216_v23  ;;  %v5288_v22 = vld [vmem:[%s7069_s1 + $0x210] sm:$0xff]   ;;  %v5289_v23 = vld [vmem:[%s7069_s1 + $0x1d8] sm:$0xff]  }
  0x24   :  { %4478 = vmatprep.subr.bf16.mxu1 %v5217_v24  ;;  %4536 = vmatprep.subr.bf16.mxu0 %v5219_v25  ;;  %v5290_v24 = vld [vmem:[%s7069_s1 + $0x198] sm:$0xff]   ;;  %v5291_v25 = vld [vmem:[%s7070_s0 + $0x264] ss:$100 sps:$4 sm:$0xff]  }
  0x25   :  { %2671 = vmatprep.mubr.bf16.mxu0 %v5222_v26  ;;  %2703 = vmatprep.mubr.bf16.mxu1 %v5229_v28  ;;  %v5294_v26 = vld [vmem:[%s7070_s0 + $0x26c] ss:$100 sps:$4 sm:$0xff]   ;;  %v5298_v28 = vld [vmem:[%s7069_s1 + $0x218] sm:$0xff]  }
  0x27   :  { %4479 = vmatpush3.bf16.msra.mxu1 %v5218_v27  ;;  %4537 = vmatpush3.bf16.msra.mxu0 %v5220_v29  ;;  %v5297_v27 = vld [vmem:[%s7069_s1 + $0x258] sm:$0xff]   ;;  %v5299_v29 = vld [vmem:[%s7069_s1 + $0x1e0] sm:$0xff]  }
  0x28   :  { %4480 = vmatprep.subr.bf16.mxu1 %v5221_v30  ;;  %4538 = vmatprep.subr.bf16.mxu0 %v5226_v31  ;;  %v5293_v30 = vld [vmem:[%s7070_s0 + $0x260] ss:$100 sps:$4 sm:$0xff]  }
  0x29   :  { %v5300_v31 = vld [vmem:[%s7069_s1 + $0x1a0] sm:$0xff]  }
  0x2a   :  { %2672 = vmatmul.mubr.bf16.gmra.mrb[4].mxu0 %v5225_v33  ;;  %2704 = vmatmul.mubr.bf16.gmra.mrb[4].mxu1 %v5232_v34  ;;  %v5301_v33 = vld [vmem:[%s7070_s0 + $0x32c] ss:$100 sps:$4 sm:$0xff]   ;;  %v5304_v34 = vld [vmem:[%s7070_s0 + $0x334] ss:$100 sps:$4 sm:$0xff]  }
  0x2b   :  { %4481 = vmatpush3.bf16.msra.mxu1 %v5224_v32  ;;  %4539 = vmatpush3.bf16.msra.mxu0 %v5227_v35  ;;  %v5296_v32 = vld [vmem:[%s7070_s0 + $0x268] ss:$100 sps:$4 sm:$0xff]   ;;  %v5306_v35 = vld [vmem:[%s7069_s1 + $0x260] sm:$0xff]  }
  0x2c   :  { %4482 = vmatprep.subr.bf16.mxu1 %v5228_v36  ;;  %4540 = vmatprep.subr.bf16.mxu0 %v5233_v37  ;;  %v5308_v36 = vld [vmem:[%s7069_s1 + $0x220] sm:$0xff]   ;;  %v5309_v37 = vld [vmem:[%s7069_s1 + $0x1e8] sm:$0xff]  }
  0x2d   :  { %2679 = vmatprep.mubr.bf16.mxu0 %v5236_v39  ;;  %2711 = vmatprep.mubr.bf16.mxu1 %v4131_v44  ;;  %v5303_v39 = vld [vmem:[%s7070_s0 + $0x328] ss:$100 sps:$4 sm:$0xff]  }
  0x2e   :  { %v5317_v44 = vld [vmem:[%s7069_s1 + $0x228] sm:$0xff]  }
  0x2f   :  { %4483 = vmatpush3.bf16.msra.mxu1 %v5231_v38  ;;  %4541 = vmatpush3.bf16.msra.mxu0 %v5234_v40  ;;  %v5310_v38 = vld [vmem:[%s7069_s1 + $0x1a8] sm:$0xff]   ;;  %v5307_v40 = vld [vmem:[%s7070_s0 + $0x330] ss:$100 sps:$4 sm:$0xff]  }
  0x30   :  { %4484 = vmatprep.subr.bf16.mxu1 %v5235_v41  ;;  %4542 = vmatprep.subr.bf16.mxu0 %v5240_v43  ;;  %v5311_v41 = vld [vmem:[%s7070_s0 + $0x3f4] ss:$100 sps:$4 sm:$0xff]   ;;  %v5315_v43 = vld [vmem:[%s7070_s0 + $0x3fc] ss:$100 sps:$4 sm:$0xff]  }
  0x32   :  { %2680 = vmatmul.mubr.bf16.gmra.mrb[8].mxu0 %v5239_v46  ;;  %2712 = vmatmul.mubr.bf16.gmra.mrb[8].mxu1 %v4130_v48  ;;  %v5320_v46 = vld [vmem:[%s7069_s1 + $0x1b0] sm:$0xff]  }
  0x33   :  { %4485 = vmatpush3.bf16.msra.mxu1 %v5238_v45  ;;  %4543 = vmatpush3.bf16.msra.mxu0 %v5241_v47  ;;  %v5319_v45 = vld [vmem:[%s7069_s1 + $0x1f0] sm:$0xff]   ;;  %v175_v47 = vld [vmem:[%s7070_s0 + $0x4b8] sm:$0x11] }
  0x34   :  { %4486 = vmatprep.subr.bf16.mxu1 %v5242_v49  ;;  %4544 = vmatprep.subr.bf16.mxu0 %v5246_v50  ;;  %v5322_v48 = vld [vmem:[%s7069_s1 + $0x270] sm:$0xff]   ;;  %v5318_v50 = vld [vmem:[%s7070_s0 + $0x3f8] ss:$100 sps:$4 sm:$0xff]  }
  0x35   :  { %2687 = vmatprep.mubr.bf16.mxu0 %v5249_v52  ;;  %2751 = vmatprep.mubr.bf16.mxu1 %v5260_v61  ;;  %v5313_v49 = vld [vmem:[%s7070_s0 + $0x3f0] ss:$100 sps:$4 sm:$0xff]   ;;  %v176_v52 = vld [vmem:[%s7070_s0 + $0x4c0] sm:$0x11]  ;;  %v4132_v61 = vcombine.low %v175_v47, %v175_v47 }
  0x37   :  { %4487 = vmatpush3.bf16.msra.mxu1 %v5244_v51  ;;  %4545 = vmatpush3.bf16.msra.mxu0 %v5247_v53  ;;  %v5324_v51 = vld [vmem:[%s7069_s1 + $0x230] sm:$0xff]   ;;  %v5326_v53 = vld [vmem:[%s7069_s1 + $0x1f8] sm:$0xff]  }
  0x38   :  { %4488 = vmatprep.subr.bf16.mxu1 %v5248_v54  ;;  %4546 = vmatprep.subr.bf16.mxu0 %v5253_v55  ;;  %v5328_v54 = vld [vmem:[%s7069_s1 + $0x1b8] sm:$0xff]   ;;  %v4133_v55 = vcombine.high %v175_v47, %v175_v47 }
  0x39   :  { %v5398_v47 = vld [vmem:[%s7069_s1 + $0x2f8] sm:$0xff]  }
  0x3a   :  { %2688 = vmatmul.mubr.bf16.gmra.mrb[12].mxu0 %v5252_v57  ;;  %v5329_v57 = vld [vmem:[%s7069_s1 + $0x278] sm:$0xff]  }
  0x3b   :  { %4489 = vmatpush3.bf16.msra.mxu1 %v5251_v56  ;;  %4547 = vmatpush3.bf16.msra.mxu0 %v5254_v58  ;;  %v4135_v56 = vcombine.high %v176_v52, %v176_v52  ;;  %v5333_v58 = vld [vmem:[%s7069_s1 + $0x238] sm:$0xff]  }
  0x3c   :  { %4490 = vmatprep.subr.bf16.mxu1 %v5255_v59  ;;  %4548 = vmatprep.subr.bf16.mxu0 %v5257_v60  ;;  %v5334_v59 = vld [vmem:[%s7069_s1 + $0x2c0] sm:$0xff]  }
  0x3d   :  { %2839 = vmatprep.mubr.bf16.mxu0 %v5265_v1  ;;  %v5332_v60 = vld [vmem:[%s7070_s0 + $0x1c] ss:$100 sps:$4 sm:$0xff]  }
  0x3e   :  { %v5330_v1 = vld [vmem:[%s7070_s0 + $0x18] ss:$100 sps:$4 sm:$0xff]  }
  0x3f   :  { %4491 = vmatpush3.bf16.msra.mxu1 %v5256_v62  ;;  %4549 = vmatpush3.bf16.msra.mxu0 %v5261_v63  ;;  %v4134_v62 = vcombine.low %v176_v52, %v176_v52  ;;  %v5339_v63 = vld [vmem:[%s7069_s1 + $0x340] sm:$0xff]  }
  0x40   :  { %4592 = vmatprep.subr.bf16.mxu1 %v5262_v0  ;;  %4650 = vmatprep.subr.bf16.mxu0 %v5267_v5  ;;  %v5337_v0 = vld [vmem:[%s7070_s0 + $0x24] ss:$100 sps:$4 sm:$0xff]  }
  0x41   :  { %v5341_v5 = vld [vmem:[%s7070_s0 + $0xe4] ss:$100 sps:$4 sm:$0xff]  }
  0x42   :  { %2752 = vmatmul.mubr.bf16.vlgmr.msra.gmra.mrb[12].mxu1 %v5258_v2  ;;  %2840 = vmatmul.mubr.bf16.vlgmr.msra.gmra.mrb[16].mxu0 %v5263_v3  ;;  %v5335_v2 = vld [vmem:[%s7070_s0 + $0x20] ss:$100 sps:$4 sm:$0xff]  }
  0x43   :  { %4593 = vmatpush3.bf16.msra.mxu1 %v5266_v4  ;;  %4651 = vmatpush3.bf16.msra.mxu0 %v5268_v6  ;;  %v5338_v3 = vld [vmem:[%s7069_s1 + $0x280] sm:$0xff]   ;;  %v5343_v6 = vld [vmem:[%s7069_s1 + $0x2c8] sm:$0xff]  }
  0x44   :  { %2759 = vmatprep.mubr.bf16.mxu1 %v5269_v7  ;;  %4594 = vmatprep.subr.bf16.mxu1 %v5271_v8  ;;  %v5340_v4 = vld [vmem:[%s7069_s1 + $0x300] sm:$0xff]   ;;  %v5346_v7 = vld [vmem:[%s7070_s0 + $0xec] ss:$100 sps:$4 sm:$0xff]  }
  0x45   :  { %2847 = vmatprep.mubr.bf16.mxu0 %v5274_v10  ;;  %4652 = vmatprep.subr.bf16.mxu0 %v5277_v13  ;;  %v5349_v8 = vld [vmem:[%s7069_s1 + $0x348] sm:$0xff]   ;;  %v5406_v52 = vld [vmem:[%s7069_s1 + $0x3c0] sm:$0xff]  }
  0x46   :  { %v5350_v10 = vld [vmem:[%s7069_s1 + $0x308] sm:$0xff]  }
  0x47   :  { %4595 = vmatpush3.bf16.msra.mxu1 %v5273_v9  ;;  %4653 = vmatpush3.bf16.msra.mxu0 %v5278_v14  ;;  %v5345_v9 = vld [vmem:[%s7069_s1 + $0x288] sm:$0xff]   ;;  %v5359_v14 = vld [vmem:[%s7069_s1 + $0x350] sm:$0xff]  }
  0x48   :  { %4596 = vmatprep.subr.bf16.mxu1 %v5279_v15  ;;  %4654 = vmatprep.subr.bf16.mxu0 %v5287_v19  ;;  %v5348_v13 = vld [vmem:[%s7070_s0 + $0xe8] ss:$100 sps:$4 sm:$0xff]   ;;  %v5361_v19 = vld [vmem:[%s7069_s1 + $0x2d8] sm:$0xff]  }
  0x49   :  { %v5352_v15 = vld [vmem:[%s7070_s0 + $0x1ac] ss:$100 sps:$4 sm:$0xff]  }
  0x4a   :  { %2760 = vmatmul.mubr.bf16.gmra.mrb[16].mxu1 %v5272_v11  ;;  %2848 = vmatmul.mubr.bf16.gmra.mrb[20].mxu0 %v5276_v12  ;;  %v5351_v11 = vld [vmem:[%s7069_s1 + $0x2d0] sm:$0xff]   ;;  %v5344_v12 = vld [vmem:[%s7070_s0 + $0xe0] ss:$100 sps:$4 sm:$0xff]  }
  0x4b   :  { %2767 = vmatprep.mubr.bf16.mxu1 %v5280_v16  ;;  %4597 = vmatpush3.bf16.msra.mxu1 %v5282_v17  ;;  %v5354_v16 = vld [vmem:[%s7069_s1 + $0x290] sm:$0xff]  }
  0x4c   :  { %2855 = vmatprep.mubr.bf16.mxu0 %v5284_v18  ;;  %4655 = vmatpush3.bf16.msra.mxu0 %v5288_v22  ;;  %v5356_v17 = vld [vmem:[%s7070_s0 + $0x1b4] ss:$100 sps:$4 sm:$0xff]  }
  0x4d   :  { %4598 = vmatprep.subr.bf16.mxu1 %v5289_v23  ;;  %4656 = vmatprep.subr.bf16.mxu0 %v5297_v27  ;;  %v5360_v18 = vld [vmem:[%s7069_s1 + $0x310] sm:$0xff]   ;;  %v5370_v22 = vld [vmem:[%s7069_s1 + $0x318] sm:$0xff]   ;;  %v5355_v23 = vld [vmem:[%s7070_s0 + $0x1a8] ss:$100 sps:$4 sm:$0xff]  }
  0x4e   :  { %v5366_v27 = vld [vmem:[%s7070_s0 + $0x27c] ss:$100 sps:$4 sm:$0xff]  }
  0x4f   :  { %4599 = vmatpush3.bf16.msra.mxu1 %v5290_v24  ;;  %v5371_v24 = vld [vmem:[%s7069_s1 + $0x2e0] sm:$0xff]  }
  0x50   :  { %4657 = vmatpush3.bf16.msra.mxu0 %v5298_v28  ;;  %4600 = vmatprep.subr.bf16.mxu1 %v5299_v29  ;;  %v5372_v28 = vld [vmem:[%s7069_s1 + $0x2a0] sm:$0xff]  }
  0x51   :  { %4658 = vmatprep.subr.bf16.mxu0 %v5306_v35  ;;  %v5378_v29 = vld [vmem:[%s7069_s1 + $0x360] sm:$0xff]  }
  0x52   :  { %2768 = vmatmul.mubr.bf16.gmra.mrb[20].mxu1 %v5283_v20  ;;  %2856 = vmatmul.mubr.bf16.gmra.mrb[24].mxu0 %v5286_v21  ;;  %v5362_v20 = vld [vmem:[%s7069_s1 + $0x298] sm:$0xff]  }
  0x53   :  { %2775 = vmatprep.mubr.bf16.mxu1 %v5291_v25  ;;  %2863 = vmatprep.mubr.bf16.mxu0 %v5294_v26  ;;  %v5369_v21 = vld [vmem:[%s7069_s1 + $0x358] sm:$0xff]   ;;  %v5358_v25 = vld [vmem:[%s7070_s0 + $0x1b0] ss:$100 sps:$4 sm:$0xff]  }
  0x54   :  { %4601 = vmatpush3.bf16.msra.mxu1 %v5300_v31  ;;  %4659 = vmatpush3.bf16.msra.mxu0 %v5308_v36  ;;  %v5363_v26 = vld [vmem:[%s7070_s0 + $0x274] ss:$100 sps:$4 sm:$0xff]   ;;  %v5381_v31 = vld [vmem:[%s7069_s1 + $0x2e8] sm:$0xff]   ;;  %v5373_v35 = vld [vmem:[%s7070_s0 + $0x33c] ss:$100 sps:$4 sm:$0xff]  }
  0x55   :  { %4602 = vmatprep.subr.bf16.mxu1 %v5309_v37  ;;  %4660 = vmatprep.subr.bf16.mxu0 %v5314_v42  ;;  %v5386_v36 = vld [vmem:[%s7069_s1 + $0x368] sm:$0xff]   ;;  %v5379_v42 = vld [vmem:[%s7070_s0 + $0x340] ss:$100 sps:$4 sm:$0xff]  }
  0x56   :  { %v5376_v37 = vld [vmem:[%s7070_s0 + $0x344] ss:$100 sps:$4 sm:$0xff]  }
  0x58   :  { %4603 = vmatpush3.bf16.msra.mxu1 %v5310_v38  ;;  %4661 = vmatpush3.bf16.msra.mxu0 %v5317_v44  ;;  %v5389_v38 = vld [vmem:[%s7069_s1 + $0x328] sm:$0xff]  }
  0x59   :  { %4604 = vmatprep.subr.bf16.mxu1 %v5319_v45  ;;  %4662 = vmatprep.subr.bf16.mxu0 %v5322_v48  ;;  %v5383_v44 = vld [vmem:[%s7070_s0 + $0x404] ss:$100 sps:$4 sm:$0xff]   ;;  %v5387_v45 = vld [vmem:[%s7070_s0 + $0x40c] ss:$100 sps:$4 sm:$0xff]   ;;  %v5400_v48 = vld [vmem:[%s7069_s1 + $0x2b8] sm:$0xff]  }
  0x5a   :  { %2776 = vmatmul.mubr.bf16.gmra.mrb[24].mxu1 %v5293_v30  ;;  %2864 = vmatmul.mubr.bf16.gmra.mrb[28].mxu0 %v5296_v32  ;;  %v5380_v30 = vld [vmem:[%s7069_s1 + $0x320] sm:$0xff]   ;;  %v5365_v32 = vld [vmem:[%s7070_s0 + $0x270] ss:$100 sps:$4 sm:$0xff]  }
  0x5b   :  { %2783 = vmatprep.mubr.bf16.mxu1 %v5301_v33  ;;  %2871 = vmatprep.mubr.bf16.mxu0 %v5304_v34  ;;  %v5382_v33 = vld [vmem:[%s7069_s1 + $0x2a8] sm:$0xff]   ;;  %v5368_v34 = vld [vmem:[%s7070_s0 + $0x278] ss:$100 sps:$4 sm:$0xff]  }
  0x5c   :  { %4605 = vmatpush3.bf16.msra.mxu1 %v5320_v46  ;;  %4663 = vmatpush3.bf16.msra.mxu0 %v5324_v51  ;;  %v5396_v46 = vld [vmem:[%s7069_s1 + $0x330] sm:$0xff]   ;;  %v5405_v51 = vld [vmem:[%s7069_s1 + $0x338] sm:$0xff]  }
  0x5d   :  { %4606 = vmatprep.subr.bf16.mxu1 %v5326_v53  ;;  %4664 = vmatprep.subr.bf16.mxu0 %v5329_v57  ;;  %v178_v53 = vld [vmem:[%s7070_s0 + $0x4d0] sm:$0x11] }
  0x5e   :  { %v4139_v57 = vcombine.high %v178_v53, %v178_v53 }
  0x60   :  { %4607 = vmatpush3.bf16.msra.mxu1 %v5328_v54  ;;  %4665 = vmatpush3.bf16.msra.mxu0 %v5333_v58  ;;  %v5385_v54 = vld [vmem:[%s7070_s0 + $0x400] ss:$100 sps:$4 sm:$0xff]  }
  0x61   :  { %4708 = vmatprep.subr.bf16.mxu1 %v5334_v59  ;;  %4766 = vmatprep.subr.bf16.mxu0 %v5339_v63  ;;  %v5411_v58 = vld [vmem:[%s7069_s1 + $0x440] sm:$0xff]   ;;  %v5402_v63 = vld [vmem:[%s7070_s0 + $0x28] ss:$100 sps:$4 sm:$0xff]  }
  0x62   :  { %2784 = vmatmul.mubr.bf16.gmra.mrb[28].mxu1 %v5303_v39  ;;  %2872 = vmatmul.mubr.bf16.gmra.mrb[32].mxu0 %v5307_v40  ;;  %v5391_v39 = vld [vmem:[%s7069_s1 + $0x2f0] sm:$0xff]  }
  0x63   :  { %2791 = vmatprep.mubr.bf16.mxu1 %v5311_v41  ;;  %2879 = vmatprep.mubr.bf16.mxu0 %v5315_v43  ;;  %v5392_v40 = vld [vmem:[%s7069_s1 + $0x2b0] sm:$0xff]   ;;  %v5375_v41 = vld [vmem:[%s7070_s0 + $0x338] ss:$100 sps:$4 sm:$0xff]  }
  0x64   :  { %v5394_v43 = vld [vmem:[%s7069_s1 + $0x370] sm:$0xff]  }
  0x6a   :  { %2792 = vmatmul.mubr.bf16.gmra.mrb[32].mxu1 %v5313_v49  ;;  %2880 = vmatmul.mubr.bf16.gmra.mrb[36].mxu0 %v5318_v50  ;;  %v5401_v49 = vld [vmem:[%s7069_s1 + $0x378] sm:$0xff]   ;;  %v177_v50 = vld [vmem:[%s7070_s0 + $0x4c8] sm:$0x11] }
  0x6b   :  { %2799 = vmatprep.mubr.bf16.mxu1 %v4133_v55  ;;  %2887 = vmatprep.mubr.bf16.mxu0 %v4135_v56  ;;  %v5390_v55 = vld [vmem:[%s7070_s0 + $0x408] ss:$100 sps:$4 sm:$0xff]   ;;  %v4137_v56 = vcombine.high %v177_v50, %v177_v50  ;;  %v4136_v59 = vcombine.low %v177_v50, %v177_v50  ;;  %v5483_v50 = vld [vmem:[%s7069_s1 + $0x540] sm:$0xff]  }
  0x72   :  { %2800 = vmatmul.mubr.bf16.gmra.mrb[36].mxu1 %v4132_v61  ;;  %2888 = vmatmul.mubr.bf16.gmra.mrb[40].mxu0 %v4134_v62  ;;  %v5404_v61 = vld [vmem:[%s7070_s0 + $0x2c] ss:$100 sps:$4 sm:$0xff]   ;;  %v5409_v62 = vld [vmem:[%s7070_s0 + $0x34] ss:$100 sps:$4 sm:$0xff]  }
  0x73   :  { %2927 = vmatprep.mubr.bf16.mxu1 %v5332_v60  ;;  %3015 = vmatprep.mubr.bf16.mxu0 %v5337_v0  ;;  %v4138_v60 = vcombine.low %v178_v53, %v178_v53  ;;  %v5407_v0 = vld [vmem:[%s7070_s0 + $0x30] ss:$100 sps:$4 sm:$0xff]  }
  0x74   :  { %v5457_v53 = vld [vmem:[%s7070_s0 + $0x410] ss:$100 sps:$4 sm:$0xff]  }
  0x7a   :  { %2928 = vmatmul.mubr.bf16.vlgmr.msra.gmra.mrb[40].mxu1 %v5330_v1  ;;  %3016 = vmatmul.mubr.bf16.vlgmr.msra.gmra.mrb[44].mxu0 %v5335_v2  ;;  %v5410_v1 = vld [vmem:[%s7069_s1 + $0x380] sm:$0xff]  }
  0x7b   :  { %4709 = vmatpush3.bf16.msra.mxu1 %v5338_v3  ;;  %4767 = vmatpush3.bf16.msra.mxu0 %v5340_v4  ;;  %v5412_v2 = vld [vmem:[%s7069_s1 + $0x400] sm:$0xff]   ;;  %v5413_v3 = vld [vmem:[%s7070_s0 + $0xf4] ss:$100 sps:$4 sm:$0xff]   ;;  %v5415_v4 = vld [vmem:[%s7069_s1 + $0x3c8] sm:$0xff]  }
  0x7c   :  { %2935 = vmatprep.mubr.bf16.mxu1 %v5341_v5  ;;  %4710 = vmatprep.subr.bf16.mxu1 %v5343_v6  ;;  %v5418_v5 = vld [vmem:[%s7070_s0 + $0xfc] ss:$100 sps:$4 sm:$0xff]   ;;  %v5417_v6 = vld [vmem:[%s7069_s1 + $0x388] sm:$0xff]  }
  0x7d   :  { %3023 = vmatprep.mubr.bf16.mxu0 %v5346_v7  ;;  %4768 = vmatprep.subr.bf16.mxu0 %v5349_v8  ;;  %v5421_v7 = vld [vmem:[%s7069_s1 + $0x448] sm:$0xff]  }
  0x7e   :  { %v5422_v8 = vld [vmem:[%s7069_s1 + $0x408] sm:$0xff]  }
  0x7f   :  { %4711 = vmatpush3.bf16.msra.mxu1 %v5345_v9  ;;  %4769 = vmatpush3.bf16.msra.mxu0 %v5350_v10  ;;  %v5423_v9 = vld [vmem:[%s7069_s1 + $0x3d0] sm:$0xff]  }
  0x80   :  { %4712 = vmatprep.subr.bf16.mxu1 %v5351_v11  ;;  %4770 = vmatprep.subr.bf16.mxu0 %v5359_v14  ;;  %v5416_v10 = vld [vmem:[%s7070_s0 + $0xf0] ss:$100 sps:$4 sm:$0xff]  }
  0x81   :  { %v5431_v11 = vld [vmem:[%s7069_s1 + $0x450] sm:$0xff]  }
  0x82   :  { %2936 = vmatmul.mubr.bf16.gmra.mrb[44].mxu1 %v5344_v12  ;;  %3024 = vmatmul.mubr.bf16.gmra.mrb[48].mxu0 %v5348_v13  ;;  %v5420_v12 = vld [vmem:[%s7070_s0 + $0xf8] ss:$100 sps:$4 sm:$0xff]   ;;  %v5426_v14 = vld [vmem:[%s7069_s1 + $0x390] sm:$0xff]  }
  0x83   :  { %2943 = vmatprep.mubr.bf16.mxu1 %v5352_v15  ;;  %4713 = vmatpush3.bf16.msra.mxu1 %v5354_v16  ;;  %v5424_v13 = vld [vmem:[%s7070_s0 + $0x1bc] ss:$100 sps:$4 sm:$0xff]   ;;  %v5428_v15 = vld [vmem:[%s7070_s0 + $0x1c4] ss:$100 sps:$4 sm:$0xff]   ;;  %v5432_v16 = vld [vmem:[%s7069_s1 + $0x410] sm:$0xff]  }
  0x84   :  { %3031 = vmatprep.mubr.bf16.mxu0 %v5356_v17  ;;  %4771 = vmatpush3.bf16.msra.mxu0 %v5360_v18  ;;  %v5433_v17 = vld [vmem:[%s7069_s1 + $0x3d8] sm:$0xff]  }
  0x85   :  { %4714 = vmatprep.subr.bf16.mxu1 %v5361_v19  ;;  %4772 = vmatprep.subr.bf16.mxu0 %v5369_v21  ;;  %v5441_v18 = vld [vmem:[%s7069_s1 + $0x458] sm:$0xff]  }
  0x86   :  { %v5434_v19 = vld [vmem:[%s7069_s1 + $0x398] sm:$0xff]  }
  0x87   :  { %4715 = vmatpush3.bf16.msra.mxu1 %v5362_v20  ;;  %v5442_v20 = vld [vmem:[%s7069_s1 + $0x418] sm:$0xff]  }
  0x88   :  { %4773 = vmatpush3.bf16.msra.mxu0 %v5370_v22  ;;  %4716 = vmatprep.subr.bf16.mxu1 %v5371_v24  ;;  %v5427_v21 = vld [vmem:[%s7070_s0 + $0x1b8] ss:$100 sps:$4 sm:$0xff]   ;;  %v5430_v22 = vld [vmem:[%s7070_s0 + $0x1c0] ss:$100 sps:$4 sm:$0xff]  }
  0x89   :  { %4774 = vmatprep.subr.bf16.mxu0 %v5378_v29  ;;  %v5435_v24 = vld [vmem:[%s7070_s0 + $0x284] ss:$100 sps:$4 sm:$0xff]  }
  0x8a   :  { %2944 = vmatmul.mubr.bf16.gmra.mrb[48].mxu1 %v5355_v23  ;;  %3032 = vmatmul.mubr.bf16.gmra.mrb[52].mxu0 %v5358_v25  ;;  %v5443_v23 = vld [vmem:[%s7069_s1 + $0x3e0] sm:$0xff]   ;;  %v5453_v29 = vld [vmem:[%s7069_s1 + $0x3e8] sm:$0xff]  }
  0x8b   :  { %2951 = vmatprep.mubr.bf16.mxu1 %v5363_v26  ;;  %3039 = vmatprep.mubr.bf16.mxu0 %v5366_v27  ;;  %v5450_v25 = vld [vmem:[%s7069_s1 + $0x460] sm:$0xff]   ;;  %v5438_v26 = vld [vmem:[%s7070_s0 + $0x28c] ss:$100 sps:$4 sm:$0xff]  }
  0x8c   :  { %4717 = vmatpush3.bf16.msra.mxu1 %v5372_v28  ;;  %4775 = vmatpush3.bf16.msra.mxu0 %v5380_v30  ;;  %v5444_v27 = vld [vmem:[%s7069_s1 + $0x3a0] sm:$0xff]   ;;  %v5458_v30 = vld [vmem:[%s7069_s1 + $0x468] sm:$0xff]  }
  0x8d   :  { %4718 = vmatprep.subr.bf16.mxu1 %v5381_v31  ;;  %4776 = vmatprep.subr.bf16.mxu0 %v5386_v36  ;;  %v5452_v28 = vld [vmem:[%s7069_s1 + $0x420] sm:$0xff]   ;;  %v5454_v31 = vld [vmem:[%s7069_s1 + $0x3a8] sm:$0xff]  }
  0x8e   :  { %v5445_v36 = vld [vmem:[%s7070_s0 + $0x34c] ss:$100 sps:$4 sm:$0xff]  }
  0x90   :  { %4719 = vmatpush3.bf16.msra.mxu1 %v5382_v33  ;;  %4777 = vmatpush3.bf16.msra.mxu0 %v5389_v38  ;;  %v5437_v33 = vld [vmem:[%s7070_s0 + $0x280] ss:$100 sps:$4 sm:$0xff]   ;;  %v5466_v38 = vld [vmem:[%s7069_s1 + $0x470] sm:$0xff]  }
  0x91   :  { %4720 = vmatprep.subr.bf16.mxu1 %v5391_v39  ;;  %4778 = vmatprep.subr.bf16.mxu0 %v5394_v43  ;;  %v5464_v39 = vld [vmem:[%s7069_s1 + $0x3b0] sm:$0xff]   ;;  %v5472_v43 = vld [vmem:[%s7069_s1 + $0x3b8] sm:$0xff]  }
  0x92   :  { %2952 = vmatmul.mubr.bf16.gmra.mrb[52].mxu1 %v5365_v32  ;;  %3040 = vmatmul.mubr.bf16.gmra.mrb[56].mxu0 %v5368_v34  ;;  %v5461_v32 = vld [vmem:[%s7069_s1 + $0x428] sm:$0xff]  }
  0x93   :  { %2959 = vmatprep.mubr.bf16.mxu1 %v5373_v35  ;;  %3047 = vmatprep.mubr.bf16.mxu0 %v5376_v37  ;;  %v5440_v34 = vld [vmem:[%s7070_s0 + $0x288] ss:$100 sps:$4 sm:$0xff]   ;;  %v5463_v35 = vld [vmem:[%s7069_s1 + $0x3f0] sm:$0xff]  }
  0x94   :  { %4721 = vmatpush3.bf16.msra.mxu1 %v5392_v40  ;;  %4779 = vmatpush3.bf16.msra.mxu0 %v5396_v46  ;;  %v5448_v37 = vld [vmem:[%s7070_s0 + $0x354] ss:$100 sps:$4 sm:$0xff]  }
  0x95   :  { %4722 = vmatprep.subr.bf16.mxu1 %v5398_v47  ;;  %4780 = vmatprep.subr.bf16.mxu0 %v5401_v49  ;;  %v5468_v40 = vld [vmem:[%s7069_s1 + $0x430] sm:$0xff]   ;;  %v5477_v46 = vld [vmem:[%s7069_s1 + $0x438] sm:$0xff]  }
  0x96   :  { %v5455_v47 = vld [vmem:[%s7070_s0 + $0x414] ss:$100 sps:$4 sm:$0xff]   ;;  %v5459_v49 = vld [vmem:[%s7070_s0 + $0x41c] ss:$100 sps:$4 sm:$0xff]  }
  0x98   :  { %4723 = vmatpush3.bf16.msra.mxu1 %v5400_v48  ;;  %4781 = vmatpush3.bf16.msra.mxu0 %v5405_v51  ;;  %v5478_v48 = vld [vmem:[%s7069_s1 + $0x4c0] sm:$0xff]   ;;  %v179_v51 = vld [vmem:[%s7070_s0 + $0x4d8] sm:$0x11] }
  0x99   :  { %4824 = vmatprep.subr.bf16.mxu1 %v5406_v52  ;;  %4882 = vmatprep.subr.bf16.mxu0 %v5411_v58  ;;  %v180_v52 = vld [vmem:[%s7070_s0 + $0x4e0] sm:$0x11] }
  0x9a   :  { %2960 = vmatmul.mubr.bf16.gmra.mrb[56].mxu1 %v5375_v41  ;;  %3048 = vmatmul.mubr.bf16.gmra.mrb[60].mxu0 %v5379_v42  ;;  %v5470_v41 = vld [vmem:[%s7069_s1 + $0x3f8] sm:$0xff]   ;;  %v4142_v58 = vcombine.low %v180_v52, %v180_v52 }
  0x9b   :  { %2967 = vmatprep.mubr.bf16.mxu1 %v5383_v44  ;;  %3055 = vmatprep.mubr.bf16.mxu0 %v5387_v45  ;;  %v5473_v42 = vld [vmem:[%s7069_s1 + $0x478] sm:$0xff]   ;;  %v5447_v44 = vld [vmem:[%s7070_s0 + $0x348] ss:$100 sps:$4 sm:$0xff]   ;;  %v5451_v45 = vld [vmem:[%s7070_s0 + $0x350] ss:$100 sps:$4 sm:$0xff]  }
  0xa2   :  { %2968 = vmatmul.mubr.bf16.gmra.mrb[60].mxu1 %v5385_v54  ;;  %3056 = vmatmul.mubr.bf16.gmra.mrb[64].mxu0 %v5390_v55  ;;  %v5462_v54 = vld [vmem:[%s7070_s0 + $0x418] ss:$100 sps:$4 sm:$0xff]   ;;  %v4141_v55 = vcombine.high %v179_v51, %v179_v51 }
  0xa3   :  { %2975 = vmatprep.mubr.bf16.mxu1 %v4137_v56  ;;  %3063 = vmatprep.mubr.bf16.mxu0 %v4139_v57  ;;  %v4143_v56 = vcombine.high %v180_v52, %v180_v52  ;;  %v4140_v57 = vcombine.low %v179_v51, %v179_v51  ;;  %v5520_v52 = vld [vmem:[%s7070_s0 + $0x364] ss:$100 sps:$4 sm:$0xff]  }
  0xaa   :  { %2976 = vmatmul.mubr.bf16.gmra.mrb[64].mxu1 %v4136_v59  ;;  %3064 = vmatmul.mubr.bf16.gmra.mrb[68].mxu0 %v4138_v60  ;;  %v5476_v59 = vld [vmem:[%s7070_s0 + $0x3c] ss:$100 sps:$4 sm:$0xff]   ;;  %v5481_v60 = vld [vmem:[%s7070_s0 + $0x44] ss:$100 sps:$4 sm:$0xff]  }
  0xab   :  { %3103 = vmatprep.mubr.bf16.mxu1 %v5404_v61  ;;  %3191 = vmatprep.mubr.bf16.mxu0 %v5409_v62  ;;  %v5474_v61 = vld [vmem:[%s7070_s0 + $0x38] ss:$100 sps:$4 sm:$0xff]   ;;  %v5479_v62 = vld [vmem:[%s7070_s0 + $0x40] ss:$100 sps:$4 sm:$0xff]  }
  0xb2   :  { %3104 = vmatmul.mubr.bf16.vlgmr.msra.gmra.mrb[68].mxu1 %v5402_v63  ;;  %3192 = vmatmul.mubr.bf16.vlgmr.msra.gmra.mrb[72].mxu0 %v5407_v0  ;;  %v5482_v63 = vld [vmem:[%s7069_s1 + $0x480] sm:$0xff]  }
  0xb3   :  { %4825 = vmatpush3.bf16.msra.mxu1 %v5410_v1  ;;  %4883 = vmatpush3.bf16.msra.mxu0 %v5412_v2  ;;  %v5484_v0 = vld [vmem:[%s7069_s1 + $0x500] sm:$0xff]   ;;  %v5487_v2 = vld [vmem:[%s7069_s1 + $0x4c8] sm:$0xff]  }
  0xb4   :  { %3111 = vmatprep.mubr.bf16.mxu1 %v5413_v3  ;;  %4826 = vmatprep.subr.bf16.mxu1 %v5415_v4  ;;  %v5485_v1 = vld [vmem:[%s7070_s0 + $0x104] ss:$100 sps:$4 sm:$0xff]   ;;  %v5490_v3 = vld [vmem:[%s7070_s0 + $0x10c] ss:$100 sps:$4 sm:$0xff]  }
  0xb5   :  { %3199 = vmatprep.mubr.bf16.mxu0 %v5418_v5  ;;  %4884 = vmatprep.subr.bf16.mxu0 %v5421_v7  ;;  %v5493_v4 = vld [vmem:[%s7069_s1 + $0x548] sm:$0xff]   ;;  %v5495_v7 = vld [vmem:[%s7069_s1 + $0x4d0] sm:$0xff]  }
  0xb6   :  { %v5489_v5 = vld [vmem:[%s7069_s1 + $0x488] sm:$0xff]  }
  0xb7   :  { %4827 = vmatpush3.bf16.msra.mxu1 %v5417_v6  ;;  %4885 = vmatpush3.bf16.msra.mxu0 %v5422_v8  ;;  %v5494_v6 = vld [vmem:[%s7069_s1 + $0x508] sm:$0xff]   ;;  %v5488_v8 = vld [vmem:[%s7070_s0 + $0x100] ss:$100 sps:$4 sm:$0xff]  }
  0xb8   :  { %4828 = vmatprep.subr.bf16.mxu1 %v5423_v9  ;;  %4886 = vmatprep.subr.bf16.mxu0 %v5431_v11  ;;  %v5492_v9 = vld [vmem:[%s7070_s0 + $0x108] ss:$100 sps:$4 sm:$0xff]  }
  0xb9   :  { %v5496_v11 = vld [vmem:[%s7070_s0 + $0x1cc] ss:$100 sps:$4 sm:$0xff]  }
  0xba   :  { %3112 = vmatmul.mubr.bf16.gmra.mrb[72].mxu1 %v5416_v10  ;;  %3200 = vmatmul.mubr.bf16.gmra.mrb[76].mxu0 %v5420_v12  ;;  %v5503_v10 = vld [vmem:[%s7069_s1 + $0x550] sm:$0xff]  }
  0xbb   :  { %3119 = vmatprep.mubr.bf16.mxu1 %v5424_v13  ;;  %4829 = vmatpush3.bf16.msra.mxu1 %v5426_v14  ;;  %v5498_v12 = vld [vmem:[%s7069_s1 + $0x490] sm:$0xff]  }
  0xbc   :  { %3207 = vmatprep.mubr.bf16.mxu0 %v5428_v15  ;;  %4887 = vmatpush3.bf16.msra.mxu0 %v5432_v16  ;;  %v5500_v13 = vld [vmem:[%s7070_s0 + $0x1d4] ss:$100 sps:$4 sm:$0xff]  }
  0xbd   :  { %4830 = vmatprep.subr.bf16.mxu1 %v5433_v17  ;;  %4888 = vmatprep.subr.bf16.mxu0 %v5441_v18  ;;  %v5504_v14 = vld [vmem:[%s7069_s1 + $0x510] sm:$0xff]   ;;  %v5505_v15 = vld [vmem:[%s7069_s1 + $0x4d8] sm:$0xff]   ;;  %v5499_v18 = vld [vmem:[%s7070_s0 + $0x1c8] ss:$100 sps:$4 sm:$0xff]  }
  0xbe   :  { %v5513_v16 = vld [vmem:[%s7069_s1 + $0x558] sm:$0xff]  }
  0xbf   :  { %4831 = vmatpush3.bf16.msra.mxu1 %v5434_v19  ;;  %v5506_v17 = vld [vmem:[%s7069_s1 + $0x498] sm:$0xff]   ;;  %v5502_v19 = vld [vmem:[%s7070_s0 + $0x1d0] ss:$100 sps:$4 sm:$0xff]  }
  0xc0   :  { %4889 = vmatpush3.bf16.msra.mxu0 %v5442_v20  ;;  %4832 = vmatprep.subr.bf16.mxu1 %v5443_v23  ;;  %v5514_v20 = vld [vmem:[%s7069_s1 + $0x518] sm:$0xff]  }
  0xc1   :  { %4890 = vmatprep.subr.bf16.mxu0 %v5450_v25  ;;  %v5510_v25 = vld [vmem:[%s7070_s0 + $0x29c] ss:$100 sps:$4 sm:$0xff]  }
  0xc2   :  { %3120 = vmatmul.mubr.bf16.gmra.mrb[76].mxu1 %v5427_v21  ;;  %3208 = vmatmul.mubr.bf16.gmra.mrb[80].mxu0 %v5430_v22  ;;  %v5515_v21 = vld [vmem:[%s7069_s1 + $0x4e0] sm:$0xff]  }
  0xc3   :  { %3127 = vmatprep.mubr.bf16.mxu1 %v5435_v24  ;;  %3215 = vmatprep.mubr.bf16.mxu0 %v5438_v26  ;;  %v5507_v24 = vld [vmem:[%s7070_s0 + $0x294] ss:$100 sps:$4 sm:$0xff]   ;;  %v5522_v26 = vld [vmem:[%s7069_s1 + $0x560] sm:$0xff]  }
  0xc4   :  { %4833 = vmatpush3.bf16.msra.mxu1 %v5444_v27  ;;  %4891 = vmatpush3.bf16.msra.mxu0 %v5452_v28 }
  0xc5   :  { %4834 = vmatprep.subr.bf16.mxu1 %v5453_v29  ;;  %4892 = vmatprep.subr.bf16.mxu0 %v5458_v30 }
  0xc8   :  { %4835 = vmatpush3.bf16.msra.mxu1 %v5454_v31  ;;  %4893 = vmatpush3.bf16.msra.mxu0 %v5461_v32 }
  0xc9   :  { %4836 = vmatprep.subr.bf16.mxu1 %v5463_v35  ;;  %4894 = vmatprep.subr.bf16.mxu0 %v5466_v38  ;;  %v5530_v38 = vld [vmem:[%s7069_s1 + $0x568] sm:$0xff]  }
  0xca   :  { %3128 = vmatmul.mubr.bf16.gmra.mrb[80].mxu1 %v5437_v33  ;;  %3216 = vmatmul.mubr.bf16.gmra.mrb[84].mxu0 %v5440_v34  ;;  %v5516_v33 = vld [vmem:[%s7069_s1 + $0x4a0] sm:$0xff]  }
  0xcb   :  { %3135 = vmatprep.mubr.bf16.mxu1 %v5445_v36  ;;  %3223 = vmatprep.mubr.bf16.mxu0 %v5448_v37  ;;  %v5524_v34 = vld [vmem:[%s7069_s1 + $0x520] sm:$0xff]   ;;  %v5525_v37 = vld [vmem:[%s7069_s1 + $0x4e8] sm:$0xff]  }
  0xcc   :  { %4837 = vmatpush3.bf16.msra.mxu1 %v5464_v39  ;;  %4895 = vmatpush3.bf16.msra.mxu0 %v5468_v40 }
  0xcd   :  { %4838 = vmatprep.subr.bf16.mxu1 %v5470_v41  ;;  %4896 = vmatprep.subr.bf16.mxu0 %v5473_v42  ;;  %v5526_v41 = vld [vmem:[%s7069_s1 + $0x4a8] sm:$0xff]  }
  0xce   :  { %v5533_v42 = vld [vmem:[%s7069_s1 + $0x528] sm:$0xff]  }
  0xd0   :  { %4839 = vmatpush3.bf16.msra.mxu1 %v5472_v43  ;;  %4897 = vmatpush3.bf16.msra.mxu0 %v5477_v46  ;;  %v5535_v43 = vld [vmem:[%s7069_s1 + $0x4f0] sm:$0xff]  }
  0xd1   :  { %4940 = vmatprep.subr.bf16.mxu1 %v5478_v48  ;;  %4998 = vmatprep.subr.bf16.mxu0 %v5483_v50  ;;  %v5538_v46 = vld [vmem:[%s7069_s1 + $0x570] sm:$0xff]  }
  0xd2   :  { %3136 = vmatmul.mubr.bf16.gmra.mrb[84].mxu1 %v5447_v44  ;;  %3224 = vmatmul.mubr.bf16.gmra.mrb[88].mxu0 %v5451_v45  ;;  %v5509_v44 = vld [vmem:[%s7070_s0 + $0x290] ss:$100 sps:$4 sm:$0xff]   ;;  %v5512_v45 = vld [vmem:[%s7070_s0 + $0x298] ss:$100 sps:$4 sm:$0xff]  }
  0xd3   :  { %3143 = vmatprep.mubr.bf16.mxu1 %v5455_v47  ;;  %3231 = vmatprep.mubr.bf16.mxu0 %v5459_v49  ;;  %v5517_v49 = vld [vmem:[%s7070_s0 + $0x35c] ss:$100 sps:$4 sm:$0xff]  }
  0xda   :  { %3144 = vmatmul.mubr.bf16.gmra.mrb[88].mxu1 %v5457_v53  ;;  %3232 = vmatmul.mubr.bf16.gmra.mrb[92].mxu0 %v5462_v54 }
  0xdb   :  { %3151 = vmatprep.mubr.bf16.mxu1 %v4141_v55  ;;  %3239 = vmatprep.mubr.bf16.mxu0 %v4143_v56 }
  0xe2   :  { %3152 = vmatmul.mubr.bf16.gmra.mrb[92].mxu1 %v4140_v57  ;;  %3240 = vmatmul.mubr.bf16.gmra.mrb[96].mxu0 %v4142_v58  ;;  %v5536_v57 = vld [vmem:[%s7069_s1 + $0x4b0] sm:$0xff]  }
  0xe3   :  { %3279 = vmatprep.mubr.bf16.mxu1 %v5476_v59  ;;  %3367 = vmatprep.mubr.bf16.mxu0 %v5481_v60  ;;  %v5540_v58 = vld [vmem:[%s7069_s1 + $0x530] sm:$0xff]   ;;  %v5542_v59 = vld [vmem:[%s7069_s1 + $0x4f8] sm:$0xff]  }
  0xea   :  { %3280 = vmatmul.mubr.bf16.vlgmr.msra.gmra.mrb[96].mxu1 %v5474_v61  ;;  %3368 = vmatmul.mubr.bf16.vlgmr.msra.gmra.mrb[100].mxu0 %v5479_v62 }
  0xeb   :  { %4941 = vmatpush3.bf16.msra.mxu1 %v5482_v63  ;;  %4999 = vmatpush3.bf16.msra.mxu0 %v5484_v0  ;;  %v5545_v0 = vld [vmem:[%s7069_s1 + $0x578] sm:$0xff]  }
  0xec   :  { %3287 = vmatprep.mubr.bf16.mxu1 %v5485_v1  ;;  %4942 = vmatprep.subr.bf16.mxu1 %v5487_v2  ;;  %v5519_v1 = vld [vmem:[%s7070_s0 + $0x358] ss:$100 sps:$4 sm:$0xff]   ;;  %v5523_v2 = vld [vmem:[%s7070_s0 + $0x360] ss:$100 sps:$4 sm:$0xff]  }
  0xed   :  { %3375 = vmatprep.mubr.bf16.mxu0 %v5490_v3  ;;  %5000 = vmatprep.subr.bf16.mxu0 %v5493_v4  ;;  %v5544_v3 = vld [vmem:[%s7069_s1 + $0x4b8] sm:$0xff]  }
  0xee   :  { %v5549_v4 = vld [vmem:[%s7069_s1 + $0x538] sm:$0xff]  }
  0xef   :  { %4943 = vmatpush3.bf16.msra.mxu1 %v5489_v5  ;;  %5001 = vmatpush3.bf16.msra.mxu0 %v5494_v6 }
  0xf0   :  { %4944 = vmatprep.subr.bf16.mxu1 %v5495_v7  ;;  %5002 = vmatprep.subr.bf16.mxu0 %v5503_v10  ;;  %v5550_v7 = vld [vmem:[%s7069_s1 + $0x5c0] sm:$0xff]  }
  0xf1   :  { %v5527_v10 = vld [vmem:[%s7070_s0 + $0x424] ss:$100 sps:$4 sm:$0xff]  }
  0xf2   :  { %3288 = vmatmul.mubr.bf16.gmra.mrb[100].mxu1 %v5488_v8  ;;  %3376 = vmatmul.mubr.bf16.gmra.mrb[104].mxu0 %v5492_v9 }
  0xf3   :  { %3295 = vmatprep.mubr.bf16.mxu1 %v5496_v11  ;;  %4945 = vmatpush3.bf16.msra.mxu1 %v5498_v12 }
  0xf4   :  { %3383 = vmatprep.mubr.bf16.mxu0 %v5500_v13  ;;  %5003 = vmatpush3.bf16.msra.mxu0 %v5504_v14 }
  0xf5   :  { %v4458_v22 = vpop.f32.mrb[0].mxu1  ;;  %v4434_v23 = vpop.f32.mrb[0].mxu0  ;;  %4946 = vmatprep.subr.bf16.mxu1 %v5505_v15  ;;  %5004 = vmatprep.subr.bf16.mxu0 %v5513_v16  ;;  %v5531_v15 = vld [vmem:[%s7070_s0 + $0x42c] ss:$100 sps:$4 sm:$0xff]  }
  0xf6   :  { %v4459_v27 = vpop.f32.mrb[1].mxu1  ;;  %v4435_v28 = vpop.f32.mrb[1].mxu0 }
  0xf7   :  { %v6468_v29 = vadd.f32 %v4459_v27, %v4458_v22  ;;  %v4461_v30 = vpop.f32.mrb[2].mxu1  ;;  %v6470_v31 = vadd.f32 %v4435_v28, %v4434_v23  ;;  %v4437_v32 = vpop.f32.mrb[2].mxu0  ;;  %4947 = vmatpush3.bf16.msra.mxu1 %v5506_v17  ;;  %v182_v22 = vld [vmem:[%s7070_s0 + $0x4f0] sm:$0x11] }
  0xf8   :  { %v4462_v35 = vpop.f32.mrb[3].mxu1  ;;  %v4438_v36 = vpop.f32.mrb[3].mxu0  ;;  %5005 = vmatpush3.bf16.msra.mxu0 %v5514_v20  ;;  %4948 = vmatprep.subr.bf16.mxu1 %v5515_v21  ;;  %v181_v20 = vld [vmem:[%s7070_s0 + $0x4e8] sm:$0x11]  ;;  %v5529_v21 = vld [vmem:[%s7070_s0 + $0x420] ss:$100 sps:$4 sm:$0xff]  }
  0xf9   :  { %v6484_v39 = vadd.f32 %v4462_v35, %v4461_v30  ;;  %v6486_v40 = vadd.f32 %v4438_v36, %v4437_v32  ;;  %5006 = vmatprep.subr.bf16.mxu0 %v5522_v26  ;;  %v4145_v28 = vcombine.high %v181_v20, %v181_v20  ;;  %v4147_v30 = vcombine.high %v182_v22, %v182_v22 }
  0xfa   :  { %3296 = vmatmul.mubr.bf16.gmra.mrb[104].mxu1 %v5499_v18  ;;  %3384 = vmatmul.mubr.bf16.gmra.mrb[108].mxu0 %v5502_v19  ;;  %v5640_v19 = vmov 0.0  }
  0xfb   :  { %3303 = vmatprep.mubr.bf16.mxu1 %v5507_v24  ;;  %3391 = vmatprep.mubr.bf16.mxu0 %v5510_v25  ;;  %v5534_v24 = vld [vmem:[%s7070_s0 + $0x428] ss:$100 sps:$4 sm:$0xff]  }
  0xfc   :  { %4949 = vmatpush3.bf16.msra.mxu1 %v5516_v33  ;;  %5007 = vmatpush3.bf16.msra.mxu0 %v5524_v34 }
  0xfd   :  { %v4440_v47 = vpop.f32.mrb[4].mxu0  ;;  %v4464_v48 = vpop.f32.mrb[4].mxu1  ;;  %4950 = vmatprep.subr.bf16.mxu1 %v5525_v37  ;;  %5008 = vmatprep.subr.bf16.mxu0 %v5530_v38  ;;  %v4144_v38 = vcombine.low %v181_v20, %v181_v20 }
  0xfe   :  { %v4441_v50 = vpop.f32.mrb[5].mxu0  ;;  %v4465_v51 = vpop.f32.mrb[5].mxu1 }
  0xff   :  { %v6512_v53 = vadd.f32 %v4441_v50, %v4440_v47  ;;  %v4443_v54 = vpop.f32.mrb[6].mxu0  ;;  %v6514_v55 = vadd.f32 %v4465_v51, %v4464_v48  ;;  %v4467_v56 = vpop.f32.mrb[6].mxu1  ;;  %v5553_v47 = vld [vmem:[%s7070_s0 + $0x54] ss:$100 sps:$4 sm:$0xff]  }
 0x100   :  { %v4444_v60 = vpop.f32.mrb[7].mxu0  ;;  %v4468_v61 = vpop.f32.mrb[7].mxu1  ;;  %4951 = vmatpush3.bf16.msra.mxu1 %v5526_v41  ;;  %5009 = vmatpush3.bf16.msra.mxu0 %v5533_v42  ;;  %v4146_v41 = vcombine.low %v182_v22, %v182_v22  ;;  %v5563_v22 = vld [vmem:[%s7070_s0 + $0x118] ss:$100 sps:$4 sm:$0xff]  }
 0x101   :  { %v6525_v62 = vadd.f32 %v4444_v60, %v4443_v54  ;;  %v6527_v63 = vadd.f32 %v4468_v61, %v4467_v56  ;;  %4952 = vmatprep.subr.bf16.mxu1 %v5535_v43  ;;  %5010 = vmatprep.subr.bf16.mxu0 %v5538_v46  ;;  %v5548_v46 = vld [vmem:[%s7070_s0 + $0x4c] ss:$100 sps:$4 sm:$0xff]   ;;  %v5555_v61 = vld [vmem:[%s7069_s1 + $0x600] sm:$0xff]  }
 0x102   :  { %3304 = vmatmul.mubr.bf16.gmra.mrb[108].mxu1 %v5509_v44  ;;  %3392 = vmatmul.mubr.bf16.gmra.mrb[112].mxu0 %v5512_v45 }
 0x103   :  { %3311 = vmatprep.mubr.bf16.mxu1 %v5517_v49  ;;  %3399 = vmatprep.mubr.bf16.mxu0 %v5520_v52 }
 0x104   :  { %4953 = vmatpush3.bf16.msra.mxu1 %v5536_v57  ;;  %5011 = vmatpush3.bf16.msra.mxu0 %v5540_v58  ;;  %v5546_v57 = vld [vmem:[%s7070_s0 + $0x48] ss:$100 sps:$4 sm:$0xff]  }
 0x105   :  { %v4446_v5 = vpop.f32.mrb[8].mxu0  ;;  %v4470_v6 = vpop.f32.mrb[8].mxu1  ;;  %4954 = vmatprep.subr.bf16.mxu1 %v5542_v59  ;;  %5012 = vmatprep.subr.bf16.mxu0 %v5545_v0 }
 0x106   :  { %v4447_v8 = vpop.f32.mrb[9].mxu0  ;;  %v4471_v9 = vpop.f32.mrb[9].mxu1 }
 0x107   :  { %v6550_v11 = vadd.f32 %v4447_v8, %v4446_v5  ;;  %v4449_v12 = vpop.f32.mrb[10].mxu0  ;;  %v6552_v13 = vadd.f32 %v4471_v9, %v4470_v6  ;;  %v4473_v14 = vpop.f32.mrb[10].mxu1  ;;  %v5558_v9 = vld [vmem:[%s7069_s1 + $0x5c8] sm:$0xff]  }
 0x108   :  { %v4450_v16 = vpop.f32.mrb[11].mxu0  ;;  %v4474_v17 = vpop.f32.mrb[11].mxu1  ;;  %4955 = vmatpush3.bf16.msra.mxu1 %v5544_v3  ;;  %5013 = vmatpush3.bf16.msra.mxu0 %v5549_v4 }
 0x109   :  { %v6557_v18 = vadd.f32 %v4450_v16, %v4449_v12  ;;  %5056 = vmatprep.subr.bf16.mxu1 %v5550_v7  ;;  %5129 = vmatprep.subr.bf16.mxu0 %v5640_v19  ;;  %v5560_v16 = vld [vmem:[%s7069_s1 + $0x588] sm:$0xff]  }
 0x10a   :  { %3312 = vmatmul.mubr.bf16.gmra.mrb[112].mxu1 %v5519_v1  ;;  %3400 = vmatmul.mubr.bf16.gmra.mrb[116].mxu0 %v5523_v2  ;;  %v5556_v2 = vld [vmem:[%s7070_s0 + $0x114] ss:$100 sps:$4 sm:$0xff]  }
 0x10b   :  { %3319 = vmatprep.mubr.bf16.mxu1 %v5527_v10  ;;  %3407 = vmatprep.mubr.bf16.mxu0 %v5531_v15  ;;  %v5561_v10 = vld [vmem:[%s7070_s0 + $0x11c] ss:$100 sps:$4 sm:$0xff]  }
 0x10d   :  { %v4452_v23 = vpop.f32.mrb[12].mxu0 }
 0x10e   :  { %v4453_v25 = vpop.f32.mrb[13].mxu0 }
 0x10f   :  { %v6572_v26 = vadd.f32 %v4453_v25, %v4452_v23  ;;  %v4455_v27 = vpop.f32.mrb[14].mxu0 }
 0x110   :  { %v4456_v32 = vpop.f32.mrb[15].mxu0 }
 0x111   :  { %v6574_v33 = vadd.f32 %v4456_v32, %v4455_v27  ;;  %v5566_v27 = vld [vmem:[%s7070_s0 + $0x1dc] ss:$100 sps:$4 sm:$0xff]  }
 0x112   :  { %3320 = vmatmul.mubr.bf16.gmra.mrb[116].mxu1 %v5529_v21  ;;  %3408 = vmatmul.mubr.bf16.gmra.mrb[120].mxu0 %v5534_v24  ;;  %v5564_v21 = vld [vmem:[%s7069_s1 + $0x608] sm:$0xff]  }
 0x113   :  { %3327 = vmatprep.mubr.bf16.mxu1 %v4145_v28  ;;  %3415 = vmatprep.mubr.bf16.mxu0 %v4147_v30 }
 0x115   :  { %v4492_v34 = vpop.f32.mrb[12].mxu1  ;;  %v4550_v35 = vpop.f32.mrb[16].mxu0 }
 0x116   :  { %v4493_v36 = vpop.f32.mrb[13].mxu1  ;;  %v4551_v37 = vpop.f32.mrb[17].mxu0 }
 0x117   :  { %v4494_v42 = vadd.f32 %v4493_v36, %v4492_v34  ;;  %v4495_v43 = vpop.f32.mrb[14].mxu1  ;;  %v4552_v44 = vadd.f32 %v4551_v37, %v4550_v35  ;;  %v4553_v45 = vpop.f32.mrb[18].mxu0  ;;  %v5568_v37 = vld [vmem:[%s7069_s1 + $0x590] sm:$0xff]  }
 0x118   :  { %v4496_v48 = vpop.f32.mrb[15].mxu1  ;;  %v4554_v49 = vpop.f32.mrb[19].mxu0 }
 0x119   :  { %v2754_v50 = vadd.f32 %v4494_v42, %v6470_v31  ;;  %v4497_v51 = vadd.f32 %v4496_v48, %v4495_v43  ;;  %v4555_v52 = vadd.f32 %v4554_v49, %v4553_v45  ;;  %v5551_v31 = vld [vmem:[%s7070_s0 + $0x50] ss:$100 sps:$4 sm:$0xff]  }
 0x11a   :  { %3328 = vmatmul.mubr.bf16.gmra.mrb[120].mxu1 %v4144_v38  ;;  %3416 = vmatmul.mubr.bf16.gmra.mrb[124].mxu0 %v4146_v41  ;;  %v5570_v38 = vld [vmem:[%s7070_s0 + $0x1e4] ss:$100 sps:$4 sm:$0xff]   ;;  %v5573_v41 = vld [vmem:[%s7069_s1 + $0x610] sm:$0xff]  }
 0x11b   :  { %v2757_v54 = vadd.f32 %v4497_v51, %v6486_v40  ;;  %v6584_v56 = vadd.f32 %v4552_v44, %v2754_v50  ;;  %3455 = vmatprep.mubr.bf16.mxu1 %v5548_v46  ;;  %3543 = vmatprep.mubr.bf16.mxu0 %v5553_v47  ;;  %v5554_v40 = vld [vmem:[%s7069_s1 + $0x580] sm:$0xff]   ;;  %v5574_v47 = vld [vmem:[%s7069_s1 + $0x5d8] sm:$0xff]  }
 0x11c   :  { %v5575_v50 = vld [vmem:[%s7069_s1 + $0x598] sm:$0xff]  }
 0x11d   :  { %v6589_v58 = vadd.f32 %v4555_v52, %v2757_v54  ;;  %v4498_v59 = vpop.f32.mrb[16].mxu1  ;;  %v4556_v60 = vpop.f32.mrb[20].mxu0  ;;  %v5569_v51 = vld [vmem:[%s7070_s0 + $0x1d8] ss:$100 sps:$4 sm:$0xff]   ;;  %v5583_v52 = vld [vmem:[%s7069_s1 + $0x5e0] sm:$0xff]  }
 0x11e   :  { %v4499_v0 = vpop.f32.mrb[17].mxu1  ;;  %v4557_v1 = vpop.f32.mrb[21].mxu0 }
 0x11f   :  { %v4500_v3 = vadd.f32 %v4499_v0, %v4498_v59  ;;  %v4501_v4 = vpop.f32.mrb[18].mxu1  ;;  %v4558_v5 = vadd.f32 %v4557_v1, %v4556_v60  ;;  %v4559_v6 = vpop.f32.mrb[22].mxu0  ;;  %v5576_v60 = vld [vmem:[%s7070_s0 + $0x2a4] ss:$100 sps:$4 sm:$0xff]  }
 0x120   :  { %v4502_v7 = vpop.f32.mrb[19].mxu1  ;;  %v4560_v8 = vpop.f32.mrb[23].mxu0 }
 0x121   :  { %v2762_v12 = vadd.f32 %v4500_v3, %v6512_v53  ;;  %v4503_v14 = vadd.f32 %v4502_v7, %v4501_v4  ;;  %v4561_v15 = vadd.f32 %v4560_v8, %v4559_v6  ;;  %v5559_v53 = vld [vmem:[%s7070_s0 + $0x110] ss:$100 sps:$4 sm:$0xff]   ;;  %v5584_v4 = vld [vmem:[%s7069_s1 + $0x5a0] sm:$0xff]  }
 0x122   :  { %3456 = vmatmul.mubr.bf16.vlgmr.msra.gmra.mrb[124].mxu1 %v5546_v57  ;;  %3544 = vmatmul.mubr.bf16.vlgmr.msra.gmra.mrb[128].mxu0 %v5551_v31  ;;  %v5591_v7 = vld [vmem:[%s7069_s1 + $0x620] sm:$0xff]  }
 0x123   :  { %v2765_v17 = vadd.f32 %v4503_v14, %v6525_v62  ;;  %v6614_v20 = vadd.f32 %v4558_v5, %v2762_v12  ;;  %5057 = vmatpush3.bf16.msra.mxu1 %v5554_v40  ;;  %5130 = vmatpush3.bf16.msra.mxu0 %v5555_v61  ;;  %v5565_v62 = vld [vmem:[%s7069_s1 + $0x5d0] sm:$0xff]   ;;  %v5592_v12 = vld [vmem:[%s7069_s1 + $0x5e8] sm:$0xff]  }
 0x124   :  { %3463 = vmatprep.mubr.bf16.mxu1 %v5556_v2  ;;  %5058 = vmatprep.subr.bf16.mxu1 %v5558_v9  ;;  %v5579_v61 = vld [vmem:[%s7070_s0 + $0x2ac] ss:$100 sps:$4 sm:$0xff]  }
 0x125   :  { %v6628_v23 = vadd.f32 %v4561_v15, %v2765_v17  ;;  %v4504_v24 = vpop.f32.mrb[20].mxu1  ;;  %v4562_v25 = vpop.f32.mrb[24].mxu0  ;;  %3551 = vmatprep.mubr.bf16.mxu0 %v5561_v10  ;;  %5131 = vmatprep.subr.bf16.mxu0 %v5640_v19  ;;  %v5599_v17 = vld [vmem:[%s7069_s1 + $0x628] sm:$0xff]  }
 0x126   :  { %v4505_v28 = vpop.f32.mrb[21].mxu1  ;;  %v4563_v30 = vpop.f32.mrb[25].mxu0 }
 0x127   :  { %v4506_v32 = vadd.f32 %v4505_v28, %v4504_v24  ;;  %v4507_v34 = vpop.f32.mrb[22].mxu1  ;;  %v4564_v35 = vadd.f32 %v4563_v30, %v4562_v25  ;;  %v4565_v36 = vpop.f32.mrb[26].mxu0  ;;  %5059 = vmatpush3.bf16.msra.mxu1 %v5560_v16  ;;  %5132 = vmatpush3.bf16.msra.mxu0 %v5564_v21  ;;  %v5578_v16 = vld [vmem:[%s7070_s0 + $0x2a0] ss:$100 sps:$4 sm:$0xff]  }
 0x128   :  { %v4508_v42 = vpop.f32.mrb[23].mxu1  ;;  %v4566_v43 = vpop.f32.mrb[27].mxu0  ;;  %5060 = vmatprep.subr.bf16.mxu1 %v5565_v62  ;;  %5133 = vmatprep.subr.bf16.mxu0 %v5640_v19  ;;  %v5601_v62 = vld [vmem:[%s7069_s1 + $0x5f0] sm:$0xff]  }
 0x129   :  { %v2770_v44 = vadd.f32 %v4506_v32, %v6550_v11  ;;  %v4509_v45 = vadd.f32 %v4508_v42, %v4507_v34  ;;  %v4567_v46 = vadd.f32 %v4566_v43, %v4565_v36  ;;  %v5582_v11 = vld [vmem:[%s7069_s1 + $0x618] sm:$0xff]   ;;  %v5585_v34 = vld [vmem:[%s7070_s0 + $0x36c] ss:$100 sps:$4 sm:$0xff]  }
 0x12a   :  { %3464 = vmatmul.mubr.bf16.gmra.mrb[128].mxu1 %v5559_v53  ;;  %3552 = vmatmul.mubr.bf16.gmra.mrb[132].mxu0 %v5563_v22  ;;  %v5581_v22 = vld [vmem:[%s7070_s0 + $0x2a8] ss:$100 sps:$4 sm:$0xff]  }
 0x12b   :  { %v2773_v48 = vadd.f32 %v4509_v45, %v6557_v18  ;;  %v6649_v49 = vadd.f32 %v4564_v35, %v2770_v44  ;;  %3471 = vmatprep.mubr.bf16.mxu1 %v5566_v27  ;;  %5061 = vmatpush3.bf16.msra.mxu1 %v5568_v37  ;;  %v5572_v18 = vld [vmem:[%s7070_s0 + $0x1e0] ss:$100 sps:$4 sm:$0xff]   ;;  %v5588_v35 = vld [vmem:[%s7070_s0 + $0x374] ss:$100 sps:$4 sm:$0xff]  }
 0x12c   :  { %3559 = vmatprep.mubr.bf16.mxu0 %v5570_v38  ;;  %5134 = vmatpush3.bf16.msra.mxu0 %v5573_v41  ;;  %v5602_v38 = vld [vmem:[%s7069_s1 + $0x5b0] sm:$0xff]   ;;  %v5607_v45 = vld [vmem:[%s7069_s1 + $0x5f8] sm:$0xff]  }
 0x12d   :  { %v6666_v54 = vadd.f32 %v4567_v46, %v2773_v48  ;;  %v4510_v57 = vpop.f32.mrb[24].mxu1  ;;  %v4568_v59 = vpop.f32.mrb[28].mxu0  ;;  %5062 = vmatprep.subr.bf16.mxu1 %v5574_v47  ;;  %5135 = vmatprep.subr.bf16.mxu0 %v5640_v19  ;;  %v5605_v41 = vld [vmem:[%s7069_s1 + $0x630] sm:$0xff]   ;;  %v5613_v48 = vld [vmem:[%s7069_s1 + $0x638] sm:$0xff]  }
 0x12e   :  { %v4511_v31 = vpop.f32.mrb[25].mxu1  ;;  %v4569_v40 = vpop.f32.mrb[29].mxu0 }
 0x12f   :  { %v4512_v0 = vadd.f32 %v4511_v31, %v4510_v57  ;;  %v4513_v1 = vpop.f32.mrb[26].mxu1  ;;  %v4570_v2 = vadd.f32 %v4569_v40, %v4568_v59  ;;  %v4571_v3 = vpop.f32.mrb[30].mxu0  ;;  %5063 = vmatpush3.bf16.msra.mxu1 %v5575_v50  ;;  %v5590_v57 = vld [vmem:[%s7070_s0 + $0x370] ss:$100 sps:$4 sm:$0xff]  }
 0x130   :  { %v4514_v5 = vpop.f32.mrb[27].mxu1  ;;  %v4572_v6 = vpop.f32.mrb[31].mxu0  ;;  %5136 = vmatpush3.bf16.msra.mxu0 %v5582_v11  ;;  %5064 = vmatprep.subr.bf16.mxu1 %v5583_v52  ;;  %v5587_v52 = vld [vmem:[%s7070_s0 + $0x368] ss:$100 sps:$4 sm:$0xff]  }
 0x131   :  { %v2778_v8 = vadd.f32 %v4512_v0, %v6572_v26  ;;  %v4515_v9 = vadd.f32 %v4514_v5, %v4513_v1  ;;  %v4573_v10 = vadd.f32 %v4572_v6, %v4571_v3  ;;  %5137 = vmatprep.subr.bf16.mxu0 %v5640_v19  ;;  %v5593_v26 = vld [vmem:[%s7069_s1 + $0x5a8] sm:$0xff]   ;;  %v5597_v0 = vld [vmem:[%s7070_s0 + $0x43c] ss:$100 sps:$4 sm:$0xff]  }
 0x132   :  { %3472 = vmatmul.mubr.bf16.gmra.mrb[132].mxu1 %v5569_v51  ;;  %3560 = vmatmul.mubr.bf16.gmra.mrb[136].mxu0 %v5572_v18 }
 0x133   :  { %v2781_v14 = vadd.f32 %v4515_v9, %v6574_v33  ;;  %v6687_v15 = vadd.f32 %v4570_v2, %v2778_v8  ;;  %3479 = vmatprep.mubr.bf16.mxu1 %v5576_v60  ;;  %3567 = vmatprep.mubr.bf16.mxu0 %v5579_v61  ;;  %v5594_v61 = vld [vmem:[%s7070_s0 + $0x434] ss:$100 sps:$4 sm:$0xff]   ;;  %v184_v9 = vld [vmem:[%s7070_s0 + $0x500] sm:$0x11] }
 0x134   :  { %5065 = vmatpush3.bf16.msra.mxu1 %v5584_v4  ;;  %5138 = vmatpush3.bf16.msra.mxu0 %v5591_v7  ;;  %v183_v8 = vld [vmem:[%s7070_s0 + $0x4f8] sm:$0x11] }
 0x135   :  { %v6698_v21 = vadd.f32 %v4573_v10, %v2781_v14  ;;  %v4516_v33 = vpop.f32.mrb[28].mxu1  ;;  %v4574_v53 = vpop.f32.mrb[32].mxu0  ;;  %5066 = vmatprep.subr.bf16.mxu1 %v5592_v12  ;;  %5139 = vmatprep.subr.bf16.mxu0 %v5640_v19 }
 0x136   :  { %v4517_v24 = vpop.f32.mrb[29].mxu1  ;;  %v4575_v25 = vpop.f32.mrb[33].mxu0 }
 0x137   :  { %v4518_v27 = vadd.f32 %v4517_v24, %v4516_v33  ;;  %v4519_v28 = vpop.f32.mrb[30].mxu1  ;;  %v4576_v30 = vadd.f32 %v4575_v25, %v4574_v53  ;;  %v4577_v32 = vpop.f32.mrb[34].mxu0  ;;  %v4151_v24 = vcombine.high %v184_v9, %v184_v9 }
 0x138   :  { %v4520_v36 = vpop.f32.mrb[31].mxu1  ;;  %v4578_v37 = vpop.f32.mrb[35].mxu0  ;;  %5067 = vmatpush3.bf16.msra.mxu1 %v5593_v26  ;;  %5140 = vmatpush3.bf16.msra.mxu0 %v5599_v17 }
 0x139   :  { %v2786_v42 = vadd.f32 %v4518_v27, %v6468_v29  ;;  %v4521_v43 = vadd.f32 %v4520_v36, %v4519_v28  ;;  %v4579_v44 = vadd.f32 %v4578_v37, %v4577_v32  ;;  %5068 = vmatprep.subr.bf16.mxu1 %v5601_v62  ;;  %5141 = vmatprep.subr.bf16.mxu0 %v5640_v19  ;;  %v5609_v29 = vld [vmem:[%s7069_s1 + $0x5b8] sm:$0xff]  }
 0x13a   :  { %3480 = vmatmul.mubr.bf16.gmra.mrb[136].mxu1 %v5578_v16  ;;  %3568 = vmatmul.mubr.bf16.gmra.mrb[140].mxu0 %v5581_v22  ;;  %v5600_v16 = vld [vmem:[%s7070_s0 + $0x438] ss:$100 sps:$4 sm:$0xff]   ;;  %v4149_v62 = vcombine.high %v183_v8, %v183_v8  ;;  %v4148_v37 = vcombine.low %v183_v8, %v183_v8 }
 0x13b   :  { %v2789_v46 = vadd.f32 %v4521_v43, %v6484_v39  ;;  %v6725_v47 = vadd.f32 %v4576_v30, %v2786_v42  ;;  %3487 = vmatprep.mubr.bf16.mxu1 %v5585_v34  ;;  %3575 = vmatprep.mubr.bf16.mxu0 %v5588_v35 }
 0x13c   :  { %5069 = vmatpush3.bf16.msra.mxu1 %v5602_v38  ;;  %5142 = vmatpush3.bf16.msra.mxu0 %v5605_v41  ;;  %v4150_v38 = vcombine.low %v184_v9, %v184_v9 }
 0x13d   :  { %v6733_v50 = vadd.f32 %v4579_v44, %v2789_v46  ;;  %v4522_v11 = vpop.f32.mrb[32].mxu1  ;;  %v4580_v51 = vpop.f32.mrb[36].mxu0  ;;  %5070 = vmatprep.subr.bf16.mxu1 %v5607_v45  ;;  %5143 = vmatprep.subr.bf16.mxu0 %v5640_v19 }
 0x13e   :  { %v4523_v39 = vpop.f32.mrb[33].mxu1  ;;  %v4581_v18 = vpop.f32.mrb[37].mxu0 }
 0x13f   :  { %v4524_v59 = vadd.f32 %v4523_v39, %v4522_v11  ;;  %v4525_v60 = vpop.f32.mrb[34].mxu1  ;;  %v4582_v31 = vadd.f32 %v4581_v18, %v4580_v51  ;;  %v4583_v40 = vpop.f32.mrb[38].mxu0 }
 0x140   :  { %v4526_v1 = vpop.f32.mrb[35].mxu1  ;;  %v4584_v2 = vpop.f32.mrb[39].mxu0  ;;  %5071 = vmatpush3.bf16.msra.mxu1 %v5609_v29  ;;  %5144 = vmatpush3.bf16.msra.mxu0 %v5613_v48 }
 0x141   :  { %v2794_v3 = vadd.f32 %v4524_v59, %v6514_v55  ;;  %v4527_v4 = vadd.f32 %v4526_v1, %v4525_v60  ;;  %v4585_v5 = vadd.f32 %v4584_v2, %v4583_v40  ;;  %v5615_v1 = vld [vmem:[%s7070_s0 + $0x124] ss:$100 sps:$4 sm:$0xff]  }
 0x142   :  { %3488 = vmatmul.mubr.bf16.gmra.mrb[140].mxu1 %v5587_v52  ;;  %3576 = vmatmul.mubr.bf16.gmra.mrb[144].mxu0 %v5590_v57 }
 0x143   :  { %v2797_v6 = vadd.f32 %v4527_v4, %v6527_v63  ;;  %v6750_v7 = vadd.f32 %v4582_v31, %v2794_v3  ;;  %3495 = vmatprep.mubr.bf16.mxu1 %v5594_v61  ;;  %3583 = vmatprep.mubr.bf16.mxu0 %v5597_v0  ;;  %v5596_v63 = vld [vmem:[%s7070_s0 + $0x430] ss:$100 sps:$4 sm:$0xff]  }
 0x145   :  { %v6758_v10 = vadd.f32 %v4585_v5, %v2797_v6  ;;  %v4528_v55 = vpop.f32.mrb[36].mxu1  ;;  %v4586_v12 = vpop.f32.mrb[40].mxu0 }
 0x146   :  { %v4529_v14 = vpop.f32.mrb[37].mxu1  ;;  %v4587_v26 = vpop.f32.mrb[41].mxu0 }
 0x147   :  { %v4530_v17 = vadd.f32 %v4529_v14, %v4528_v55  ;;  %v4531_v33 = vpop.f32.mrb[38].mxu1  ;;  %v4588_v53 = vadd.f32 %v4587_v26, %v4586_v12  ;;  %v4589_v22 = vpop.f32.mrb[42].mxu0 }
 0x148   :  { %v4532_v25 = vpop.f32.mrb[39].mxu1  ;;  %v4590_v27 = vpop.f32.mrb[43].mxu0  ;;  %v5619_v22 = vld [vmem:[%s7070_s0 + $0x1ec] ss:$100 sps:$4 sm:$0xff]  }
 0x149   :  { %v2802_v28 = vadd.f32 %v4530_v17, %v6552_v13  ;;  %v5612_v13 = vld [vmem:[%s7070_s0 + $0x5c] ss:$100 sps:$4 sm:$0xff]  }
 0x14a   :  { %3496 = vmatmul.mubr.bf16.gmra.mrb[144].mxu1 %v5596_v63  ;;  %3584 = vmatmul.mubr.bf16.gmra.mrb[148].mxu0 %v5600_v16 }
 0x14b   :  { %v6767_v30 = vadd.f32 %v4588_v53, %v2802_v28  ;;  %3503 = vmatprep.mubr.bf16.mxu1 %v4149_v62  ;;  %3591 = vmatprep.mubr.bf16.mxu0 %v4151_v24 }
 0x14d   :  { %v4608_v32 = vpop.f32.mrb[40].mxu1  ;;  %v4666_v34 = vpop.f32.mrb[44].mxu0 }
 0x14e   :  { %v4609_v35 = vpop.f32.mrb[41].mxu1  ;;  %v4667_v36 = vpop.f32.mrb[45].mxu0 }
 0x14f   :  { %v4610_v41 = vadd.f32 %v4609_v35, %v4608_v32  ;;  %v4611_v42 = vpop.f32.mrb[42].mxu1  ;;  %v4668_v43 = vadd.f32 %v4667_v36, %v4666_v34  ;;  %v4669_v44 = vpop.f32.mrb[46].mxu0 }
 0x150   :  { %v4612_v45 = vpop.f32.mrb[43].mxu1  ;;  %v4670_v46 = vpop.f32.mrb[47].mxu0 }
 0x151   :  { %v2930_v29 = vadd.f32 %v4610_v41, %v6584_v56  ;;  %v4613_v48 = vadd.f32 %v4612_v45, %v4611_v42  ;;  %v4671_v11 = vadd.f32 %v4670_v46, %v4669_v44  ;;  %v5610_v56 = vld [vmem:[%s7070_s0 + $0x58] ss:$100 sps:$4 sm:$0xff]  }
 0x152   :  { %3504 = vmatmul.mubr.bf16.gmra.mrb[148].mxu1 %v4148_v37  ;;  %3592 = vmatmul.mubr.bf16.gmra.mrb[152].mxu0 %v4150_v38  ;;  %v5623_v45 = vld [vmem:[%s7070_s0 + $0x2b4] ss:$100 sps:$4 sm:$0xff]  }
 0x153   :  { %v2933_v51 = vadd.f32 %v4613_v48, %v6589_v58  ;;  %v6774_v39 = vadd.f32 %v4668_v43, %v2930_v29  ;;  %3631 = vmatprep.mubr.bf16.mxu1 %v5612_v13  ;;  %5145 = vmatprep.mubr.msk.bf16.mxu0 %vm5641_vm0, %v5640_v19  ;;  %v5614_v58 = vld [vmem:[%s7070_s0 + $0x60] ss:$100 sps:$4 sm:$0xff]  }
 0x155   :  { %v6778_v18 = vadd.f32 %v4671_v11, %v2933_v51  ;;  %v4614_v52 = vpop.f32.mrb[44].mxu1  ;;  %v4672_v57 = vpop.f32.mrb[48].mxu0 }
 0x156   :  { %v4615_v59 = vpop.f32.mrb[45].mxu1  ;;  %v4673_v60 = vpop.f32.mrb[49].mxu0 }
 0x157   :  { %v4616_v31 = vadd.f32 %v4615_v59, %v4614_v52  ;;  %v4617_v40 = vpop.f32.mrb[46].mxu1  ;;  %v4674_v61 = vadd.f32 %v4673_v60, %v4672_v57  ;;  %v4675_v0 = vpop.f32.mrb[50].mxu0 }
 0x158   :  { %v4618_v2 = vpop.f32.mrb[47].mxu1  ;;  %v4676_v3 = vpop.f32.mrb[51].mxu0 }
 0x159   :  { %v2938_v4 = vadd.f32 %v4616_v31, %v6614_v20  ;;  %v4619_v5 = vadd.f32 %v4618_v2, %v4617_v40  ;;  %v4677_v6 = vadd.f32 %v4676_v3, %v4675_v0  ;;  %v5617_v20 = vld [vmem:[%s7070_s0 + $0x120] ss:$100 sps:$4 sm:$0xff]  }
 0x15a   :  { %3632 = vmatmul.mubr.bf16.vlgmr.msra.gmra.mrb[152].mxu1 %v5610_v56  ;;  %5146 = vmatmul.mubr.bf16.vlgmr.msra.gmra.mrb[156].mxu0 %v5614_v58  ;;  %v5627_v2 = vld [vmem:[%s7070_s0 + $0x37c] ss:$100 sps:$4 sm:$0xff]  }
 0x15b   :  { %v2941_v8 = vadd.f32 %v4619_v5, %v6628_v23  ;;  %v6791_v9 = vadd.f32 %v4674_v61, %v2938_v4  ;;  %3639 = vmatprep.mubr.bf16.mxu1 %v5615_v1  ;;  %5149 = vmatprep.mubr.msk.bf16.mxu0 %vm5641_vm0, %v5640_v19  ;;  %v5618_v23 = vld [vmem:[%s7070_s0 + $0x128] ss:$100 sps:$4 sm:$0xff]  }
 0x15d   :  { %v6795_v55 = vadd.f32 %v4677_v6, %v2941_v8  ;;  %v4620_v12 = vpop.f32.mrb[48].mxu1  ;;  %v4678_v14 = vpop.f32.mrb[52].mxu0 }
 0x15e   :  { %v4621_v26 = vpop.f32.mrb[49].mxu1  ;;  %v4679_v63 = vpop.f32.mrb[53].mxu0 }
 0x15f   :  { %v4622_v16 = vadd.f32 %v4621_v26, %v4620_v12  ;;  %v4623_v17 = vpop.f32.mrb[50].mxu1  ;;  %v4680_v33 = vadd.f32 %v4679_v63, %v4678_v14  ;;  %v4681_v53 = vpop.f32.mrb[54].mxu0 }
 0x160   :  { %v4624_v62 = vpop.f32.mrb[51].mxu1  ;;  %v4682_v24 = vpop.f32.mrb[55].mxu0 }
 0x161   :  { %v2946_v25 = vadd.f32 %v4622_v16, %v6649_v49  ;;  %v4625_v27 = vadd.f32 %v4624_v62, %v4623_v17  ;;  %v4683_v28 = vadd.f32 %v4682_v24, %v4681_v53  ;;  %v5621_v49 = vld [vmem:[%s7070_s0 + $0x1e8] ss:$100 sps:$4 sm:$0xff]  }
 0x162   :  { %3640 = vmatmul.mubr.bf16.gmra.mrb[156].mxu1 %v5617_v20  ;;  %5150 = vmatmul.mubr.bf16.gmra.mrb[160].mxu0 %v5618_v23  ;;  %v5631_v62 = vld [vmem:[%s7070_s0 + $0x444] ss:$100 sps:$4 sm:$0xff]  }
 0x163   :  { %v2949_v32 = vadd.f32 %v4625_v27, %v6666_v54  ;;  %v6808_v34 = vadd.f32 %v4680_v33, %v2946_v25  ;;  %3647 = vmatprep.mubr.bf16.mxu1 %v5619_v22  ;;  %5153 = vmatprep.mubr.msk.bf16.mxu0 %vm5641_vm0, %v5640_v19  ;;  %v5622_v54 = vld [vmem:[%s7070_s0 + $0x1f0] ss:$100 sps:$4 sm:$0xff]  }
 0x165   :  { %v6812_v35 = vadd.f32 %v4683_v28, %v2949_v32  ;;  %v4626_v36 = vpop.f32.mrb[52].mxu1  ;;  %v4684_v37 = vpop.f32.mrb[56].mxu0 }
 0x166   :  { %v4627_v38 = vpop.f32.mrb[53].mxu1  ;;  %v4685_v41 = vpop.f32.mrb[57].mxu0 }
 0x167   :  { %v4628_v42 = vadd.f32 %v4627_v38, %v4626_v36  ;;  %v4629_v43 = vpop.f32.mrb[54].mxu1  ;;  %v4686_v44 = vadd.f32 %v4685_v41, %v4684_v37  ;;  %v4687_v13 = vpop.f32.mrb[58].mxu0  ;;  %v185_v38 = vld [vmem:[%s7070_s0 + $0x508] sm:$0x11] }
 0x168   :  { %v4630_v46 = vpop.f32.mrb[55].mxu1  ;;  %v4688_v29 = vpop.f32.mrb[59].mxu0 }
 0x169   :  { %v2954_v48 = vadd.f32 %v4628_v42, %v6687_v15  ;;  %v4631_v11 = vadd.f32 %v4630_v46, %v4629_v43  ;;  %v4689_v51 = vadd.f32 %v4688_v29, %v4687_v13  ;;  %v5625_v15 = vld [vmem:[%s7070_s0 + $0x2b0] ss:$100 sps:$4 sm:$0xff]   ;;  %v5634_v43 = vld [vmem:[%s7070_s0 + $0x448] ss:$100 sps:$4 sm:$0xff]   ;;  %v4153_v29 = vcombine.high %v185_v38, %v185_v38 }
 0x16a   :  { %3648 = vmatmul.mubr.bf16.gmra.mrb[160].mxu1 %v5621_v49  ;;  %5154 = vmatmul.mubr.bf16.gmra.mrb[164].mxu0 %v5622_v54 }
 0x16b   :  { %v2957_v52 = vadd.f32 %v4631_v11, %v6698_v21  ;;  %v6825_v57 = vadd.f32 %v4686_v44, %v2954_v48  ;;  %3655 = vmatprep.mubr.bf16.mxu1 %v5623_v45  ;;  %5157 = vmatprep.mubr.msk.bf16.mxu0 %vm5641_vm0, %v5640_v19  ;;  %v5626_v21 = vld [vmem:[%s7070_s0 + $0x2b8] ss:$100 sps:$4 sm:$0xff]  }
 0x16d   :  { %v6829_v59 = vadd.f32 %v4689_v51, %v2957_v52  ;;  %v4632_v60 = vpop.f32.mrb[56].mxu1  ;;  %v4690_v56 = vpop.f32.mrb[60].mxu0 }
 0x16e   :  { %v4633_v58 = vpop.f32.mrb[57].mxu1  ;;  %v4691_v31 = vpop.f32.mrb[61].mxu0 }
 0x16f   :  { %v4634_v40 = vadd.f32 %v4633_v58, %v4632_v60  ;;  %v4635_v61 = vpop.f32.mrb[58].mxu1  ;;  %v4692_v0 = vadd.f32 %v4691_v31, %v4690_v56  ;;  %v4693_v1 = vpop.f32.mrb[62].mxu0 }
 0x170   :  { %v4636_v3 = vpop.f32.mrb[59].mxu1  ;;  %v4694_v4 = vpop.f32.mrb[63].mxu0 }
 0x171   :  { %v2962_v5 = vadd.f32 %v4634_v40, %v6725_v47  ;;  %v4637_v6 = vadd.f32 %v4636_v3, %v4635_v61  ;;  %v4695_v8 = vadd.f32 %v4694_v4, %v4693_v1  ;;  %v5629_v47 = vld [vmem:[%s7070_s0 + $0x378] ss:$100 sps:$4 sm:$0xff]  }
 0x172   :  { %3656 = vmatmul.mubr.bf16.gmra.mrb[164].mxu1 %v5625_v15  ;;  %5158 = vmatmul.mubr.bf16.gmra.mrb[168].mxu0 %v5626_v21  ;;  %v4152_v15 = vcombine.low %v185_v38, %v185_v38  ;;  %v5637_v21 = vld [vmem:[%s7070_s0 + $0x510] ss:$0 sps:$4 sm:$0x11]  }
 0x173   :  { %v2965_v12 = vadd.f32 %v4637_v6, %v6733_v50  ;;  %v6842_v14 = vadd.f32 %v4692_v0, %v2962_v5  ;;  %3663 = vmatprep.mubr.bf16.mxu1 %v5627_v2  ;;  %5161 = vmatprep.mubr.msk.bf16.mxu0 %vm5641_vm0, %v5640_v19  ;;  %v5630_v50 = vld [vmem:[%s7070_s0 + $0x380] ss:$100 sps:$4 sm:$0xff]  }
 0x175   :  { %v6846_v26 = vadd.f32 %v4695_v8, %v2965_v12  ;;  %v4638_v63 = vpop.f32.mrb[60].mxu1  ;;  %v4696_v20 = vpop.f32.mrb[64].mxu0 }
 0x176   :  { %v4639_v23 = vpop.f32.mrb[61].mxu1  ;;  %v4697_v16 = vpop.f32.mrb[65].mxu0 }
 0x177   :  { %v4640_v17 = vadd.f32 %v4639_v23, %v4638_v63  ;;  %v4641_v33 = vpop.f32.mrb[62].mxu1  ;;  %v4698_v53 = vadd.f32 %v4697_v16, %v4696_v20  ;;  %v4699_v22 = vpop.f32.mrb[66].mxu0 }
 0x178   :  { %v4642_v24 = vpop.f32.mrb[63].mxu1  ;;  %v4700_v25 = vpop.f32.mrb[67].mxu0 }
 0x179   :  { %v2970_v27 = vadd.f32 %v4640_v17, %v6750_v7  ;;  %v4643_v28 = vadd.f32 %v4642_v24, %v4641_v33  ;;  %v4701_v32 = vadd.f32 %v4700_v25, %v4699_v22 }
 0x17a   :  { %3664 = vmatmul.mubr.bf16.gmra.mrb[168].mxu1 %v5629_v47  ;;  %5162 = vmatmul.mubr.bf16.gmra.mrb[172].mxu0 %v5630_v50 }
 0x17b   :  { %v2973_v36 = vadd.f32 %v4643_v28, %v6758_v10  ;;  %v6859_v37 = vadd.f32 %v4698_v53, %v2970_v27  ;;  %3671 = vmatprep.mubr.bf16.mxu1 %v5631_v62  ;;  %5165 = vmatprep.mubr.msk.bf16.mxu0 %vm5641_vm0, %v5640_v19  ;;  %v5633_v10 = vld [vmem:[%s7070_s0 + $0x440] ss:$100 sps:$4 sm:$0xff]  }
 0x17d   :  { %v6866_v41 = vadd.f32 %v4701_v32, %v2973_v36  ;;  %v4644_v49 = vpop.f32.mrb[64].mxu1  ;;  %v4702_v7 = vpop.f32.mrb[68].mxu0 }
 0x17e   :  { %v4645_v54 = vpop.f32.mrb[65].mxu1  ;;  %v4703_v42 = vpop.f32.mrb[69].mxu0 }
 0x17f   :  { %v4646_v44 = vadd.f32 %v4645_v54, %v4644_v49  ;;  %v4647_v13 = vpop.f32.mrb[66].mxu1  ;;  %v4704_v45 = vadd.f32 %v4703_v42, %v4702_v7  ;;  %v4705_v46 = vpop.f32.mrb[70].mxu0 }
 0x180   :  { %v4648_v48 = vpop.f32.mrb[67].mxu1  ;;  %v4706_v11 = vpop.f32.mrb[71].mxu0 }
 0x181   :  { %v2978_v51 = vadd.f32 %v4646_v44, %v6767_v30 }
 0x182   :  { %3672 = vmatmul.mubr.bf16.gmra.mrb[172].mxu1 %v5633_v10  ;;  %5166 = vmatmul.mubr.bf16.gmra.mrb[176].mxu0 %v5634_v43 }
 0x183   :  { %v6875_v52 = vadd.f32 %v4704_v45, %v2978_v51  ;;  %3679 = vmatprep.mubr.bf16.mxu1 %v4153_v29  ;;  %5169 = vmatprep.mubr.msk.bf16.mxu0 %vm5641_vm0, %v5640_v19 }
 0x185   :  { %v4724_v60 = vpop.f32.mrb[68].mxu1  ;;  %v4782_v56 = vpop.f32.mrb[72].mxu0 }
 0x186   :  { %v4725_v58 = vpop.f32.mrb[69].mxu1  ;;  %v4783_v31 = vpop.f32.mrb[73].mxu0 }
 0x187   :  { %v4726_v40 = vadd.f32 %v4725_v58, %v4724_v60  ;;  %v4727_v61 = vpop.f32.mrb[70].mxu1  ;;  %v4784_v30 = vadd.f32 %v4783_v31, %v4782_v56  ;;  %v4785_v0 = vpop.f32.mrb[74].mxu0 }
 0x188   :  { %v4728_v1 = vpop.f32.mrb[71].mxu1  ;;  %v4786_v2 = vpop.f32.mrb[75].mxu0 }
 0x189   :  { %v3106_v3 = vadd.f32 %v4726_v40, %v6774_v39  ;;  %v4729_v4 = vadd.f32 %v4728_v1, %v4727_v61  ;;  %v4787_v5 = vadd.f32 %v4786_v2, %v4785_v0 }
 0x18a   :  { %3680 = vmatmul.mubr.bf16.gmra.mrb[176].mxu1 %v4152_v15  ;;  %5170 = vmatmul.mubr.bf16.gmra.mrb[180].mxu0 %v5637_v21 }
 0x18b   :  { %v3109_v19 = vadd.f32 %v4729_v4, %v6778_v18  ;;  %v6884_v6 = vadd.f32 %v4784_v30, %v3106_v3 }
 0x18d   :  { %v6886_v8 = vadd.f32 %v4787_v5, %v3109_v19  ;;  %v4730_v12 = vpop.f32.mrb[72].mxu1  ;;  %v4788_v63 = vpop.f32.mrb[76].mxu0 }
 0x18e   :  { %v4731_v20 = vpop.f32.mrb[73].mxu1  ;;  %v4789_v23 = vpop.f32.mrb[77].mxu0 }
 0x18f   :  { %v4732_v16 = vadd.f32 %v4731_v20, %v4730_v12  ;;  %v4733_v47 = vpop.f32.mrb[74].mxu1  ;;  %v4790_v50 = vadd.f32 %v4789_v23, %v4788_v63  ;;  %v4791_v17 = vpop.f32.mrb[78].mxu0 }
 0x190   :  { %v4734_v33 = vpop.f32.mrb[75].mxu1  ;;  %v4792_v39 = vpop.f32.mrb[79].mxu0 }
 0x191   :  { %v3114_v53 = vadd.f32 %v4732_v16, %v6791_v9  ;;  %v4735_v22 = vadd.f32 %v4734_v33, %v4733_v47  ;;  %v4793_v62 = vadd.f32 %v4792_v39, %v4791_v17 }
 0x193   :  { %v3117_v18 = vadd.f32 %v4735_v22, %v6795_v55  ;;  %v6890_v24 = vadd.f32 %v4790_v50, %v3114_v53 }
 0x195   :  { %v6892_v25 = vadd.f32 %v4793_v62, %v3117_v18  ;;  %v4736_v27 = vpop.f32.mrb[76].mxu1  ;;  %v4794_v28 = vpop.f32.mrb[80].mxu0 }
 0x196   :  { %v4737_v32 = vpop.f32.mrb[77].mxu1  ;;  %v4795_v36 = vpop.f32.mrb[81].mxu0 }
 0x197   :  { %v4738_v38 = vadd.f32 %v4737_v32, %v4736_v27  ;;  %v4739_v49 = vpop.f32.mrb[78].mxu1  ;;  %v4796_v7 = vadd.f32 %v4795_v36, %v4794_v28  ;;  %v4797_v54 = vpop.f32.mrb[82].mxu0 }
 0x198   :  { %v4740_v42 = vpop.f32.mrb[79].mxu1  ;;  %v4798_v10 = vpop.f32.mrb[83].mxu0 }
 0x199   :  { %v3122_v9 = vadd.f32 %v4738_v38, %v6808_v34  ;;  %v4741_v43 = vadd.f32 %v4740_v42, %v4739_v49  ;;  %v4799_v44 = vadd.f32 %v4798_v10, %v4797_v54 }
 0x19b   :  { %v3125_v55 = vadd.f32 %v4741_v43, %v6812_v35  ;;  %v6896_v13 = vadd.f32 %v4796_v7, %v3122_v9 }
 0x19d   :  { %v6898_v45 = vadd.f32 %v4799_v44, %v3125_v55  ;;  %v4742_v46 = vpop.f32.mrb[80].mxu1  ;;  %v4800_v29 = vpop.f32.mrb[84].mxu0 }
 0x19e   :  { %v4743_v48 = vpop.f32.mrb[81].mxu1  ;;  %v4801_v11 = vpop.f32.mrb[85].mxu0 }
 0x19f   :  { %v4744_v51 = vadd.f32 %v4743_v48, %v4742_v46  ;;  %v4745_v60 = vpop.f32.mrb[82].mxu1  ;;  %v4802_v56 = vadd.f32 %v4801_v11, %v4800_v29  ;;  %v4803_v58 = vpop.f32.mrb[86].mxu0 }
 0x1a0   :  { %v4746_v31 = vpop.f32.mrb[83].mxu1  ;;  %v4804_v15 = vpop.f32.mrb[87].mxu0 }
 0x1a1   :  { %v3130_v34 = vadd.f32 %v4744_v51, %v6825_v57  ;;  %v4747_v21 = vadd.f32 %v4746_v31, %v4745_v60  ;;  %v4805_v40 = vadd.f32 %v4804_v15, %v4803_v58 }
 0x1a3   :  { %v3133_v35 = vadd.f32 %v4747_v21, %v6829_v59  ;;  %v6902_v61 = vadd.f32 %v4802_v56, %v3130_v34 }
 0x1a5   :  { %v6904_v30 = vadd.f32 %v4805_v40, %v3133_v35  ;;  %v4748_v0 = vpop.f32.mrb[84].mxu1  ;;  %v4806_v1 = vpop.f32.mrb[88].mxu0 }
 0x1a6   :  { %v4749_v2 = vpop.f32.mrb[85].mxu1  ;;  %v4807_v3 = vpop.f32.mrb[89].mxu0 }
 0x1a7   :  { %v4750_v4 = vadd.f32 %v4749_v2, %v4748_v0  ;;  %v4751_v5 = vpop.f32.mrb[86].mxu1  ;;  %v4808_v19 = vadd.f32 %v4807_v3, %v4806_v1  ;;  %v4809_v12 = vpop.f32.mrb[90].mxu0 }
 0x1a8   :  { %v4752_v63 = vpop.f32.mrb[87].mxu1  ;;  %v4810_v20 = vpop.f32.mrb[91].mxu0 }
 0x1a9   :  { %v3138_v57 = vadd.f32 %v4750_v4, %v6842_v14  ;;  %v4753_v23 = vadd.f32 %v4752_v63, %v4751_v5  ;;  %v4811_v16 = vadd.f32 %v4810_v20, %v4809_v12 }
 0x1ab   :  { %v3141_v59 = vadd.f32 %v4753_v23, %v6846_v26  ;;  %v6908_v47 = vadd.f32 %v4808_v19, %v3138_v57 }
 0x1ad   :  { %v6910_v50 = vadd.f32 %v4811_v16, %v3141_v59  ;;  %v4754_v17 = vpop.f32.mrb[88].mxu1  ;;  %v4812_v33 = vpop.f32.mrb[92].mxu0 }
 0x1ae   :  { %v4755_v39 = vpop.f32.mrb[89].mxu1  ;;  %v4813_v53 = vpop.f32.mrb[93].mxu0 }
 0x1af   :  { %v4756_v22 = vadd.f32 %v4755_v39, %v4754_v17  ;;  %v4757_v62 = vpop.f32.mrb[90].mxu1  ;;  %v4814_v18 = vadd.f32 %v4813_v53, %v4812_v33  ;;  %v4815_v27 = vpop.f32.mrb[94].mxu0 }
 0x1b0   :  { %v4758_v28 = vpop.f32.mrb[91].mxu1  ;;  %v4816_v32 = vpop.f32.mrb[95].mxu0 }
 0x1b1   :  { %v3146_v14 = vadd.f32 %v4756_v22, %v6859_v37  ;;  %v4759_v36 = vadd.f32 %v4758_v28, %v4757_v62  ;;  %v4817_v38 = vadd.f32 %v4816_v32, %v4815_v27 }
 0x1b3   :  { %v3149_v26 = vadd.f32 %v4759_v36, %v6866_v41  ;;  %v6914_v49 = vadd.f32 %v4814_v18, %v3146_v14 }
 0x1b5   :  { %v6916_v7 = vadd.f32 %v4817_v38, %v3149_v26  ;;  %v4760_v54 = vpop.f32.mrb[92].mxu1  ;;  %v4818_v42 = vpop.f32.mrb[96].mxu0 }
 0x1b6   :  { %v4761_v10 = vpop.f32.mrb[93].mxu1  ;;  %v4819_v9 = vpop.f32.mrb[97].mxu0 }
 0x1b7   :  { %v4762_v43 = vadd.f32 %v4761_v10, %v4760_v54  ;;  %v4763_v44 = vpop.f32.mrb[94].mxu1  ;;  %v4820_v55 = vadd.f32 %v4819_v9, %v4818_v42  ;;  %v4821_v46 = vpop.f32.mrb[98].mxu0 }
 0x1b8   :  { %v4764_v29 = vpop.f32.mrb[95].mxu1  ;;  %v4822_v48 = vpop.f32.mrb[99].mxu0 }
 0x1b9   :  { %v3154_v37 = vadd.f32 %v4762_v43, %v6875_v52 }
 0x1bb   :  { %v6919_v11 = vadd.f32 %v4820_v55, %v3154_v37 }
 0x1bd   :  { %v4840_v51 = vpop.f32.mrb[96].mxu1  ;;  %v4898_v41 = vpop.f32.mrb[100].mxu0 }
 0x1be   :  { %v4841_v60 = vpop.f32.mrb[97].mxu1  ;;  %v4899_v56 = vpop.f32.mrb[101].mxu0 }
 0x1bf   :  { %v4842_v58 = vadd.f32 %v4841_v60, %v4840_v51  ;;  %v4843_v31 = vpop.f32.mrb[98].mxu1  ;;  %v4900_v15 = vadd.f32 %v4899_v56, %v4898_v41  ;;  %v4901_v34 = vpop.f32.mrb[102].mxu0 }
 0x1c0   :  { %v4844_v21 = vpop.f32.mrb[99].mxu1  ;;  %v4902_v40 = vpop.f32.mrb[103].mxu0 }
 0x1c1   :  { %v3282_v35 = vadd.f32 %v4842_v58, %v6884_v6  ;;  %v4845_v0 = vadd.f32 %v4844_v21, %v4843_v31  ;;  %v4903_v1 = vadd.f32 %v4902_v40, %v4901_v34 }
 0x1c3   :  { %v3285_v2 = vadd.f32 %v4845_v0, %v6886_v8  ;;  %v6923_v3 = vadd.f32 %v4900_v15, %v3282_v35 }
 0x1c5   :  { %v6925_v52 = vadd.f32 %v4903_v1, %v3285_v2  ;;  %v4846_v4 = vpop.f32.mrb[100].mxu1  ;;  %v4904_v5 = vpop.f32.mrb[104].mxu0 }
 0x1c6   :  { %v4847_v19 = vpop.f32.mrb[101].mxu1  ;;  %v4905_v12 = vpop.f32.mrb[105].mxu0 }
 0x1c7   :  { %v4848_v63 = vadd.f32 %v4847_v19, %v4846_v4  ;;  %v4849_v20 = vpop.f32.mrb[102].mxu1  ;;  %v4906_v57 = vadd.f32 %v4905_v12, %v4904_v5  ;;  %v4907_v23 = vpop.f32.mrb[106].mxu0 }
 0x1c8   :  { %v4850_v16 = vpop.f32.mrb[103].mxu1  ;;  %v4908_v59 = vpop.f32.mrb[107].mxu0 }
 0x1c9   :  { %v3290_v6 = vadd.f32 %v4848_v63, %v6890_v24  ;;  %v4851_v17 = vadd.f32 %v4850_v16, %v4849_v20  ;;  %v4909_v33 = vadd.f32 %v4908_v59, %v4907_v23 }
 0x1cb   :  { %v3293_v8 = vadd.f32 %v4851_v17, %v6892_v25  ;;  %v6929_v39 = vadd.f32 %v4906_v57, %v3290_v6 }
 0x1cd   :  { %v6931_v53 = vadd.f32 %v4909_v33, %v3293_v8  ;;  %v4852_v22 = vpop.f32.mrb[104].mxu1  ;;  %v4910_v62 = vpop.f32.mrb[108].mxu0 }
 0x1ce   :  { %v4853_v18 = vpop.f32.mrb[105].mxu1  ;;  %v4911_v27 = vpop.f32.mrb[109].mxu0 }
 0x1cf   :  { %v4854_v28 = vadd.f32 %v4853_v18, %v4852_v22  ;;  %v4855_v32 = vpop.f32.mrb[106].mxu1  ;;  %v4912_v14 = vadd.f32 %v4911_v27, %v4910_v62  ;;  %v4913_v36 = vpop.f32.mrb[110].mxu0 }
 0x1d0   :  { %v4856_v38 = vpop.f32.mrb[107].mxu1  ;;  %v4914_v26 = vpop.f32.mrb[111].mxu0 }
 0x1d1   :  { %v3298_v24 = vadd.f32 %v4854_v28, %v6896_v13  ;;  %v4857_v54 = vadd.f32 %v4856_v38, %v4855_v32  ;;  %v4915_v42 = vadd.f32 %v4914_v26, %v4913_v36 }
 0x1d3   :  { %v3301_v25 = vadd.f32 %v4857_v54, %v6898_v45  ;;  %v6935_v10 = vadd.f32 %v4912_v14, %v3298_v24 }
 0x1d5   :  { %v6937_v9 = vadd.f32 %v4915_v42, %v3301_v25  ;;  %v4858_v43 = vpop.f32.mrb[108].mxu1  ;;  %v4916_v44 = vpop.f32.mrb[112].mxu0 }
 0x1d6   :  { %v4859_v55 = vpop.f32.mrb[109].mxu1  ;;  %v4917_v46 = vpop.f32.mrb[113].mxu0 }
 0x1d7   :  { %v4860_v29 = vadd.f32 %v4859_v55, %v4858_v43  ;;  %v4861_v48 = vpop.f32.mrb[110].mxu1  ;;  %v4918_v37 = vadd.f32 %v4917_v46, %v4916_v44  ;;  %v4919_v51 = vpop.f32.mrb[114].mxu0 }
 0x1d8   :  { %v4862_v41 = vpop.f32.mrb[111].mxu1  ;;  %v4920_v60 = vpop.f32.mrb[115].mxu0 }
 0x1d9   :  { %v3306_v13 = vadd.f32 %v4860_v29, %v6902_v61  ;;  %v4863_v56 = vadd.f32 %v4862_v41, %v4861_v48  ;;  %v4921_v58 = vadd.f32 %v4920_v60, %v4919_v51 }
 0x1db   :  { %v3309_v45 = vadd.f32 %v4863_v56, %v6904_v30  ;;  %v6941_v31 = vadd.f32 %v4918_v37, %v3306_v13 }
 0x1dd   :  { %v6943_v15 = vadd.f32 %v4921_v58, %v3309_v45  ;;  %v4864_v34 = vpop.f32.mrb[112].mxu1  ;;  %v4922_v21 = vpop.f32.mrb[116].mxu0 }
 0x1de   :  { %v4865_v40 = vpop.f32.mrb[113].mxu1  ;;  %v4923_v35 = vpop.f32.mrb[117].mxu0 }
 0x1df   :  { %v4866_v0 = vadd.f32 %v4865_v40, %v4864_v34  ;;  %v4867_v1 = vpop.f32.mrb[114].mxu1  ;;  %v4924_v2 = vadd.f32 %v4923_v35, %v4922_v21  ;;  %v4925_v4 = vpop.f32.mrb[118].mxu0 }
 0x1e0   :  { %v4868_v5 = vpop.f32.mrb[115].mxu1  ;;  %v4926_v19 = vpop.f32.mrb[119].mxu0 }
 0x1e1   :  { %v3314_v61 = vadd.f32 %v4866_v0, %v6908_v47  ;;  %v4869_v12 = vadd.f32 %v4868_v5, %v4867_v1  ;;  %v4927_v63 = vadd.f32 %v4926_v19, %v4925_v4 }
 0x1e3   :  { %v3317_v30 = vadd.f32 %v4869_v12, %v6910_v50  ;;  %v6947_v20 = vadd.f32 %v4924_v2, %v3314_v61 }
 0x1e5   :  { %v6949_v57 = vadd.f32 %v4927_v63, %v3317_v30  ;;  %v4870_v23 = vpop.f32.mrb[116].mxu1  ;;  %v4928_v16 = vpop.f32.mrb[120].mxu0 }
 0x1e6   :  { %v4871_v59 = vpop.f32.mrb[117].mxu1  ;;  %v4929_v6 = vpop.f32.mrb[121].mxu0 }
 0x1e7   :  { %v4872_v17 = vadd.f32 %v4871_v59, %v4870_v23  ;;  %v4873_v33 = vpop.f32.mrb[118].mxu1  ;;  %v4930_v8 = vadd.f32 %v4929_v6, %v4928_v16  ;;  %v4931_v22 = vpop.f32.mrb[122].mxu0 }
 0x1e8   :  { %v4874_v62 = vpop.f32.mrb[119].mxu1  ;;  %v4932_v18 = vpop.f32.mrb[123].mxu0 }
 0x1e9   :  { %v3322_v47 = vadd.f32 %v4872_v17, %v6914_v49  ;;  %v4875_v27 = vadd.f32 %v4874_v62, %v4873_v33  ;;  %v4933_v28 = vadd.f32 %v4932_v18, %v4931_v22 }
 0x1eb   :  { %v3325_v50 = vadd.f32 %v4875_v27, %v6916_v7  ;;  %v6953_v32 = vadd.f32 %v4930_v8, %v3322_v47 }
 0x1ed   :  { %v6955_v14 = vadd.f32 %v4933_v28, %v3325_v50  ;;  %v4876_v36 = vpop.f32.mrb[120].mxu1  ;;  %v4934_v38 = vpop.f32.mrb[124].mxu0 }
 0x1ee   :  { %v4877_v26 = vpop.f32.mrb[121].mxu1  ;;  %v4935_v24 = vpop.f32.mrb[125].mxu0 }
 0x1ef   :  { %v4878_v54 = vadd.f32 %v4877_v26, %v4876_v36  ;;  %v4879_v42 = vpop.f32.mrb[122].mxu1  ;;  %v4936_v25 = vadd.f32 %v4935_v24, %v4934_v38  ;;  %v4937_v43 = vpop.f32.mrb[126].mxu0 }
 0x1f0   :  { %v4880_v44 = vpop.f32.mrb[123].mxu1  ;;  %v4938_v55 = vpop.f32.mrb[127].mxu0 }
 0x1f1   :  { %v3330_v49 = vadd.f32 %v4878_v54, %v6919_v11 }
 0x1f3   :  { %v6958_v46 = vadd.f32 %v4936_v25, %v3330_v49 }
 0x1f5   :  { %v4956_v29 = vpop.f32.mrb[124].mxu1  ;;  %v5014_v7 = vpop.f32.mrb[128].mxu0 }
 0x1f6   :  { %v4957_v48 = vpop.f32.mrb[125].mxu1  ;;  %v5015_v37 = vpop.f32.mrb[129].mxu0 }
 0x1f7   :  { %v4958_v51 = vadd.f32 %v4957_v48, %v4956_v29  ;;  %v4959_v41 = vpop.f32.mrb[126].mxu1  ;;  %v5016_v60 = vadd.f32 %v5015_v37, %v5014_v7  ;;  %v5017_v13 = vpop.f32.mrb[130].mxu0 }
 0x1f8   :  { %v4960_v56 = vpop.f32.mrb[127].mxu1  ;;  %v5018_v58 = vpop.f32.mrb[131].mxu0 }
 0x1f9   :  { %v3458_v45 = vadd.f32 %v4958_v51, %v6923_v3  ;;  %v4961_v34 = vadd.f32 %v4960_v56, %v4959_v41  ;;  %v5019_v21 = vadd.f32 %v5018_v58, %v5017_v13 }
 0x1fb   :  { %v3461_v40 = vadd.f32 %v4961_v34, %v6925_v52  ;;  %v6962_v35 = vadd.f32 %v5016_v60, %v3458_v45 }
 0x1fd   :  { %v6964_v11 = vadd.f32 %v5019_v21, %v3461_v40  ;;  %v4962_v0 = vpop.f32.mrb[128].mxu1  ;;  %v5020_v1 = vpop.f32.mrb[132].mxu0 }
 0x1fe   :  { %v4963_v2 = vpop.f32.mrb[129].mxu1  ;;  %v5021_v4 = vpop.f32.mrb[133].mxu0 }
 0x1ff   :  { %v4964_v5 = vadd.f32 %v4963_v2, %v4962_v0  ;;  %v4965_v19 = vpop.f32.mrb[130].mxu1  ;;  %v5022_v61 = vadd.f32 %v5021_v4, %v5020_v1  ;;  %v5023_v12 = vpop.f32.mrb[134].mxu0 }
 0x200   :  { %v4966_v63 = vpop.f32.mrb[131].mxu1  ;;  %v5024_v30 = vpop.f32.mrb[135].mxu0 }
 0x201   :  { %v3466_v3 = vadd.f32 %v4964_v5, %v6929_v39  ;;  %v4967_v23 = vadd.f32 %v4966_v63, %v4965_v19  ;;  %v5025_v16 = vadd.f32 %v5024_v30, %v5023_v12 }
 0x203   :  { %v3469_v52 = vadd.f32 %v4967_v23, %v6931_v53  ;;  %v6968_v59 = vadd.f32 %v5022_v61, %v3466_v3 }
 0x205   :  { %v6970_v6 = vadd.f32 %v5025_v16, %v3469_v52  ;;  %v4968_v17 = vpop.f32.mrb[132].mxu1  ;;  %v5026_v33 = vpop.f32.mrb[136].mxu0 }
 0x206   :  { %v4969_v8 = vpop.f32.mrb[133].mxu1  ;;  %v5027_v22 = vpop.f32.mrb[137].mxu0 }
 0x207   :  { %v4970_v62 = vadd.f32 %v4969_v8, %v4968_v17  ;;  %v4971_v18 = vpop.f32.mrb[134].mxu1  ;;  %v5028_v47 = vadd.f32 %v5027_v22, %v5026_v33  ;;  %v5029_v27 = vpop.f32.mrb[138].mxu0 }
 0x208   :  { %v4972_v28 = vpop.f32.mrb[135].mxu1  ;;  %v5030_v50 = vpop.f32.mrb[139].mxu0 }
 0x209   :  { %v3474_v39 = vadd.f32 %v4970_v62, %v6935_v10  ;;  %v4973_v36 = vadd.f32 %v4972_v28, %v4971_v18  ;;  %v5031_v38 = vadd.f32 %v5030_v50, %v5029_v27 }
 0x20b   :  { %v3477_v53 = vadd.f32 %v4973_v36, %v6937_v9  ;;  %v6974_v26 = vadd.f32 %v5028_v47, %v3474_v39 }
 0x20d   :  { %v6976_v24 = vadd.f32 %v5031_v38, %v3477_v53  ;;  %v4974_v54 = vpop.f32.mrb[136].mxu1  ;;  %v5032_v42 = vpop.f32.mrb[140].mxu0 }
 0x20e   :  { %v4975_v25 = vpop.f32.mrb[137].mxu1  ;;  %v5033_v43 = vpop.f32.mrb[141].mxu0 }
 0x20f   :  { %v4976_v44 = vadd.f32 %v4975_v25, %v4974_v54  ;;  %v4977_v55 = vpop.f32.mrb[138].mxu1  ;;  %v5034_v49 = vadd.f32 %v5033_v43, %v5032_v42  ;;  %v5035_v29 = vpop.f32.mrb[142].mxu0 }
 0x210   :  { %v4978_v7 = vpop.f32.mrb[139].mxu1  ;;  %v5036_v48 = vpop.f32.mrb[143].mxu0 }
 0x211   :  { %v3482_v10 = vadd.f32 %v4976_v44, %v6941_v31  ;;  %v4979_v37 = vadd.f32 %v4978_v7, %v4977_v55  ;;  %v5037_v51 = vadd.f32 %v5036_v48, %v5035_v29 }
 0x213   :  { %v3485_v9 = vadd.f32 %v4979_v37, %v6943_v15  ;;  %v6980_v41 = vadd.f32 %v5034_v49, %v3482_v10 }
 0x215   :  { %v6982_v60 = vadd.f32 %v5037_v51, %v3485_v9  ;;  %v4980_v13 = vpop.f32.mrb[140].mxu1  ;;  %v5038_v56 = vpop.f32.mrb[144].mxu0 }
 0x216   :  { %v4981_v58 = vpop.f32.mrb[141].mxu1  ;;  %v5039_v45 = vpop.f32.mrb[145].mxu0 }
 0x217   :  { %v4982_v34 = vadd.f32 %v4981_v58, %v4980_v13  ;;  %v4983_v21 = vpop.f32.mrb[142].mxu1  ;;  %v5040_v40 = vadd.f32 %v5039_v45, %v5038_v56  ;;  %v5041_v0 = vpop.f32.mrb[146].mxu0 }
 0x218   :  { %v4984_v1 = vpop.f32.mrb[143].mxu1  ;;  %v5042_v2 = vpop.f32.mrb[147].mxu0 }
 0x219   :  { %v3490_v31 = vadd.f32 %v4982_v34, %v6947_v20  ;;  %v4985_v4 = vadd.f32 %v4984_v1, %v4983_v21  ;;  %v5043_v5 = vadd.f32 %v5042_v2, %v5041_v0 }
 0x21b   :  { %v3493_v15 = vadd.f32 %v4985_v4, %v6949_v57  ;;  %v6986_v19 = vadd.f32 %v5040_v40, %v3490_v31 }
 0x21d   :  { %v6988_v61 = vadd.f32 %v5043_v5, %v3493_v15  ;;  %v4986_v12 = vpop.f32.mrb[144].mxu1  ;;  %v5044_v63 = vpop.f32.mrb[148].mxu0 }
 0x21e   :  { %v4987_v30 = vpop.f32.mrb[145].mxu1  ;;  %v5045_v3 = vpop.f32.mrb[149].mxu0 }
 0x21f   :  { %v4988_v23 = vadd.f32 %v4987_v30, %v4986_v12  ;;  %v4989_v16 = vpop.f32.mrb[146].mxu1  ;;  %v5046_v52 = vadd.f32 %v5045_v3, %v5044_v63  ;;  %v5047_v17 = vpop.f32.mrb[150].mxu0 }
 0x220   :  { %v4990_v33 = vpop.f32.mrb[147].mxu1  ;;  %v5048_v8 = vpop.f32.mrb[151].mxu0 }
 0x221   :  { %v3498_v20 = vadd.f32 %v4988_v23, %v6953_v32  ;;  %v4991_v22 = vadd.f32 %v4990_v33, %v4989_v16  ;;  %v5049_v62 = vadd.f32 %v5048_v8, %v5047_v17 }
 0x223   :  { %v3501_v57 = vadd.f32 %v4991_v22, %v6955_v14  ;;  %v6992_v18 = vadd.f32 %v5046_v52, %v3498_v20 }
 0x225   :  { %v6994_v47 = vadd.f32 %v5049_v62, %v3501_v57  ;;  %v4992_v27 = vpop.f32.mrb[148].mxu1  ;;  %v5050_v28 = vpop.f32.mrb[152].mxu0 }
 0x226   :  { %v4993_v50 = vpop.f32.mrb[149].mxu1  ;;  %v5051_v39 = vpop.f32.mrb[153].mxu0 }
 0x227   :  { %v4994_v36 = vadd.f32 %v4993_v50, %v4992_v27  ;;  %v4995_v38 = vpop.f32.mrb[150].mxu1  ;;  %v5052_v53 = vadd.f32 %v5051_v39, %v5050_v28  ;;  %v5053_v54 = vpop.f32.mrb[154].mxu0 }
 0x228   :  { %v4996_v42 = vpop.f32.mrb[151].mxu1  ;;  %v5054_v25 = vpop.f32.mrb[155].mxu0 }
 0x229   :  { %v3506_v32 = vadd.f32 %v4994_v36, %v6958_v46 }
 0x22b   :  { %v6997_v43 = vadd.f32 %v5052_v53, %v3506_v32 }
 0x22d   :  { %v5072_v44 = vpop.f32.mrb[152].mxu1  ;;  %v3721_v14 = vpop.f32.mrb[156].mxu0 }
 0x22e   :  { %v5073_v55 = vpop.f32.mrb[153].mxu1  ;;  %v5147_v49 = vpop.f32.mrb[157].mxu0 }
 0x22f   :  { %v5074_v29 = vadd.f32 %v5073_v55, %v5072_v44  ;;  %v5075_v7 = vpop.f32.mrb[154].mxu1  ;;  %v3724_v48 = vpop.f32.mrb[158].mxu0 }
 0x230   :  { %v5076_v10 = vpop.f32.mrb[155].mxu1  ;;  %v5148_v37 = vpop.f32.mrb[159].mxu0 }
 0x231   :  { %v5077_v51 = vadd.f32 %v5076_v10, %v5075_v7  ;;  %v3634_v9 = vadd.f32 %v5074_v29, %v6962_v35 }
 0x233   :  { %v7000_v13 = vadd.f32 %v3721_v14, %v3634_v9  ;;  %v3637_v56 = vadd.f32 %v5077_v51, %v6964_v11 }
 0x235   :  { %v7003_v58 = vadd.f32 %v3724_v48, %v3637_v56  ;;  %v5078_v46 = vpop.f32.mrb[156].mxu1  ;;  %v3729_v45 = vpop.f32.mrb[160].mxu0 }
 0x236   :  { %v5079_v34 = vpop.f32.mrb[157].mxu1  ;;  %v5151_v21 = vpop.f32.mrb[161].mxu0 }
 0x237   :  { %v3775_v40 = vadd.f32 %v7003_v58, %v7000_v13  ;;  %v5080_v0 = vadd.f32 %v5079_v34, %v5078_v46  ;;  %v5081_v1 = vpop.f32.mrb[158].mxu1  ;;  %v3732_v2 = vpop.f32.mrb[162].mxu0 }
 0x238   :  { %v5082_v31 = vpop.f32.mrb[159].mxu1  ;;  %v5152_v4 = vpop.f32.mrb[163].mxu0 }
 0x239   :  { %v5083_v5 = vadd.f32 %v5082_v31, %v5081_v1  ;;  %v3642_v35 = vadd.f32 %v5080_v0, %v6968_v59 }
 0x23b   :  { %v7008_v15 = vadd.f32 %v3729_v45, %v3642_v35  ;;  %v3645_v11 = vadd.f32 %v5083_v5, %v6970_v6 }
 0x23d   :  { %v3776_v12 = vadd.f32 %v3775_v40, %v7008_v15  ;;  %v7012_v63 = vadd.f32 %v3732_v2, %v3645_v11  ;;  %v5084_v30 = vpop.f32.mrb[160].mxu1  ;;  %v3737_v3 = vpop.f32.mrb[164].mxu0 }
 0x23e   :  { %v5085_v23 = vpop.f32.mrb[161].mxu1  ;;  %v5155_v16 = vpop.f32.mrb[165].mxu0 }
 0x23f   :  { %v3777_v52 = vadd.f32 %v3776_v12, %v7012_v63  ;;  %v5086_v17 = vadd.f32 %v5085_v23, %v5084_v30  ;;  %v5087_v33 = vpop.f32.mrb[162].mxu1  ;;  %v3740_v8 = vpop.f32.mrb[166].mxu0 }
 0x240   :  { %v5088_v20 = vpop.f32.mrb[163].mxu1  ;;  %v5156_v22 = vpop.f32.mrb[167].mxu0 }
 0x241   :  { %v5089_v59 = vadd.f32 %v5088_v20, %v5087_v33  ;;  %v3650_v62 = vadd.f32 %v5086_v17, %v6974_v26 }
 0x243   :  { %v7016_v57 = vadd.f32 %v3737_v3, %v3650_v62  ;;  %v3653_v6 = vadd.f32 %v5089_v59, %v6976_v24 }
 0x245   :  { %v3778_v27 = vadd.f32 %v3777_v52, %v7016_v57  ;;  %v7020_v28 = vadd.f32 %v3740_v8, %v3653_v6  ;;  %v5090_v50 = vpop.f32.mrb[164].mxu1  ;;  %v3745_v39 = vpop.f32.mrb[168].mxu0 }
 0x246   :  { %v5091_v36 = vpop.f32.mrb[165].mxu1  ;;  %v5159_v38 = vpop.f32.mrb[169].mxu0 }
 0x247   :  { %v3779_v53 = vadd.f32 %v3778_v27, %v7020_v28  ;;  %v5092_v54 = vadd.f32 %v5091_v36, %v5090_v50  ;;  %v5093_v42 = vpop.f32.mrb[166].mxu1  ;;  %v3748_v25 = vpop.f32.mrb[170].mxu0 }
 0x248   :  { %v5094_v32 = vpop.f32.mrb[167].mxu1  ;;  %v5160_v44 = vpop.f32.mrb[171].mxu0 }
 0x249   :  { %v5095_v26 = vadd.f32 %v5094_v32, %v5093_v42  ;;  %v3658_v14 = vadd.f32 %v5092_v54, %v6980_v41 }
 0x24b   :  { %v7024_v55 = vadd.f32 %v3745_v39, %v3658_v14  ;;  %v3661_v24 = vadd.f32 %v5095_v26, %v6982_v60 }
 0x24d   :  { %v3780_v49 = vadd.f32 %v3779_v53, %v7024_v55  ;;  %v3749_v29 = vadd.f32 %v3748_v25, %v3661_v24  ;;  %v5096_v7 = vpop.f32.mrb[168].mxu1  ;;  %v3753_v48 = vpop.f32.mrb[172].mxu0 }
 0x24e   :  { %v5097_v10 = vpop.f32.mrb[169].mxu1  ;;  %v5163_v37 = vpop.f32.mrb[173].mxu0 }
 0x24f   :  { %v3781_v51 = vadd.f32 %v3780_v49, %v3749_v29  ;;  %v5098_v9 = vadd.f32 %v5097_v10, %v5096_v7  ;;  %v5099_v56 = vpop.f32.mrb[170].mxu1  ;;  %v3756_v46 = vpop.f32.mrb[174].mxu0 }
 0x250   :  { %v5100_v45 = vpop.f32.mrb[171].mxu1  ;;  %v5164_v34 = vpop.f32.mrb[175].mxu0 }
 0x251   :  { %v5101_v21 = vadd.f32 %v5100_v45, %v5099_v56  ;;  %v3666_v41 = vadd.f32 %v5098_v9, %v6986_v19 }
 0x253   :  { %v3754_v40 = vadd.f32 %v3753_v48, %v3666_v41  ;;  %v3669_v0 = vadd.f32 %v5101_v21, %v6988_v61 }
 0x255   :  { %v3782_v60 = vadd.f32 %v3781_v51, %v3754_v40  ;;  %v3757_v1 = vadd.f32 %v3756_v46, %v3669_v0  ;;  %v5102_v2 = vpop.f32.mrb[172].mxu1  ;;  %v3761_v31 = vpop.f32.mrb[176].mxu0 }
 0x256   :  { %v5103_v4 = vpop.f32.mrb[173].mxu1  ;;  %v5167_v5 = vpop.f32.mrb[177].mxu0 }
 0x257   :  { %v3783_v35 = vadd.f32 %v3782_v60, %v3757_v1  ;;  %v5104_v11 = vadd.f32 %v5103_v4, %v5102_v2  ;;  %v5105_v12 = vpop.f32.mrb[174].mxu1  ;;  %v3764_v30 = vpop.f32.mrb[178].mxu0 }
 0x258   :  { %v5106_v3 = vpop.f32.mrb[175].mxu1  ;;  %v5168_v23 = vpop.f32.mrb[179].mxu0 }
 0x259   :  { %v5107_v16 = vadd.f32 %v5106_v3, %v5105_v12  ;;  %v3674_v52 = vadd.f32 %v5104_v11, %v6992_v18 }
 0x25b   :  { %v3762_v17 = vadd.f32 %v3761_v31, %v3674_v52  ;;  %v3677_v19 = vadd.f32 %v5107_v16, %v6994_v47 }
 0x25d   :  { %v3784_v33 = vadd.f32 %v3783_v35, %v3762_v17  ;;  %v3765_v61 = vadd.f32 %v3764_v30, %v3677_v19  ;;  %v5108_v8 = vpop.f32.mrb[176].mxu1  ;;  %v3769_v20 = vpop.f32.mrb[180].mxu0 }
 0x25e   :  { %v5109_v22 = vpop.f32.mrb[177].mxu1  ;;  %v5171_v59 = vpop.f32.mrb[181].mxu0 }
 0x25f   :  { %v3785_v62 = vadd.f32 %v3784_v33, %v3765_v61  ;;  %v5110_v6 = vadd.f32 %v5109_v22, %v5108_v8  ;;  %v5111_v27 = vpop.f32.mrb[178].mxu1  ;;  %v3772_v50 = vpop.f32.mrb[182].mxu0 }
 0x260   :  { %v5112_v39 = vpop.f32.mrb[179].mxu1  ;;  %v5172_v36 = vpop.f32.mrb[183].mxu0 }
 0x261   :  { %v3682_v38 = vadd.f32 %v5110_v6, %v6997_v43  ;;  %v4355_v36 = vld [vmem:[%s7071_s2] ss:$0 sm:$0xff] }
 0x263   :  { %v3770_v53 = vadd.f32 %v3769_v20, %v3682_v38 }
 0x265   :  { %v3787_v18 = vsel %vm3786_vm1, %v3770_v53, 0.0 }
 0x266   :  { %v3788_v54 = vadd.f32 %v3787_v18, %v3785_v62 }
 0x268   :  { %v3789_v47 = vrot.slane %v3788_v54, 4 }
 0x26a   :  { %v3790_v42 = vadd.f32 %v3789_v47, %v3788_v54 }
 0x26c   :  { %v3791_v25 = vrot.slane %v3790_v42, 2 }
 0x26e   :  { %v3792_v32 = vadd.f32 %v3791_v25, %v3790_v42 }
 0x270   :  { %v3793_v44 = vrot.slane %v3792_v32, 1 }
 0x272   :  { %v3794_v26 = vadd.f32 %v3793_v44, %v3792_v32 }
 0x274   :  { %v3795_v14 = vmul.f32 0.010204081, %v3794_v26 }
 0x276   :  { %v3796_v24 = vsub.f32 %v7000_v13, %v3795_v14  ;;  %v3797_v49 = vsub.f32 %v7003_v58, %v3795_v14  ;;  %v3798_v7 = vsub.f32 %v7008_v15, %v3795_v14  ;;  %v3799_v43 = vsub.f32 %v7012_v63, %v3795_v14 }
 0x277   :  { %v3800_v48 = vsub.f32 %v7016_v57, %v3795_v14  ;;  %v3801_v10 = vsub.f32 %v7020_v28, %v3795_v14  ;;  %v3802_v37 = vsub.f32 %v7024_v55, %v3795_v14  ;;  %v3803_v51 = vsub.f32 %v3749_v29, %v3795_v14 }
 0x278   :  { %v3804_v9 = vsub.f32 %v3754_v40, %v3795_v14  ;;  %v3805_v56 = vsub.f32 %v3757_v1, %v3795_v14  ;;  %v3806_v46 = vsub.f32 %v3762_v17, %v3795_v14  ;;  %v3807_v45 = vsub.f32 %v3765_v61, %v3795_v14 }
 0x279   :  { %v3808_v34 = vsub.f32 %v3770_v53, %v3795_v14  ;;  %v3809_v21 = vmul.f32 %v3796_v24, %v3796_v24  ;;  %v3810_v13 = vmul.f32 %v3797_v49, %v3797_v49  ;;  %v3811_v41 = vmul.f32 %v3798_v7, %v3798_v7 }
 0x27a   :  { %v3812_v0 = vmul.f32 %v3799_v43, %v3799_v43  ;;  %v3813_v60 = vmul.f32 %v3800_v48, %v3800_v48  ;;  %v3814_v2 = vmul.f32 %v3801_v10, %v3801_v10  ;;  %v3815_v31 = vmul.f32 %v3802_v37, %v3802_v37 }
 0x27b   :  { %v3822_v58 = vadd.f32 %v3810_v13, %v3809_v21  ;;  %v3816_v4 = vmul.f32 %v3803_v51, %v3803_v51  ;;  %v3817_v29 = vmul.f32 %v3804_v9, %v3804_v9  ;;  %v3818_v1 = vmul.f32 %v3805_v56, %v3805_v56 }
 0x27c   :  { %v3819_v35 = vmul.f32 %v3806_v46, %v3806_v46  ;;  %v3821_v12 = vmul.f32 %v3808_v34, %v3808_v34  ;;  %v3820_v30 = vmul.f32 %v3807_v45, %v3807_v45 }
 0x27d   :  { %v3823_v15 = vadd.f32 %v3822_v58, %v3811_v41 }
 0x27e   :  { %v3833_v16 = vsel %vm3786_vm1, %v3821_v12, 0.0 }
 0x27f   :  { %v3824_v63 = vadd.f32 %v3823_v15, %v3812_v0 }
 0x281   :  { %v3825_v57 = vadd.f32 %v3824_v63, %v3813_v60 }
 0x283   :  { %v3826_v28 = vadd.f32 %v3825_v57, %v3814_v2 }
 0x285   :  { %v3827_v55 = vadd.f32 %v3826_v28, %v3815_v31 }
 0x287   :  { %v3828_v40 = vadd.f32 %v3827_v55, %v3816_v4 }
 0x289   :  { %v3829_v5 = vadd.f32 %v3828_v40, %v3817_v29 }
 0x28b   :  { %v3830_v11 = vadd.f32 %v3829_v5, %v3818_v1 }
 0x28d   :  { %v3831_v3 = vadd.f32 %v3830_v11, %v3819_v35 }
 0x28f   :  { %v3832_v23 = vadd.f32 %v3831_v3, %v3820_v30 }
 0x291   :  { %v3834_v52 = vadd.f32 %v3833_v16, %v3832_v23 }
 0x293   :  { %v3835_v17 = vrot.slane %v3834_v52, 4 }
 0x295   :  { %v3836_v19 = vadd.f32 %v3835_v17, %v3834_v52 }
 0x297   :  { %v3837_v33 = vrot.slane %v3836_v19, 2 }
 0x299   :  { %v3838_v61 = vadd.f32 %v3837_v33, %v3836_v19 }
 0x29b   :  { %v3839_v8 = vrot.slane %v3838_v61, 1 }
 0x29d   :  { %v3840_v20 = vadd.f32 %v3839_v8, %v3838_v61 }
 0x29f   :  { %v3841_v22 = vmul.f32 0.010204081, %v3840_v20 }
 0x2a1   :  { %v3842_v59 = vadd.f32 1e-05, %v3841_v22 }
 0x2a3   :  { %5638 = vrsqrt.f32 %v3842_v59 }
 0x2ad   :  { %v5639_v62 = vpop.eup %5638 }
 0x2ae   :  { %v3844_v6 = vmul.f32 %v5639_v62, %v3796_v24  ;;  %v3845_v27 = vmul.f32 %v5639_v62, %v3797_v49  ;;  %v3846_v50 = vmul.f32 %v5639_v62, %v3798_v7  ;;  %v3847_v39 = vmul.f32 %v5639_v62, %v3799_v43  ;;  %v4356_v24 = vld [vmem:[%s7072_s3] ss:$0 sm:$0xff] }
 0x2af   :  { %v3848_v38 = vmul.f32 %v5639_v62, %v3800_v48  ;;  %v3849_v53 = vmul.f32 %v5639_v62, %v3801_v10  ;;  %v3850_v18 = vmul.f32 %v5639_v62, %v3802_v37  ;;  %v3851_v54 = vmul.f32 %v5639_v62, %v3803_v51 }
 0x2b0   :  { %v3852_v47 = vmul.f32 %v5639_v62, %v3804_v9  ;;  %v3853_v42 = vmul.f32 %v5639_v62, %v3805_v56  ;;  %v3854_v25 = vmul.f32 %v5639_v62, %v3806_v46  ;;  %v3855_v32 = vmul.f32 %v5639_v62, %v3807_v45 }
 0x2b1   :  { %v3856_v44 = vmul.f32 %v5639_v62, %v3808_v34  ;;  %v3864_v26 = vmul.f32 %v4355_v36, %v3844_v6  ;;  %v3865_v14 = vmul.f32 %v4355_v36, %v3845_v27  ;;  %v3866_v21 = vmul.f32 %v4355_v36, %v3846_v50 }
 0x2b2   :  { %v3867_v49 = vmul.f32 %v4355_v36, %v3847_v39  ;;  %v3868_v7 = vmul.f32 %v4355_v36, %v3848_v38  ;;  %v3869_v43 = vmul.f32 %v4355_v36, %v3849_v53  ;;  %v3870_v13 = vmul.f32 %v4355_v36, %v3850_v18 }
 0x2b3   :  { %v3871_v48 = vmul.f32 %v4355_v36, %v3851_v54  ;;  %v3872_v10 = vmul.f32 %v4355_v36, %v3852_v47  ;;  %v3873_v37 = vmul.f32 %v4355_v36, %v3853_v42  ;;  %v3874_v51 = vmul.f32 %v4355_v36, %v3854_v25 }
 0x2b4   :  { %v3875_v9 = vmul.f32 %v4355_v36, %v3855_v32  ;;  %v3876_v56 = vmul.f32 %v4355_v36, %v3856_v44  ;;  %v3884_v46 = vadd.f32 %v4356_v24, %v3864_v26  ;;  %v3885_v45 = vadd.f32 %v4356_v24, %v3865_v14 }
 0x2b5   :  { %v3886_v34 = vadd.f32 %v4356_v24, %v3866_v21  ;;  %v3887_v41 = vadd.f32 %v4356_v24, %v3867_v49  ;;  %v3888_v58 = vadd.f32 %v4356_v24, %v3868_v7  ;;  %v3889_v0 = vadd.f32 %v4356_v24, %v3869_v43 }
 0x2b6   :  { %v3890_v15 = vadd.f32 %v4356_v24, %v3870_v13  ;;  %v3891_v60 = vadd.f32 %v4356_v24, %v3871_v48  ;;  %v3892_v63 = vadd.f32 %v4356_v24, %v3872_v10  ;;  %v3893_v2 = vadd.f32 %v4356_v24, %v3873_v37 }
 0x2b7   :  { %v3894_v57 = vadd.f32 %v4356_v24, %v3874_v51  ;;  %v3895_v31 = vadd.f32 %v4356_v24, %v3875_v9  ;;  %v3896_v28 = vadd.f32 %v4356_v24, %v3876_v56  ;;  %v3897_v4 = vmax.f32 %v3884_v46, 0.0 }
 0x2b8   :  { %v3898_v55 = vmax.f32 %v3885_v45, 0.0  ;;  %v3899_v29 = vmax.f32 %v3886_v34, 0.0  ;;  %v3900_v40 = vmax.f32 %v3887_v41, 0.0  ;;  %v3901_v1 = vmax.f32 %v3888_v58, 0.0 }
 0x2b9   :  { %v3902_v5 = vmax.f32 %v3889_v0, 0.0  ;;  %v3903_v35 = vmax.f32 %v3890_v15, 0.0  ;;  %v3904_v11 = vmax.f32 %v3891_v60, 0.0  ;;  %v3905_v12 = vmax.f32 %v3892_v63, 0.0 }
 0x2ba   :  { %v3906_v30 = vmax.f32 %v3893_v2, 0.0  ;;  %v3907_v3 = vmax.f32 %v3894_v57, 0.0  ;;  %v3908_v23 = vmax.f32 %v3895_v31, 0.0  ;;  %v3909_v16 = vmax.f32 %v3896_v28, 0.0 }
 0x2bb   :  { %v4386_v52 = vpack.c.bf16 %v3898_v55, %v3897_v4  ;;  %v4391_v17 = vpack.c.bf16 %v3900_v40, %v3899_v29  ;;  %v4396_v19 = vpack.c.bf16 %v3902_v5, %v3901_v1  ;;  %v4401_v33 = vpack.c.bf16 %v3904_v11, %v3903_v35 }
 0x2bc   :  { %v4382_v61 = vpack.c.bf16 %v3909_v16, %v3909_v16  ;;  %v4406_v8 = vpack.c.bf16 %v3906_v30, %v3905_v12  ;;  %v4411_v20 = vpack.c.bf16 %v3908_v23, %v3907_v3 }
 0x2bd   :  { %4387 = vst [vmem:[%s7073_s4] sm:$0xff] %v4386_v52   ;;  %4413 = vst [vmem:[%s7073_s4 + $0x8] sm:$0xff] %v4391_v17  }
 0x2be   :  { %4414 = vst [vmem:[%s7073_s4 + $0x10] sm:$0xff] %v4396_v19   ;;  %4415 = vst [vmem:[%s7073_s4 + $0x18] sm:$0xff] %v4401_v33  }
 0x2bf   :  { %4416 = vst [vmem:[%s7073_s4 + $0x20] sm:$0xff] %v4406_v8   ;;  %4417 = vst [vmem:[%s7073_s4 + $0x28] sm:$0xff] %v4411_v20  }
 0x2c0   :  { %3975 = vst [vmem:[%s7073_s4 + $0x30] sm:$0x1] %v4382_v61 }

// kernel: critic_forward.7
= control target key start
LH: loop header
LB: loop body
LE: loop exit
PB: predicated region body
PF: predicated region fallthrough
CT: control target
= control target key end

     0   :  { %v671_v22 = vmov 1966171168   ;;  %v105_v24 = vlaneseq  ;;  %v672_v41 = vmov 0.0   ;;  %vm673_vm0 = vmmov 0   ;;  %s836_s1 = inlined_call_operand.vmem [shape: bf16[512,128], index: 1, kind: input, shape index: {}]   ;;  %s837_s0 = inlined_call_operand.vmem [shape: bf16[2,512], index: 0, kind: input, shape index: {}]   ;;  %s838_s3 = inlined_call_operand.vmem [shape: bf16[128,128], index: 3, kind: input, shape index: {}]   ;;  %s839_s2 = inlined_call_operand.vmem [shape: f32[1,128], index: 2, kind: input, shape index: {}]   ;;  %s840_s4 = inlined_call_operand.vmem [shape: f32[1,128], index: 4, kind: input, shape index: {}]   ;;  %s841_s5 = inlined_call_operand.vmem [shape: f32[2,128], index: 5, kind: output, shape index: {}]  }
   0x1   :  { %v631_v0 = vld [vmem:[%s836_s1 + $0x40] sm:$0xff]   ;;  %v635_v4 = vld [vmem:[%s836_s1 + $0x48] sm:$0xff]   ;;  %v639_v8 = vld [vmem:[%s836_s1 + $0x50] sm:$0xff]   ;;  %v103_v23 = vunpack.c.l.s4 %v671_v22 }
   0x2   :  { %v632_v1 = vld [vmem:[%s836_s1 + $0xc0] sm:$0xff]   ;;  %555 = vmatprep.subr.bf16.mxu0 %v631_v0  ;;  %v636_v5 = vld [vmem:[%s836_s1 + $0xc8] sm:$0xff]   ;;  %v640_v9 = vld [vmem:[%s836_s1 + $0xd0] sm:$0xff]   ;;  %v106_v30 = vshrl.u32 %v105_v24, 7 }
   0x3   :  { %v633_v2 = vld [vmem:[%s836_s1] sm:$0xff]   ;;  %577 = vmatprep.subr.bf16.mxu1 %v632_v1  ;;  %v637_v6 = vld [vmem:[%s836_s1 + $0x8] sm:$0xff]   ;;  %v641_v10 = vld [vmem:[%s836_s1 + $0x10] sm:$0xff]   ;;  %v104_v29 = vunpack.c.0.s8 %v103_v23 }
   0x4   :  { %v634_v3 = vld [vmem:[%s836_s1 + $0x80] sm:$0xff]   ;;  %556 = vmatpush3.bf16.msra.mxu0 %v633_v2  ;;  %v638_v7 = vld [vmem:[%s836_s1 + $0x88] sm:$0xff]   ;;  %v642_v11 = vld [vmem:[%s836_s1 + $0x90] sm:$0xff]  }
   0x5   :  { %578 = vmatpush3.bf16.msra.mxu1 %v634_v3  ;;  %557 = vmatprep.subr.bf16.mxu0 %v635_v4  ;;  %v643_v12 = vld [vmem:[%s836_s1 + $0x58] sm:$0xff]   ;;  %v647_v16 = vld [vmem:[%s836_s1 + $0x60] sm:$0xff]   ;;  %v651_v20 = vld [vmem:[%s836_s1 + $0x68] sm:$0xff]   ;;  %v107_v35 = vsub.s32 %v104_v29, %v106_v30 }
   0x6   :  { %579 = vmatprep.subr.bf16.mxu1 %v636_v5  ;;  %v644_v13 = vld [vmem:[%s836_s1 + $0xd8] sm:$0xff]   ;;  %v648_v17 = vld [vmem:[%s836_s1 + $0xe0] sm:$0xff]   ;;  %v652_v21 = vld [vmem:[%s836_s1 + $0xe8] sm:$0xff]  }
   0x7   :  { %v645_v14 = vld [vmem:[%s836_s1 + $0x18] sm:$0xff]   ;;  %v649_v18 = vld [vmem:[%s836_s1 + $0x20] sm:$0xff]   ;;  %v653_v25 = vld [vmem:[%s836_s1 + $0x28] sm:$0xff]  }
   0x8   :  { %558 = vmatpush3.bf16.msra.mxu0 %v637_v6  ;;  %v646_v15 = vld [vmem:[%s836_s1 + $0x98] sm:$0xff]   ;;  %v650_v19 = vld [vmem:[%s836_s1 + $0xa0] sm:$0xff]   ;;  %v654_v26 = vld [vmem:[%s836_s1 + $0xa8] sm:$0xff]  }
   0x9   :  { %580 = vmatpush3.bf16.msra.mxu1 %v638_v7  ;;  %559 = vmatprep.subr.bf16.mxu0 %v639_v8  ;;  %v655_v27 = vld [vmem:[%s836_s1 + $0x70] sm:$0xff]   ;;  %v659_v33 = vld [vmem:[%s836_s1 + $0x78] sm:$0xff]   ;;  %v513_v38 = vld.sshfl [vmem:[%s837_s0] sm:$0x33 pattern:$0x75316420] }
   0xa   :  { %581 = vmatprep.subr.bf16.mxu1 %v640_v9  ;;  %v656_v28 = vld [vmem:[%s836_s1 + $0xf0] sm:$0xff]   ;;  %v660_v34 = vld [vmem:[%s836_s1 + $0xf8] sm:$0xff]   ;;  %v101_v39 = vcombine.high %v513_v38, %v513_v38  ;;  %v108_v40 = vrot.slane %v513_v38, %v107_v35  ;;  %v663_v43 = vld [vmem:[%s838_s3] sm:$0xff]  }
   0xb   :  { %v657_v31 = vld [vmem:[%s836_s1 + $0x30] sm:$0xff]   ;;  %v661_v36 = vld [vmem:[%s836_s1 + $0x38] sm:$0xff]   ;;  %v664_v46 = vld [vmem:[%s838_s3 + $0x8] sm:$0xff]  }
   0xc   :  { %560 = vmatpush3.bf16.msra.mxu0 %v641_v10  ;;  %v658_v32 = vld [vmem:[%s836_s1 + $0xb0] sm:$0xff]   ;;  %v662_v37 = vld [vmem:[%s836_s1 + $0xb8] sm:$0xff]   ;;  %v115_v42 = vrot.slane %v101_v39, %v107_v35  ;;  %v116_v44 = vcombine.high %v108_v40, %v108_v40  ;;  %v667_v49 = vld [vmem:[%s838_s3 + $0x20] sm:$0xff]  }
   0xd   :  { %582 = vmatpush3.bf16.msra.mxu1 %v642_v11  ;;  %561 = vmatprep.subr.bf16.mxu0 %v643_v12  ;;  %v665_v47 = vld [vmem:[%s838_s3 + $0x10] sm:$0xff]   ;;  %v666_v48 = vld [vmem:[%s838_s3 + $0x18] sm:$0xff]   ;;  %v668_v50 = vld [vmem:[%s838_s3 + $0x28] sm:$0xff]  }
   0xe   :  { %583 = vmatprep.subr.bf16.mxu1 %v644_v13  ;;  %346 = vmatprep.mubr.bf16.mxu0 %v115_v42  ;;  %v117_v45 = vcombine.high %v115_v42, %v115_v42  ;;  %v669_v51 = vld [vmem:[%s838_s3 + $0x30] sm:$0xff]   ;;  %v670_v52 = vld [vmem:[%s838_s3 + $0x38] sm:$0xff]   ;;  %v512_v54 = vld [vmem:[%s839_s2] ss:$0 sm:$0xff] }
   0xf   :  { %v546_v4 = vld [vmem:[%s840_s4] ss:$0 sm:$0xff] }
  0x10   :  { %562 = vmatpush3.bf16.msra.mxu0 %v645_v14  ;;  %386 = vmatprep.mubr.bf16.mxu1 %v117_v45 }
  0x11   :  { %584 = vmatpush3.bf16.msra.mxu1 %v646_v15  ;;  %563 = vmatprep.subr.bf16.mxu0 %v647_v16 }
  0x12   :  { %585 = vmatprep.subr.bf16.mxu1 %v648_v17 }
  0x14   :  { %564 = vmatpush3.bf16.msra.mxu0 %v649_v18 }
  0x15   :  { %586 = vmatpush3.bf16.msra.mxu1 %v650_v19  ;;  %565 = vmatprep.subr.bf16.mxu0 %v651_v20 }
  0x16   :  { %587 = vmatprep.subr.bf16.mxu1 %v652_v21 }
  0x18   :  { %566 = vmatpush3.bf16.msra.mxu0 %v653_v25 }
  0x19   :  { %588 = vmatpush3.bf16.msra.mxu1 %v654_v26  ;;  %567 = vmatprep.subr.bf16.mxu0 %v655_v27 }
  0x1a   :  { %589 = vmatprep.subr.bf16.mxu1 %v656_v28 }
  0x1c   :  { %568 = vmatpush3.bf16.msra.mxu0 %v657_v31 }
  0x1d   :  { %590 = vmatpush3.bf16.msra.mxu1 %v658_v32  ;;  %569 = vmatprep.subr.bf16.mxu0 %v659_v33 }
  0x1e   :  { %591 = vmatprep.subr.bf16.mxu1 %v660_v34 }
  0x20   :  { %570 = vmatpush3.bf16.msra.mxu0 %v661_v36 }
  0x21   :  { %592 = vmatpush3.bf16.msra.mxu1 %v662_v37  ;;  %608 = vmatprep.subr.bf16.mxu0 %v672_v41 }
  0x23   :  { %347 = vmatmul.mubr.bf16.vlgmr.msra.gmra.mrb[0].mxu0 %v108_v40 }
  0x24   :  { %609 = vmatpush3.bf16.msra.mxu0 %v663_v43  ;;  %387 = vmatmul.mubr.bf16.vlgmr.msra.gmra.mrb[0].mxu1 %v116_v44 }
  0x25   :  { %610 = vmatprep.subr.bf16.mxu0 %v672_v41  ;;  %624 = vmatprep.mubr.msk.bf16.mxu0 %vm673_vm0, %v672_v41 }
  0x28   :  { %611 = vmatpush3.bf16.msra.mxu0 %v664_v46 }
  0x29   :  { %612 = vmatprep.subr.bf16.mxu0 %v672_v41 }
  0x2c   :  { %613 = vmatpush3.bf16.msra.mxu0 %v665_v47 }
  0x2d   :  { %614 = vmatprep.subr.bf16.mxu0 %v672_v41 }
  0x30   :  { %615 = vmatpush3.bf16.msra.mxu0 %v666_v48 }
  0x31   :  { %616 = vmatprep.subr.bf16.mxu0 %v672_v41 }
  0x34   :  { %617 = vmatpush3.bf16.msra.mxu0 %v667_v49 }
  0x35   :  { %618 = vmatprep.subr.bf16.mxu0 %v672_v41 }
  0x38   :  { %619 = vmatpush3.bf16.msra.mxu0 %v668_v50 }
  0x39   :  { %620 = vmatprep.subr.bf16.mxu0 %v672_v41 }
  0x3c   :  { %621 = vmatpush3.bf16.msra.mxu0 %v669_v51 }
  0x3d   :  { %622 = vmatprep.subr.bf16.mxu0 %v672_v41 }
  0x40   :  { %623 = vmatpush3.bf16.msra.mxu0 %v670_v52 }
  0xf6   :  { %v571_v53 = vpop.f32.mrb[0].mxu0 }
  0xf7   :  { %v572_v55 = vpop.f32.mrb[1].mxu0  ;;  %v593_v56 = vpop.f32.mrb[0].mxu1 }
  0xf8   :  { %v573_v57 = vadd.f32 %v572_v55, %v571_v53  ;;  %v574_v58 = vpop.f32.mrb[2].mxu0  ;;  %v594_v59 = vpop.f32.mrb[1].mxu1 }
  0xf9   :  { %v575_v60 = vpop.f32.mrb[3].mxu0  ;;  %v595_v62 = vadd.f32 %v594_v59, %v593_v56  ;;  %v596_v63 = vpop.f32.mrb[2].mxu1 }
  0xfa   :  { %v349_v61 = vadd.f32 %v573_v57, %v512_v54  ;;  %v597_v0 = vpop.f32.mrb[3].mxu1 }
  0xfc   :  { %v389_v1 = vadd.f32 %v595_v62, %v349_v61 }
  0xfe   :  { %v394_v2 = vmax.f32 %v389_v1, 0.0 }
 0x100   :  { %v395_v3 = vpack.c.bf16 %v394_v2, %v394_v2 }
 0x102   :  { %625 = vmatmul.mubr.bf16.vlgmr.msra.gmra.mrb[4].mxu0 %v395_v3 }
 0x1d5   :  { %v501_v5 = vpop.f32.mrb[4].mxu0 }
 0x1d6   :  { %v502_v6 = vadd.f32 %v546_v4, %v501_v5  ;;  %v626_v7 = vpop.f32.mrb[5].mxu0 }
 0x1d7   :  { %v504_v8 = vpop.f32.mrb[6].mxu0 }
 0x1d8   :  { %507 = vst [vmem:[%s841_s5] sm:$0x3] %v502_v6  ;;  %v627_v9 = vpop.f32.mrb[7].mxu0 }

// kernel: critic_forward.6
= control target key start
LH: loop header
LB: loop body
LE: loop exit
PB: predicated region body
PF: predicated region fallthrough
CT: control target
= control target key end

     0   :  { %vm3031_vm0 = vmmov 0   ;;  %s3705_s1 = inlined_call_operand.vmem [shape: bf16[3200,128], index: 1, kind: input, shape index: {}]   ;;  %s3706_s0 = inlined_call_operand.vmem [shape: bf16[8,3200], index: 0, kind: input, shape index: {}]   ;;  %s3707_s2 = inlined_call_operand.vmem [shape: f32[1,128], index: 2, kind: input, shape index: {}]   ;;  %s3708_s3 = inlined_call_operand.vmem [shape: f32[1,128], index: 3, kind: input, shape index: {}]   ;;  %s3709_s4 = inlined_call_operand.vmem [shape: bf16[8,128], index: 4, kind: output, shape index: {}]  }
   0x1   :  { %v2803_v0 = vld [vmem:[%s3705_s1 + $0x40] sm:$0xff]   ;;  %v2807_v4 = vld [vmem:[%s3705_s1 + $0x48] sm:$0xff]   ;;  %v2811_v8 = vld [vmem:[%s3705_s1 + $0x50] sm:$0xff]  }
   0x2   :  { %v2804_v1 = vld [vmem:[%s3705_s1 + $0xc0] sm:$0xff]   ;;  %2508 = vmatprep.subr.bf16.mxu0 %v2803_v0  ;;  %v2808_v5 = vld [vmem:[%s3705_s1 + $0xc8] sm:$0xff]   ;;  %v2812_v9 = vld [vmem:[%s3705_s1 + $0xd0] sm:$0xff]  }
   0x3   :  { %v2805_v2 = vld [vmem:[%s3705_s1] sm:$0xff]   ;;  %2530 = vmatprep.subr.bf16.mxu1 %v2804_v1  ;;  %v2809_v6 = vld [vmem:[%s3705_s1 + $0x8] sm:$0xff]   ;;  %v2813_v10 = vld [vmem:[%s3705_s1 + $0x10] sm:$0xff]  }
   0x4   :  { %v2806_v3 = vld [vmem:[%s3705_s1 + $0x80] sm:$0xff]   ;;  %2509 = vmatpush3.bf16.msra.mxu0 %v2805_v2  ;;  %v2810_v7 = vld [vmem:[%s3705_s1 + $0x88] sm:$0xff]   ;;  %v2814_v11 = vld [vmem:[%s3705_s1 + $0x90] sm:$0xff]  }
   0x5   :  { %2531 = vmatpush3.bf16.msra.mxu1 %v2806_v3  ;;  %2510 = vmatprep.subr.bf16.mxu0 %v2807_v4  ;;  %v2815_v12 = vld [vmem:[%s3705_s1 + $0x58] sm:$0xff]   ;;  %v2819_v16 = vld [vmem:[%s3705_s1 + $0x60] sm:$0xff]   ;;  %v2823_v20 = vld [vmem:[%s3705_s1 + $0x68] sm:$0xff]  }
   0x6   :  { %2532 = vmatprep.subr.bf16.mxu1 %v2808_v5  ;;  %v2816_v13 = vld [vmem:[%s3705_s1 + $0xd8] sm:$0xff]   ;;  %v2820_v17 = vld [vmem:[%s3705_s1 + $0xe0] sm:$0xff]   ;;  %v2824_v21 = vld [vmem:[%s3705_s1 + $0xe8] sm:$0xff]  }
   0x7   :  { %v2817_v14 = vld [vmem:[%s3705_s1 + $0x18] sm:$0xff]   ;;  %v2821_v18 = vld [vmem:[%s3705_s1 + $0x20] sm:$0xff]   ;;  %v2825_v22 = vld [vmem:[%s3705_s1 + $0x28] sm:$0xff]  }
   0x8   :  { %2511 = vmatpush3.bf16.msra.mxu0 %v2809_v6  ;;  %v2818_v15 = vld [vmem:[%s3705_s1 + $0x98] sm:$0xff]   ;;  %v2822_v19 = vld [vmem:[%s3705_s1 + $0xa0] sm:$0xff]   ;;  %v2826_v23 = vld [vmem:[%s3705_s1 + $0xa8] sm:$0xff]  }
   0x9   :  { %2533 = vmatpush3.bf16.msra.mxu1 %v2810_v7  ;;  %2512 = vmatprep.subr.bf16.mxu0 %v2811_v8  ;;  %v2827_v24 = vld [vmem:[%s3705_s1 + $0x70] sm:$0xff]   ;;  %v2831_v28 = vld [vmem:[%s3705_s1 + $0x78] sm:$0xff]   ;;  %v18_v32 = vld [vmem:[%s3706_s0] sm:$0xff] }
   0xa   :  { %2534 = vmatprep.subr.bf16.mxu1 %v2812_v9  ;;  %v2828_v25 = vld [vmem:[%s3705_s1 + $0xf0] sm:$0xff]   ;;  %v2832_v29 = vld [vmem:[%s3705_s1 + $0xf8] sm:$0xff]   ;;  %v19_v33 = vld [vmem:[%s3706_s0 + $0x8] sm:$0xff]  ;;  %v2281_v34 = vcombine.low %v18_v32, %v18_v32  ;;  %v2282_v35 = vcombine.high %v18_v32, %v18_v32 }
   0xb   :  { %v2829_v26 = vld [vmem:[%s3705_s1 + $0x30] sm:$0xff]   ;;  %v2833_v30 = vld [vmem:[%s3705_s1 + $0x38] sm:$0xff]   ;;  %v2283_v36 = vcombine.low %v19_v33, %v19_v33  ;;  %v2284_v37 = vcombine.high %v19_v33, %v19_v33  ;;  %v2839_v38 = vld [vmem:[%s3705_s1 + $0x140] sm:$0xff]  }
   0xc   :  { %2513 = vmatpush3.bf16.msra.mxu0 %v2813_v10  ;;  %v2830_v27 = vld [vmem:[%s3705_s1 + $0xb0] sm:$0xff]   ;;  %v2834_v31 = vld [vmem:[%s3705_s1 + $0xb8] sm:$0xff]   ;;  %v2840_v39 = vld [vmem:[%s3705_s1 + $0x100] sm:$0xff]   ;;  %1751 = vmatprep.mubr.bf16.mxu0 %v2282_v35 }
   0xd   :  { %2535 = vmatpush3.bf16.msra.mxu1 %v2814_v11  ;;  %2514 = vmatprep.subr.bf16.mxu0 %v2815_v12  ;;  %v2841_v40 = vld [vmem:[%s3705_s1 + $0x1c0] sm:$0xff]   ;;  %v2843_v42 = vld [vmem:[%s3705_s1 + $0x148] sm:$0xff]   ;;  %v2847_v46 = vld [vmem:[%s3705_s1 + $0x150] sm:$0xff]  }
   0xe   :  { %2536 = vmatprep.subr.bf16.mxu1 %v2816_v13  ;;  %1791 = vmatprep.mubr.bf16.mxu1 %v2284_v37  ;;  %v2842_v41 = vld [vmem:[%s3705_s1 + $0x180] sm:$0xff]   ;;  %v2844_v43 = vld [vmem:[%s3705_s1 + $0x108] sm:$0xff]   ;;  %v2848_v47 = vld [vmem:[%s3705_s1 + $0x110] sm:$0xff]  }
   0xf   :  { %v2845_v44 = vld [vmem:[%s3705_s1 + $0x1c8] sm:$0xff]   ;;  %v2849_v48 = vld [vmem:[%s3705_s1 + $0x1d0] sm:$0xff]   ;;  %v2851_v50 = vld [vmem:[%s3705_s1 + $0x158] sm:$0xff]  }
  0x10   :  { %2515 = vmatpush3.bf16.msra.mxu0 %v2817_v14  ;;  %v2846_v45 = vld [vmem:[%s3705_s1 + $0x188] sm:$0xff]   ;;  %v2850_v49 = vld [vmem:[%s3705_s1 + $0x190] sm:$0xff]   ;;  %v2852_v51 = vld [vmem:[%s3705_s1 + $0x118] sm:$0xff]  }
  0x11   :  { %2537 = vmatpush3.bf16.msra.mxu1 %v2818_v15  ;;  %2516 = vmatprep.subr.bf16.mxu0 %v2819_v16  ;;  %v2853_v52 = vld [vmem:[%s3705_s1 + $0x1d8] sm:$0xff]   ;;  %v2855_v54 = vld [vmem:[%s3705_s1 + $0x160] sm:$0xff]   ;;  %v2859_v58 = vld [vmem:[%s3705_s1 + $0x168] sm:$0xff]  }
  0x12   :  { %2538 = vmatprep.subr.bf16.mxu1 %v2820_v17  ;;  %v2854_v53 = vld [vmem:[%s3705_s1 + $0x198] sm:$0xff]   ;;  %v2856_v55 = vld [vmem:[%s3705_s1 + $0x120] sm:$0xff]   ;;  %v2860_v59 = vld [vmem:[%s3705_s1 + $0x128] sm:$0xff]  }
  0x13   :  { %v2857_v56 = vld [vmem:[%s3705_s1 + $0x1e0] sm:$0xff]   ;;  %v2861_v60 = vld [vmem:[%s3705_s1 + $0x1e8] sm:$0xff]   ;;  %v2863_v62 = vld [vmem:[%s3705_s1 + $0x170] sm:$0xff]  }
  0x14   :  { %2517 = vmatpush3.bf16.msra.mxu0 %v2821_v18  ;;  %v2858_v57 = vld [vmem:[%s3705_s1 + $0x1a0] sm:$0xff]   ;;  %v2862_v61 = vld [vmem:[%s3705_s1 + $0x1a8] sm:$0xff]   ;;  %v2864_v63 = vld [vmem:[%s3705_s1 + $0x130] sm:$0xff]  }
  0x15   :  { %2539 = vmatpush3.bf16.msra.mxu1 %v2822_v19  ;;  %2518 = vmatprep.subr.bf16.mxu0 %v2823_v20  ;;  %v2865_v0 = vld [vmem:[%s3705_s1 + $0x1f0] sm:$0xff]   ;;  %v2867_v2 = vld [vmem:[%s3705_s1 + $0x178] sm:$0xff]   ;;  %v2873_v9 = vld [vmem:[%s3705_s1 + $0x240] sm:$0xff]  }
  0x16   :  { %2540 = vmatprep.subr.bf16.mxu1 %v2824_v21  ;;  %v2866_v1 = vld [vmem:[%s3705_s1 + $0x1b0] sm:$0xff]   ;;  %v2868_v3 = vld [vmem:[%s3705_s1 + $0x138] sm:$0xff]   ;;  %v2876_v13 = vld [vmem:[%s3705_s1 + $0x200] sm:$0xff]  }
  0x17   :  { %v2869_v4 = vld [vmem:[%s3705_s1 + $0x1f8] sm:$0xff]   ;;  %v20_v5 = vld [vmem:[%s3706_s0 + $0x10] sm:$0xff]  ;;  %v2877_v14 = vld [vmem:[%s3705_s1 + $0x2c0] sm:$0xff]  }
  0x18   :  { %2519 = vmatpush3.bf16.msra.mxu0 %v2825_v22  ;;  %v2286_v6 = vcombine.high %v20_v5, %v20_v5  ;;  %v2872_v7 = vld [vmem:[%s3705_s1 + $0x1b8] sm:$0xff]   ;;  %v2285_v8 = vcombine.low %v20_v5, %v20_v5  ;;  %v2878_v15 = vld [vmem:[%s3705_s1 + $0x280] sm:$0xff]   ;;  %v2879_v16 = vld [vmem:[%s3705_s1 + $0x248] sm:$0xff]  }
  0x19   :  { %2541 = vmatpush3.bf16.msra.mxu1 %v2826_v23  ;;  %2520 = vmatprep.subr.bf16.mxu0 %v2827_v24  ;;  %v21_v10 = vld [vmem:[%s3706_s0 + $0x18] sm:$0xff]  ;;  %v2880_v17 = vld [vmem:[%s3705_s1 + $0x208] sm:$0xff]   ;;  %v2883_v20 = vld [vmem:[%s3705_s1 + $0x250] sm:$0xff]  }
  0x1a   :  { %2542 = vmatprep.subr.bf16.mxu1 %v2828_v25  ;;  %v2287_v11 = vcombine.low %v21_v10, %v21_v10  ;;  %v2288_v12 = vcombine.high %v21_v10, %v21_v10  ;;  %v2881_v18 = vld [vmem:[%s3705_s1 + $0x2c8] sm:$0xff]   ;;  %v2884_v21 = vld [vmem:[%s3705_s1 + $0x210] sm:$0xff]   ;;  %v2887_v24 = vld [vmem:[%s3705_s1 + $0x258] sm:$0xff]  }
  0x1b   :  { %v2882_v19 = vld [vmem:[%s3705_s1 + $0x288] sm:$0xff]   ;;  %v2885_v22 = vld [vmem:[%s3705_s1 + $0x2d0] sm:$0xff]   ;;  %v2888_v25 = vld [vmem:[%s3705_s1 + $0x218] sm:$0xff]  }
  0x1c   :  { %2521 = vmatpush3.bf16.msra.mxu0 %v2829_v26  ;;  %v2886_v23 = vld [vmem:[%s3705_s1 + $0x290] sm:$0xff]   ;;  %v2889_v26 = vld [vmem:[%s3705_s1 + $0x2d8] sm:$0xff]   ;;  %v2895_v32 = vld [vmem:[%s3705_s1 + $0x268] sm:$0xff]  }
  0x1d   :  { %2543 = vmatpush3.bf16.msra.mxu1 %v2830_v27  ;;  %2522 = vmatprep.subr.bf16.mxu0 %v2831_v28  ;;  %v2890_v27 = vld [vmem:[%s3705_s1 + $0x298] sm:$0xff]   ;;  %v2891_v28 = vld [vmem:[%s3705_s1 + $0x260] sm:$0xff]   ;;  %v2896_v33 = vld [vmem:[%s3705_s1 + $0x228] sm:$0xff]  }
  0x1e   :  { %2544 = vmatprep.subr.bf16.mxu1 %v2832_v29  ;;  %v2892_v29 = vld [vmem:[%s3705_s1 + $0x220] sm:$0xff]   ;;  %v2898_v35 = vld [vmem:[%s3705_s1 + $0x2a8] sm:$0xff]   ;;  %v2900_v37 = vld [vmem:[%s3705_s1 + $0x230] sm:$0xff]  }
  0x1f   :  { %v2930_v5 = vld [vmem:[%s3705_s1 + $0x3a0] sm:$0xff]   ;;  %v2935_v10 = vld [vmem:[%s3705_s1 + $0x370] sm:$0xff]  }
  0x20   :  { %2523 = vmatpush3.bf16.msra.mxu0 %v2833_v30  ;;  %v2893_v30 = vld [vmem:[%s3705_s1 + $0x2e0] sm:$0xff]  }
  0x21   :  { %2545 = vmatpush3.bf16.msra.mxu1 %v2834_v31  ;;  %2552 = vmatprep.subr.bf16.mxu0 %v2839_v38  ;;  %v2894_v31 = vld [vmem:[%s3705_s1 + $0x2a0] sm:$0xff]   ;;  %v2901_v38 = vld [vmem:[%s3705_s1 + $0x2f0] sm:$0xff]  }
  0x22   :  { %2574 = vmatprep.subr.bf16.mxu1 %v2841_v40  ;;  %v2903_v40 = vld [vmem:[%s3705_s1 + $0x278] sm:$0xff]  }
  0x23   :  { %1752 = vmatmul.mubr.bf16.vlgmr.msra.gmra.mrb[0].mxu0 %v2281_v34  ;;  %v2897_v34 = vld [vmem:[%s3705_s1 + $0x2e8] sm:$0xff]  }
  0x24   :  { %1792 = vmatmul.mubr.bf16.vlgmr.msra.gmra.mrb[0].mxu1 %v2283_v36  ;;  %2553 = vmatpush3.bf16.msra.mxu0 %v2840_v39  ;;  %v2899_v36 = vld [vmem:[%s3705_s1 + $0x270] sm:$0xff]  }
  0x25   :  { %2575 = vmatpush3.bf16.msra.mxu1 %v2842_v41  ;;  %2554 = vmatprep.subr.bf16.mxu0 %v2843_v42  ;;  %v2902_v39 = vld [vmem:[%s3705_s1 + $0x2b0] sm:$0xff]   ;;  %v2904_v41 = vld [vmem:[%s3705_s1 + $0x238] sm:$0xff]  }
  0x26   :  { %2576 = vmatprep.subr.bf16.mxu1 %v2845_v44  ;;  %1831 = vmatprep.mubr.bf16.mxu0 %v2286_v6  ;;  %v2905_v42 = vld [vmem:[%s3705_s1 + $0x2f8] sm:$0xff]   ;;  %v2931_v6 = vld [vmem:[%s3705_s1 + $0x368] sm:$0xff]  }
  0x27   :  { %1871 = vmatprep.mubr.bf16.mxu1 %v2288_v12  ;;  %v2937_v12 = vld [vmem:[%s3705_s1 + $0x3f0] sm:$0xff]  }
  0x28   :  { %2555 = vmatpush3.bf16.msra.mxu0 %v2844_v43  ;;  %v22_v43 = vld [vmem:[%s3706_s0 + $0x20] sm:$0xff] }
  0x29   :  { %2577 = vmatpush3.bf16.msra.mxu1 %v2846_v45  ;;  %2556 = vmatprep.subr.bf16.mxu0 %v2847_v46  ;;  %v2289_v44 = vcombine.low %v22_v43, %v22_v43  ;;  %v2290_v45 = vcombine.high %v22_v43, %v22_v43  ;;  %v2908_v46 = vld [vmem:[%s3705_s1 + $0x2b8] sm:$0xff]   ;;  %v2966_v43 = vld [vmem:[%s3705_s1 + $0x4a0] sm:$0xff]  }
  0x2a   :  { %2578 = vmatprep.subr.bf16.mxu1 %v2849_v48  ;;  %v23_v48 = vld [vmem:[%s3706_s0 + $0x28] sm:$0xff] }
  0x2c   :  { %2557 = vmatpush3.bf16.msra.mxu0 %v2848_v47  ;;  %v2909_v47 = vld [vmem:[%s3705_s1 + $0x340] sm:$0xff]  }
  0x2d   :  { %2579 = vmatpush3.bf16.msra.mxu1 %v2850_v49  ;;  %2558 = vmatprep.subr.bf16.mxu0 %v2851_v50  ;;  %v2291_v49 = vcombine.low %v23_v48, %v23_v48  ;;  %v2292_v50 = vcombine.high %v23_v48, %v23_v48  ;;  %v2971_v48 = vld [vmem:[%s3705_s1 + $0x470] sm:$0xff]  }
  0x2e   :  { %2580 = vmatprep.subr.bf16.mxu1 %v2853_v52  ;;  %v2913_v52 = vld [vmem:[%s3705_s1 + $0x3c0] sm:$0xff]  }
  0x30   :  { %2559 = vmatpush3.bf16.msra.mxu0 %v2852_v51  ;;  %v2912_v51 = vld [vmem:[%s3705_s1 + $0x300] sm:$0xff]  }
  0x31   :  { %2581 = vmatpush3.bf16.msra.mxu1 %v2854_v53  ;;  %2560 = vmatprep.subr.bf16.mxu0 %v2855_v54  ;;  %v2914_v53 = vld [vmem:[%s3705_s1 + $0x380] sm:$0xff]   ;;  %v2915_v54 = vld [vmem:[%s3705_s1 + $0x348] sm:$0xff]  }
  0x32   :  { %2582 = vmatprep.subr.bf16.mxu1 %v2857_v56  ;;  %v2917_v56 = vld [vmem:[%s3705_s1 + $0x3c8] sm:$0xff]  }
  0x34   :  { %2561 = vmatpush3.bf16.msra.mxu0 %v2856_v55  ;;  %v2916_v55 = vld [vmem:[%s3705_s1 + $0x308] sm:$0xff]  }
  0x35   :  { %2583 = vmatpush3.bf16.msra.mxu1 %v2858_v57  ;;  %2562 = vmatprep.subr.bf16.mxu0 %v2859_v58  ;;  %v2918_v57 = vld [vmem:[%s3705_s1 + $0x388] sm:$0xff]   ;;  %v2919_v58 = vld [vmem:[%s3705_s1 + $0x350] sm:$0xff]  }
  0x36   :  { %2584 = vmatprep.subr.bf16.mxu1 %v2861_v60  ;;  %v2921_v60 = vld [vmem:[%s3705_s1 + $0x3d0] sm:$0xff]  }
  0x38   :  { %2563 = vmatpush3.bf16.msra.mxu0 %v2860_v59  ;;  %v2920_v59 = vld [vmem:[%s3705_s1 + $0x310] sm:$0xff]  }
  0x39   :  { %2585 = vmatpush3.bf16.msra.mxu1 %v2862_v61  ;;  %2564 = vmatprep.subr.bf16.mxu0 %v2863_v62  ;;  %v2922_v61 = vld [vmem:[%s3705_s1 + $0x390] sm:$0xff]   ;;  %v2923_v62 = vld [vmem:[%s3705_s1 + $0x358] sm:$0xff]  }
  0x3a   :  { %2586 = vmatprep.subr.bf16.mxu1 %v2865_v0  ;;  %v2925_v0 = vld [vmem:[%s3705_s1 + $0x3d8] sm:$0xff]  }
  0x3c   :  { %2565 = vmatpush3.bf16.msra.mxu0 %v2864_v63  ;;  %v2924_v63 = vld [vmem:[%s3705_s1 + $0x318] sm:$0xff]  }
  0x3d   :  { %2587 = vmatpush3.bf16.msra.mxu1 %v2866_v1  ;;  %2566 = vmatprep.subr.bf16.mxu0 %v2867_v2  ;;  %v2926_v1 = vld [vmem:[%s3705_s1 + $0x398] sm:$0xff]   ;;  %v2927_v2 = vld [vmem:[%s3705_s1 + $0x360] sm:$0xff]  }
  0x3e   :  { %2588 = vmatprep.subr.bf16.mxu1 %v2869_v4  ;;  %v2929_v4 = vld [vmem:[%s3705_s1 + $0x3e0] sm:$0xff]  }
  0x40   :  { %2567 = vmatpush3.bf16.msra.mxu0 %v2868_v3  ;;  %v2928_v3 = vld [vmem:[%s3705_s1 + $0x320] sm:$0xff]  }
  0x41   :  { %2589 = vmatpush3.bf16.msra.mxu1 %v2872_v7  ;;  %2596 = vmatprep.subr.bf16.mxu0 %v2873_v9  ;;  %v2932_v7 = vld [vmem:[%s3705_s1 + $0x328] sm:$0xff]  }
  0x42   :  { %2618 = vmatprep.subr.bf16.mxu1 %v2877_v14  ;;  %v2934_v9 = vld [vmem:[%s3705_s1 + $0x3a8] sm:$0xff]   ;;  %v2939_v14 = vld [vmem:[%s3705_s1 + $0x378] sm:$0xff]  }
  0x43   :  { %1832 = vmatmul.mubr.bf16.vlgmr.msra.gmra.mrb[4].mxu0 %v2285_v8  ;;  %v2933_v8 = vld [vmem:[%s3705_s1 + $0x3e8] sm:$0xff]  }
  0x44   :  { %2597 = vmatpush3.bf16.msra.mxu0 %v2876_v13  ;;  %1872 = vmatmul.mubr.bf16.vlgmr.msra.gmra.mrb[4].mxu1 %v2287_v11  ;;  %v2936_v11 = vld [vmem:[%s3705_s1 + $0x330] sm:$0xff]  }
  0x45   :  { %2619 = vmatpush3.bf16.msra.mxu1 %v2878_v15  ;;  %2598 = vmatprep.subr.bf16.mxu0 %v2879_v16  ;;  %v2938_v13 = vld [vmem:[%s3705_s1 + $0x3b0] sm:$0xff]   ;;  %v2940_v15 = vld [vmem:[%s3705_s1 + $0x338] sm:$0xff]  }
  0x46   :  { %2620 = vmatprep.subr.bf16.mxu1 %v2881_v18  ;;  %1911 = vmatprep.mubr.bf16.mxu0 %v2290_v45  ;;  %v2941_v16 = vld [vmem:[%s3705_s1 + $0x3f8] sm:$0xff]   ;;  %v2968_v45 = vld [vmem:[%s3705_s1 + $0x428] sm:$0xff]  }
  0x47   :  { %1951 = vmatprep.mubr.bf16.mxu1 %v2292_v50  ;;  %v2973_v50 = vld [vmem:[%s3705_s1 + $0x4f0] sm:$0xff]  }
  0x48   :  { %2599 = vmatpush3.bf16.msra.mxu0 %v2880_v17  ;;  %v24_v17 = vld [vmem:[%s3706_s0 + $0x30] sm:$0xff] }
  0x49   :  { %2621 = vmatpush3.bf16.msra.mxu1 %v2882_v19  ;;  %2600 = vmatprep.subr.bf16.mxu0 %v2883_v20  ;;  %v2293_v18 = vcombine.low %v24_v17, %v24_v17  ;;  %v2294_v19 = vcombine.high %v24_v17, %v24_v17  ;;  %v2944_v20 = vld [vmem:[%s3705_s1 + $0x3b8] sm:$0xff]   ;;  %v3002_v17 = vld [vmem:[%s3705_s1 + $0x5a0] sm:$0xff]  }
  0x4a   :  { %2622 = vmatprep.subr.bf16.mxu1 %v2885_v22  ;;  %v25_v22 = vld [vmem:[%s3706_s0 + $0x38] sm:$0xff] }
  0x4c   :  { %2601 = vmatpush3.bf16.msra.mxu0 %v2884_v21  ;;  %v2945_v21 = vld [vmem:[%s3705_s1 + $0x440] sm:$0xff]  }
  0x4d   :  { %2623 = vmatpush3.bf16.msra.mxu1 %v2886_v23  ;;  %2602 = vmatprep.subr.bf16.mxu0 %v2887_v24  ;;  %v2295_v23 = vcombine.low %v25_v22, %v25_v22  ;;  %v2296_v24 = vcombine.high %v25_v22, %v25_v22  ;;  %v3007_v22 = vld [vmem:[%s3705_s1 + $0x570] sm:$0xff]  }
  0x4e   :  { %2624 = vmatprep.subr.bf16.mxu1 %v2889_v26  ;;  %v2949_v26 = vld [vmem:[%s3705_s1 + $0x4c0] sm:$0xff]  }
  0x50   :  { %2603 = vmatpush3.bf16.msra.mxu0 %v2888_v25  ;;  %v2948_v25 = vld [vmem:[%s3705_s1 + $0x400] sm:$0xff]  }
  0x51   :  { %2625 = vmatpush3.bf16.msra.mxu1 %v2890_v27  ;;  %2604 = vmatprep.subr.bf16.mxu0 %v2891_v28  ;;  %v2950_v27 = vld [vmem:[%s3705_s1 + $0x480] sm:$0xff]   ;;  %v2951_v28 = vld [vmem:[%s3705_s1 + $0x448] sm:$0xff]  }
  0x52   :  { %2626 = vmatprep.subr.bf16.mxu1 %v2893_v30  ;;  %v2953_v30 = vld [vmem:[%s3705_s1 + $0x4c8] sm:$0xff]  }
  0x54   :  { %2605 = vmatpush3.bf16.msra.mxu0 %v2892_v29  ;;  %v2952_v29 = vld [vmem:[%s3705_s1 + $0x408] sm:$0xff]  }
  0x55   :  { %2627 = vmatpush3.bf16.msra.mxu1 %v2894_v31  ;;  %2606 = vmatprep.subr.bf16.mxu0 %v2895_v32  ;;  %v2954_v31 = vld [vmem:[%s3705_s1 + $0x488] sm:$0xff]   ;;  %v2955_v32 = vld [vmem:[%s3705_s1 + $0x450] sm:$0xff]  }
  0x56   :  { %2628 = vmatprep.subr.bf16.mxu1 %v2897_v34  ;;  %v2957_v34 = vld [vmem:[%s3705_s1 + $0x4d0] sm:$0xff]  }
  0x58   :  { %2607 = vmatpush3.bf16.msra.mxu0 %v2896_v33  ;;  %v2956_v33 = vld [vmem:[%s3705_s1 + $0x410] sm:$0xff]  }
  0x59   :  { %2629 = vmatpush3.bf16.msra.mxu1 %v2898_v35  ;;  %2608 = vmatprep.subr.bf16.mxu0 %v2899_v36  ;;  %v2958_v35 = vld [vmem:[%s3705_s1 + $0x490] sm:$0xff]   ;;  %v2959_v36 = vld [vmem:[%s3705_s1 + $0x458] sm:$0xff]  }
  0x5a   :  { %2630 = vmatprep.subr.bf16.mxu1 %v2901_v38  ;;  %v2961_v38 = vld [vmem:[%s3705_s1 + $0x4d8] sm:$0xff]  }
  0x5c   :  { %2609 = vmatpush3.bf16.msra.mxu0 %v2900_v37  ;;  %v2960_v37 = vld [vmem:[%s3705_s1 + $0x418] sm:$0xff]  }
  0x5d   :  { %2631 = vmatpush3.bf16.msra.mxu1 %v2902_v39  ;;  %2610 = vmatprep.subr.bf16.mxu0 %v2903_v40  ;;  %v2962_v39 = vld [vmem:[%s3705_s1 + $0x498] sm:$0xff]   ;;  %v2963_v40 = vld [vmem:[%s3705_s1 + $0x460] sm:$0xff]  }
  0x5e   :  { %2632 = vmatprep.subr.bf16.mxu1 %v2905_v42  ;;  %v2965_v42 = vld [vmem:[%s3705_s1 + $0x4e0] sm:$0xff]  }
  0x60   :  { %2611 = vmatpush3.bf16.msra.mxu0 %v2904_v41  ;;  %v2964_v41 = vld [vmem:[%s3705_s1 + $0x420] sm:$0xff]  }
  0x61   :  { %2633 = vmatpush3.bf16.msra.mxu1 %v2908_v46  ;;  %2640 = vmatprep.subr.bf16.mxu0 %v2909_v47  ;;  %v2969_v46 = vld [vmem:[%s3705_s1 + $0x4e8] sm:$0xff]  }
  0x62   :  { %2662 = vmatprep.subr.bf16.mxu1 %v2913_v52  ;;  %v2970_v47 = vld [vmem:[%s3705_s1 + $0x4a8] sm:$0xff]   ;;  %v2975_v52 = vld [vmem:[%s3705_s1 + $0x478] sm:$0xff]  }
  0x63   :  { %1912 = vmatmul.mubr.bf16.vlgmr.msra.gmra.mrb[8].mxu0 %v2289_v44  ;;  %v2967_v44 = vld [vmem:[%s3705_s1 + $0x468] sm:$0xff]  }
  0x64   :  { %2641 = vmatpush3.bf16.msra.mxu0 %v2912_v51  ;;  %1952 = vmatmul.mubr.bf16.vlgmr.msra.gmra.mrb[8].mxu1 %v2291_v49  ;;  %v2972_v49 = vld [vmem:[%s3705_s1 + $0x430] sm:$0xff]  }
  0x65   :  { %2663 = vmatpush3.bf16.msra.mxu1 %v2914_v53  ;;  %2642 = vmatprep.subr.bf16.mxu0 %v2915_v54  ;;  %v2974_v51 = vld [vmem:[%s3705_s1 + $0x4b0] sm:$0xff]   ;;  %v2976_v53 = vld [vmem:[%s3705_s1 + $0x438] sm:$0xff]  }
  0x66   :  { %2664 = vmatprep.subr.bf16.mxu1 %v2917_v56  ;;  %1991 = vmatprep.mubr.bf16.mxu0 %v2294_v19  ;;  %v2977_v54 = vld [vmem:[%s3705_s1 + $0x4f8] sm:$0xff]   ;;  %v3004_v19 = vld [vmem:[%s3705_s1 + $0x528] sm:$0xff]  }
  0x67   :  { %2031 = vmatprep.mubr.bf16.mxu1 %v2296_v24  ;;  %v3009_v24 = vld [vmem:[%s3705_s1 + $0x5f0] sm:$0xff]  }
  0x68   :  { %2643 = vmatpush3.bf16.msra.mxu0 %v2916_v55  ;;  %v26_v55 = vld [vmem:[%s3706_s0 + $0x40] sm:$0xff] }
  0x69   :  { %2665 = vmatpush3.bf16.msra.mxu1 %v2918_v57  ;;  %2644 = vmatprep.subr.bf16.mxu0 %v2919_v58  ;;  %v2297_v56 = vcombine.low %v26_v55, %v26_v55  ;;  %v2298_v57 = vcombine.high %v26_v55, %v26_v55  ;;  %v2980_v58 = vld [vmem:[%s3705_s1 + $0x4b8] sm:$0xff]  }
  0x6a   :  { %2666 = vmatprep.subr.bf16.mxu1 %v2921_v60  ;;  %v27_v60 = vld [vmem:[%s3706_s0 + $0x48] sm:$0xff] }
  0x6c   :  { %2645 = vmatpush3.bf16.msra.mxu0 %v2920_v59  ;;  %v2981_v59 = vld [vmem:[%s3705_s1 + $0x540] sm:$0xff]  }
  0x6d   :  { %2667 = vmatpush3.bf16.msra.mxu1 %v2922_v61  ;;  %2646 = vmatprep.subr.bf16.mxu0 %v2923_v62  ;;  %v2299_v61 = vcombine.low %v27_v60, %v27_v60  ;;  %v2300_v62 = vcombine.high %v27_v60, %v27_v60 }
  0x6e   :  { %2668 = vmatprep.subr.bf16.mxu1 %v2925_v0  ;;  %v2985_v0 = vld [vmem:[%s3705_s1 + $0x5c0] sm:$0xff]  }
  0x70   :  { %2647 = vmatpush3.bf16.msra.mxu0 %v2924_v63  ;;  %v2984_v63 = vld [vmem:[%s3705_s1 + $0x500] sm:$0xff]  }
  0x71   :  { %2669 = vmatpush3.bf16.msra.mxu1 %v2926_v1  ;;  %2648 = vmatprep.subr.bf16.mxu0 %v2927_v2  ;;  %v2986_v1 = vld [vmem:[%s3705_s1 + $0x580] sm:$0xff]   ;;  %v2987_v2 = vld [vmem:[%s3705_s1 + $0x548] sm:$0xff]  }
  0x72   :  { %2670 = vmatprep.subr.bf16.mxu1 %v2929_v4  ;;  %v2989_v4 = vld [vmem:[%s3705_s1 + $0x5c8] sm:$0xff]  }
  0x74   :  { %2649 = vmatpush3.bf16.msra.mxu0 %v2928_v3  ;;  %v2988_v3 = vld [vmem:[%s3705_s1 + $0x508] sm:$0xff]  }
  0x75   :  { %2671 = vmatpush3.bf16.msra.mxu1 %v2930_v5  ;;  %2650 = vmatprep.subr.bf16.mxu0 %v2931_v6  ;;  %v2990_v5 = vld [vmem:[%s3705_s1 + $0x588] sm:$0xff]   ;;  %v2991_v6 = vld [vmem:[%s3705_s1 + $0x550] sm:$0xff]  }
  0x76   :  { %2672 = vmatprep.subr.bf16.mxu1 %v2933_v8  ;;  %v2993_v8 = vld [vmem:[%s3705_s1 + $0x5d0] sm:$0xff]  }
  0x78   :  { %2651 = vmatpush3.bf16.msra.mxu0 %v2932_v7  ;;  %v2992_v7 = vld [vmem:[%s3705_s1 + $0x510] sm:$0xff]  }
  0x79   :  { %2673 = vmatpush3.bf16.msra.mxu1 %v2934_v9  ;;  %2652 = vmatprep.subr.bf16.mxu0 %v2935_v10  ;;  %v2994_v9 = vld [vmem:[%s3705_s1 + $0x590] sm:$0xff]   ;;  %v2995_v10 = vld [vmem:[%s3705_s1 + $0x558] sm:$0xff]  }
  0x7a   :  { %2674 = vmatprep.subr.bf16.mxu1 %v2937_v12  ;;  %v2997_v12 = vld [vmem:[%s3705_s1 + $0x5d8] sm:$0xff]  }
  0x7c   :  { %2653 = vmatpush3.bf16.msra.mxu0 %v2936_v11  ;;  %v2996_v11 = vld [vmem:[%s3705_s1 + $0x518] sm:$0xff]  }
  0x7d   :  { %2675 = vmatpush3.bf16.msra.mxu1 %v2938_v13  ;;  %2654 = vmatprep.subr.bf16.mxu0 %v2939_v14  ;;  %v2998_v13 = vld [vmem:[%s3705_s1 + $0x598] sm:$0xff]   ;;  %v2999_v14 = vld [vmem:[%s3705_s1 + $0x560] sm:$0xff]  }
  0x7e   :  { %2676 = vmatprep.subr.bf16.mxu1 %v2941_v16  ;;  %v3001_v16 = vld [vmem:[%s3705_s1 + $0x5e0] sm:$0xff]  }
  0x80   :  { %2655 = vmatpush3.bf16.msra.mxu0 %v2940_v15  ;;  %v3000_v15 = vld [vmem:[%s3705_s1 + $0x520] sm:$0xff]  }
  0x81   :  { %2677 = vmatpush3.bf16.msra.mxu1 %v2944_v20  ;;  %2684 = vmatprep.subr.bf16.mxu0 %v2945_v21  ;;  %v3005_v20 = vld [vmem:[%s3705_s1 + $0x5e8] sm:$0xff]  }
  0x82   :  { %2706 = vmatprep.subr.bf16.mxu1 %v2949_v26  ;;  %v3006_v21 = vld [vmem:[%s3705_s1 + $0x5a8] sm:$0xff]   ;;  %v3011_v26 = vld [vmem:[%s3705_s1 + $0x578] sm:$0xff]  }
  0x83   :  { %1992 = vmatmul.mubr.bf16.vlgmr.msra.gmra.mrb[12].mxu0 %v2293_v18  ;;  %v3003_v18 = vld [vmem:[%s3705_s1 + $0x568] sm:$0xff]  }
  0x84   :  { %2685 = vmatpush3.bf16.msra.mxu0 %v2948_v25  ;;  %2032 = vmatmul.mubr.bf16.vlgmr.msra.gmra.mrb[12].mxu1 %v2295_v23  ;;  %v3008_v23 = vld [vmem:[%s3705_s1 + $0x530] sm:$0xff]  }
  0x85   :  { %2707 = vmatpush3.bf16.msra.mxu1 %v2950_v27  ;;  %2686 = vmatprep.subr.bf16.mxu0 %v2951_v28  ;;  %v3010_v25 = vld [vmem:[%s3705_s1 + $0x5b0] sm:$0xff]   ;;  %v3012_v27 = vld [vmem:[%s3705_s1 + $0x538] sm:$0xff]  }
  0x86   :  { %2708 = vmatprep.subr.bf16.mxu1 %v2953_v30  ;;  %2071 = vmatprep.mubr.bf16.mxu0 %v2298_v57  ;;  %v3013_v28 = vld [vmem:[%s3705_s1 + $0x5f8] sm:$0xff]  }
  0x87   :  { %2111 = vmatprep.mubr.bf16.mxu1 %v2300_v62 }
  0x88   :  { %2687 = vmatpush3.bf16.msra.mxu0 %v2952_v29  ;;  %v28_v29 = vld [vmem:[%s3706_s0 + $0x50] sm:$0xff] }
  0x89   :  { %2709 = vmatpush3.bf16.msra.mxu1 %v2954_v31  ;;  %2688 = vmatprep.subr.bf16.mxu0 %v2955_v32  ;;  %v2301_v30 = vcombine.low %v28_v29, %v28_v29  ;;  %v2302_v31 = vcombine.high %v28_v29, %v28_v29  ;;  %v3016_v32 = vld [vmem:[%s3705_s1 + $0x5b8] sm:$0xff]  }
  0x8a   :  { %2710 = vmatprep.subr.bf16.mxu1 %v2957_v34  ;;  %v3030_v34 = vmov 0.0  }
  0x8c   :  { %2689 = vmatpush3.bf16.msra.mxu0 %v2956_v33  ;;  %v29_v33 = vld [vmem:[%s3706_s0 + $0x58] sm:$0xff] }
  0x8d   :  { %2711 = vmatpush3.bf16.msra.mxu1 %v2958_v35  ;;  %2690 = vmatprep.subr.bf16.mxu0 %v2959_v36  ;;  %v2303_v35 = vcombine.low %v29_v33, %v29_v33  ;;  %v2304_v36 = vcombine.high %v29_v33, %v29_v33 }
  0x8e   :  { %2712 = vmatprep.subr.bf16.mxu1 %v2961_v38  ;;  %v3020_v38 = vld [vmem:[%s3705_s1 + $0x608] sm:$0xff]  }
  0x90   :  { %2691 = vmatpush3.bf16.msra.mxu0 %v2960_v37  ;;  %v3019_v37 = vld [vmem:[%s3705_s1 + $0x600] sm:$0xff]  }
  0x91   :  { %2713 = vmatpush3.bf16.msra.mxu1 %v2962_v39  ;;  %2692 = vmatprep.subr.bf16.mxu0 %v2963_v40  ;;  %v3021_v39 = vld [vmem:[%s3705_s1 + $0x610] sm:$0xff]   ;;  %v3022_v40 = vld [vmem:[%s3705_s1 + $0x618] sm:$0xff]  }
  0x92   :  { %2714 = vmatprep.subr.bf16.mxu1 %v2965_v42  ;;  %v3024_v42 = vld [vmem:[%s3705_s1 + $0x628] sm:$0xff]  }
  0x94   :  { %2693 = vmatpush3.bf16.msra.mxu0 %v2964_v41  ;;  %v3023_v41 = vld [vmem:[%s3705_s1 + $0x620] sm:$0xff]  }
  0x95   :  { %2715 = vmatpush3.bf16.msra.mxu1 %v2966_v43  ;;  %2694 = vmatprep.subr.bf16.mxu0 %v2967_v44  ;;  %v3025_v43 = vld [vmem:[%s3705_s1 + $0x630] sm:$0xff]   ;;  %v3026_v44 = vld [vmem:[%s3705_s1 + $0x638] sm:$0xff]  }
  0x96   :  { %2716 = vmatprep.subr.bf16.mxu1 %v2969_v46 }
  0x98   :  { %2695 = vmatpush3.bf16.msra.mxu0 %v2968_v45  ;;  %v3027_v45 = vld [vmem:[%s3706_s0 + $0x60] ss:$0 sps:$4 sm:$0xff]  }
  0x99   :  { %2717 = vmatpush3.bf16.msra.mxu1 %v2970_v47  ;;  %2696 = vmatprep.subr.bf16.mxu0 %v2971_v48 }
  0x9a   :  { %2718 = vmatprep.subr.bf16.mxu1 %v2973_v50 }
  0x9c   :  { %2697 = vmatpush3.bf16.msra.mxu0 %v2972_v49 }
  0x9d   :  { %2719 = vmatpush3.bf16.msra.mxu1 %v2974_v51  ;;  %2698 = vmatprep.subr.bf16.mxu0 %v2975_v52 }
  0x9e   :  { %2720 = vmatprep.subr.bf16.mxu1 %v2977_v54 }
  0xa0   :  { %2699 = vmatpush3.bf16.msra.mxu0 %v2976_v53 }
  0xa1   :  { %2721 = vmatpush3.bf16.msra.mxu1 %v2980_v58  ;;  %2728 = vmatprep.subr.bf16.mxu0 %v2981_v59 }
  0xa2   :  { %2750 = vmatprep.subr.bf16.mxu1 %v2985_v0 }
  0xa3   :  { %2072 = vmatmul.mubr.bf16.vlgmr.msra.gmra.mrb[16].mxu0 %v2297_v56 }
  0xa4   :  { %2729 = vmatpush3.bf16.msra.mxu0 %v2984_v63  ;;  %2112 = vmatmul.mubr.bf16.vlgmr.msra.gmra.mrb[16].mxu1 %v2299_v61 }
  0xa5   :  { %2751 = vmatpush3.bf16.msra.mxu1 %v2986_v1  ;;  %2730 = vmatprep.subr.bf16.mxu0 %v2987_v2 }
  0xa6   :  { %2752 = vmatprep.subr.bf16.mxu1 %v2989_v4  ;;  %2151 = vmatprep.mubr.bf16.mxu0 %v2302_v31 }
  0xa7   :  { %2191 = vmatprep.mubr.bf16.mxu1 %v2304_v36 }
  0xa8   :  { %2731 = vmatpush3.bf16.msra.mxu0 %v2988_v3 }
  0xa9   :  { %2753 = vmatpush3.bf16.msra.mxu1 %v2990_v5  ;;  %2732 = vmatprep.subr.bf16.mxu0 %v2991_v6 }
  0xaa   :  { %2754 = vmatprep.subr.bf16.mxu1 %v2993_v8 }
  0xac   :  { %2733 = vmatpush3.bf16.msra.mxu0 %v2992_v7 }
  0xad   :  { %2755 = vmatpush3.bf16.msra.mxu1 %v2994_v9  ;;  %2734 = vmatprep.subr.bf16.mxu0 %v2995_v10 }
  0xae   :  { %2756 = vmatprep.subr.bf16.mxu1 %v2997_v12 }
  0xb0   :  { %2735 = vmatpush3.bf16.msra.mxu0 %v2996_v11 }
  0xb1   :  { %2757 = vmatpush3.bf16.msra.mxu1 %v2998_v13  ;;  %2736 = vmatprep.subr.bf16.mxu0 %v2999_v14 }
  0xb2   :  { %2758 = vmatprep.subr.bf16.mxu1 %v3001_v16 }
  0xb4   :  { %2737 = vmatpush3.bf16.msra.mxu0 %v3000_v15 }
  0xb5   :  { %2759 = vmatpush3.bf16.msra.mxu1 %v3002_v17  ;;  %2738 = vmatprep.subr.bf16.mxu0 %v3003_v18 }
  0xb6   :  { %2760 = vmatprep.subr.bf16.mxu1 %v3005_v20 }
  0xb8   :  { %2739 = vmatpush3.bf16.msra.mxu0 %v3004_v19 }
  0xb9   :  { %2761 = vmatpush3.bf16.msra.mxu1 %v3006_v21  ;;  %2740 = vmatprep.subr.bf16.mxu0 %v3007_v22 }
  0xba   :  { %2762 = vmatprep.subr.bf16.mxu1 %v3009_v24 }
  0xbc   :  { %2741 = vmatpush3.bf16.msra.mxu0 %v3008_v23 }
  0xbd   :  { %2763 = vmatpush3.bf16.msra.mxu1 %v3010_v25  ;;  %2742 = vmatprep.subr.bf16.mxu0 %v3011_v26 }
  0xbe   :  { %2764 = vmatprep.subr.bf16.mxu1 %v3013_v28 }
  0xc0   :  { %2743 = vmatpush3.bf16.msra.mxu0 %v3012_v27 }
  0xc1   :  { %2781 = vmatprep.subr.bf16.mxu0 %v3030_v34  ;;  %2765 = vmatpush3.bf16.msra.mxu1 %v3016_v32 }
  0xc3   :  { %2152 = vmatmul.mubr.bf16.vlgmr.msra.gmra.mrb[20].mxu0 %v2301_v30 }
  0xc4   :  { %2782 = vmatpush3.bf16.msra.mxu0 %v3019_v37  ;;  %2797 = vmatprep.mubr.msk.bf16.mxu0 %vm3031_vm0, %v3030_v34 }
  0xc5   :  { %2192 = vmatmul.mubr.bf16.vlgmr.msra.gmra.mrb[20].mxu1 %v2303_v35  ;;  %2783 = vmatprep.subr.bf16.mxu0 %v3030_v34 }
  0xc8   :  { %2784 = vmatpush3.bf16.msra.mxu0 %v3020_v38 }
  0xc9   :  { %2785 = vmatprep.subr.bf16.mxu0 %v3030_v34 }
  0xcc   :  { %2786 = vmatpush3.bf16.msra.mxu0 %v3021_v39 }
  0xcd   :  { %2787 = vmatprep.subr.bf16.mxu0 %v3030_v34 }
  0xd0   :  { %2788 = vmatpush3.bf16.msra.mxu0 %v3022_v40 }
  0xd1   :  { %2789 = vmatprep.subr.bf16.mxu0 %v3030_v34 }
  0xd4   :  { %2790 = vmatpush3.bf16.msra.mxu0 %v3023_v41 }
  0xd5   :  { %2791 = vmatprep.subr.bf16.mxu0 %v3030_v34 }
  0xd8   :  { %2792 = vmatpush3.bf16.msra.mxu0 %v3024_v42 }
  0xd9   :  { %2793 = vmatprep.subr.bf16.mxu0 %v3030_v34 }
  0xdc   :  { %2794 = vmatpush3.bf16.msra.mxu0 %v3025_v43 }
  0xdd   :  { %2795 = vmatprep.subr.bf16.mxu0 %v3030_v34 }
  0xe0   :  { %2796 = vmatpush3.bf16.msra.mxu0 %v3026_v44 }
  0xe3   :  { %2798 = vmatmul.mubr.bf16.vlgmr.msra.gmra.mrb[24].mxu0 %v3027_v45 }
  0xf6   :  { %v2524_v46 = vpop.f32.mrb[0].mxu0 }
  0xf7   :  { %v2546_v47 = vpop.f32.mrb[0].mxu1  ;;  %v2525_v48 = vpop.f32.mrb[1].mxu0 }
  0xf8   :  { %v2547_v49 = vpop.f32.mrb[1].mxu1  ;;  %v2526_v50 = vadd.f32 %v2525_v48, %v2524_v46  ;;  %v2527_v52 = vpop.f32.mrb[2].mxu0 }
  0xf9   :  { %v2548_v51 = vadd.f32 %v2547_v49, %v2546_v47  ;;  %v2549_v53 = vpop.f32.mrb[2].mxu1  ;;  %v2528_v54 = vpop.f32.mrb[3].mxu0 }
  0xfa   :  { %v2550_v55 = vpop.f32.mrb[3].mxu1 }
  0xfb   :  { %v1794_v56 = vadd.f32 %v2548_v51, %v2526_v50 }
 0x116   :  { %v2568_v57 = vpop.f32.mrb[4].mxu0 }
 0x117   :  { %v2569_v58 = vpop.f32.mrb[5].mxu0  ;;  %v2590_v59 = vpop.f32.mrb[4].mxu1 }
 0x118   :  { %v2570_v60 = vadd.f32 %v2569_v58, %v2568_v57  ;;  %v2571_v61 = vpop.f32.mrb[6].mxu0  ;;  %v2591_v62 = vpop.f32.mrb[5].mxu1 }
 0x119   :  { %v2572_v63 = vpop.f32.mrb[7].mxu0  ;;  %v2592_v0 = vadd.f32 %v2591_v62, %v2590_v59  ;;  %v2593_v1 = vpop.f32.mrb[6].mxu1 }
 0x11a   :  { %v1834_v2 = vadd.f32 %v2570_v60, %v1794_v56  ;;  %v2594_v3 = vpop.f32.mrb[7].mxu1 }
 0x11c   :  { %v1874_v4 = vadd.f32 %v2592_v0, %v1834_v2 }
 0x136   :  { %v2612_v5 = vpop.f32.mrb[8].mxu0 }
 0x137   :  { %v2613_v6 = vpop.f32.mrb[9].mxu0  ;;  %v2634_v9 = vpop.f32.mrb[8].mxu1 }
 0x138   :  { %v2614_v7 = vadd.f32 %v2613_v6, %v2612_v5  ;;  %v2615_v8 = vpop.f32.mrb[10].mxu0  ;;  %v2635_v11 = vpop.f32.mrb[9].mxu1 }
 0x139   :  { %v2616_v10 = vpop.f32.mrb[11].mxu0  ;;  %v2636_v13 = vadd.f32 %v2635_v11, %v2634_v9  ;;  %v2637_v14 = vpop.f32.mrb[10].mxu1 }
 0x13a   :  { %v1914_v12 = vadd.f32 %v2614_v7, %v1874_v4  ;;  %v2638_v15 = vpop.f32.mrb[11].mxu1  ;;  %v2507_v14 = vld [vmem:[%s3708_s3] ss:$0 sm:$0xff] }
 0x13c   :  { %v1954_v16 = vadd.f32 %v2636_v13, %v1914_v12  ;;  %v2506_v12 = vld [vmem:[%s3707_s2] ss:$0 sm:$0xff] }
 0x156   :  { %v2656_v17 = vpop.f32.mrb[12].mxu0 }
 0x157   :  { %v2657_v18 = vpop.f32.mrb[13].mxu0  ;;  %v2678_v21 = vpop.f32.mrb[12].mxu1 }
 0x158   :  { %v2658_v19 = vadd.f32 %v2657_v18, %v2656_v17  ;;  %v2659_v20 = vpop.f32.mrb[14].mxu0  ;;  %v2679_v23 = vpop.f32.mrb[13].mxu1 }
 0x159   :  { %v2660_v22 = vpop.f32.mrb[15].mxu0  ;;  %v2680_v25 = vadd.f32 %v2679_v23, %v2678_v21  ;;  %v2681_v26 = vpop.f32.mrb[14].mxu1 }
 0x15a   :  { %v1994_v24 = vadd.f32 %v2658_v19, %v1954_v16  ;;  %v2682_v27 = vpop.f32.mrb[15].mxu1 }
 0x15c   :  { %v2034_v28 = vadd.f32 %v2680_v25, %v1994_v24 }
 0x176   :  { %v2700_v29 = vpop.f32.mrb[16].mxu0 }
 0x177   :  { %v2701_v30 = vpop.f32.mrb[17].mxu0  ;;  %v2722_v33 = vpop.f32.mrb[16].mxu1 }
 0x178   :  { %v2702_v31 = vadd.f32 %v2701_v30, %v2700_v29  ;;  %v2703_v32 = vpop.f32.mrb[18].mxu0  ;;  %v2723_v36 = vpop.f32.mrb[17].mxu1 }
 0x179   :  { %v2704_v34 = vpop.f32.mrb[19].mxu0  ;;  %v2724_v37 = vadd.f32 %v2723_v36, %v2722_v33  ;;  %v2725_v38 = vpop.f32.mrb[18].mxu1 }
 0x17a   :  { %v2074_v35 = vadd.f32 %v2702_v31, %v2034_v28  ;;  %v2726_v39 = vpop.f32.mrb[19].mxu1 }
 0x17c   :  { %v2114_v40 = vadd.f32 %v2724_v37, %v2074_v35 }
 0x196   :  { %v2744_v41 = vpop.f32.mrb[20].mxu0 }
 0x197   :  { %v2745_v42 = vpop.f32.mrb[21].mxu0 }
 0x198   :  { %v2746_v43 = vadd.f32 %v2745_v42, %v2744_v41  ;;  %v2747_v44 = vpop.f32.mrb[22].mxu0  ;;  %v2766_v45 = vpop.f32.mrb[20].mxu1 }
 0x199   :  { %v2748_v46 = vpop.f32.mrb[23].mxu0  ;;  %v2767_v47 = vpop.f32.mrb[21].mxu1 }
 0x19a   :  { %v2154_v48 = vadd.f32 %v2746_v43, %v2114_v40  ;;  %v2768_v49 = vadd.f32 %v2767_v47, %v2766_v45  ;;  %v2769_v50 = vpop.f32.mrb[22].mxu1 }
 0x19b   :  { %v2770_v51 = vpop.f32.mrb[23].mxu1 }
 0x19c   :  { %v2194_v52 = vadd.f32 %v2768_v49, %v2154_v48 }
 0x1b6   :  { %v2233_v53 = vpop.f32.mrb[24].mxu0 }
 0x1b7   :  { %v2234_v54 = vadd.f32 %v2233_v53, %v2194_v52  ;;  %v2799_v55 = vpop.f32.mrb[25].mxu0 }
 0x1b8   :  { %v2236_v56 = vpop.f32.mrb[26].mxu0 }
 0x1b9   :  { %v2239_v57 = vrot.slane %v2234_v54, 4  ;;  %v2800_v58 = vpop.f32.mrb[27].mxu0 }
 0x1bb   :  { %v2240_v59 = vadd.f32 %v2239_v57, %v2234_v54 }
 0x1bd   :  { %v2241_v60 = vrot.slane %v2240_v59, 2 }
 0x1bf   :  { %v2242_v61 = vadd.f32 %v2241_v60, %v2240_v59 }
 0x1c1   :  { %v2243_v62 = vrot.slane %v2242_v61, 1 }
 0x1c3   :  { %v2244_v63 = vadd.f32 %v2243_v62, %v2242_v61 }
 0x1c5   :  { %v2245_v0 = vmul.f32 0.125, %v2244_v63 }
 0x1c7   :  { %v2246_v1 = vsub.f32 %v2234_v54, %v2245_v0 }
 0x1c9   :  { %v2247_v2 = vmul.f32 %v2246_v1, %v2246_v1 }
 0x1cb   :  { %v2248_v3 = vrot.slane %v2247_v2, 4 }
 0x1cd   :  { %v2249_v4 = vadd.f32 %v2248_v3, %v2247_v2 }
 0x1cf   :  { %v2250_v5 = vrot.slane %v2249_v4, 2 }
 0x1d1   :  { %v2251_v6 = vadd.f32 %v2250_v5, %v2249_v4 }
 0x1d3   :  { %v2252_v7 = vrot.slane %v2251_v6, 1 }
 0x1d5   :  { %v2253_v8 = vadd.f32 %v2252_v7, %v2251_v6 }
 0x1d7   :  { %v2254_v9 = vmul.f32 0.125, %v2253_v8 }
 0x1d9   :  { %v2255_v10 = vadd.f32 1e-05, %v2254_v9 }
 0x1db   :  { %3028 = vrsqrt.f32 %v2255_v10 }
 0x1e5   :  { %v3029_v11 = vpop.eup %3028 }
 0x1e6   :  { %v2257_v13 = vmul.f32 %v3029_v11, %v2246_v1 }
 0x1e8   :  { %v2265_v15 = vmul.f32 %v2506_v12, %v2257_v13 }
 0x1ea   :  { %v2273_v16 = vadd.f32 %v2507_v14, %v2265_v15 }
 0x1ec   :  { %v2274_v17 = vmax.f32 %v2273_v16, 0.0 }
 0x1ee   :  { %v2275_v18 = vpack.c.bf16 %v2274_v17, %v2274_v17 }
 0x1f0   :  { %2276 = vst [vmem:[%s3709_s4] sm:$0xf] %v2275_v18 }

</bundles_post_ra>
